<compile_context>
chip_gen: v7x
topology: tpu7x:2x2x1
jax: 0.10.0
libtpu: 0.0.40
codegen_flags: <defaults>
</compile_context>

<pallas_src>
import functools

import jax
import jax.numpy as jnp
import numpy as np
from jax import lax
from jax.experimental import pallas as pl
from jax.experimental.pallas import tpu as pltpu


# ============================================================================
# The fused Pallas kernel (one batch tile per grid step)
# ============================================================================

def _fused_forward_kernel(
        h_ref,       # (Bt*L, Wf)   fc0 output, position-major slab for this batch tile
        bounds_ref,  # (Bt, 2*dim_out)
        fwd_ref,     # (2M, L)      forward real-DFT rows: [Re | Im]
        inv_ref,     # (L, 2M)      inverse real-DFT (1/L and x2 factors folded in)
        pool_ref,    # (1, L)       mean over the sequence (1/L entries)
        wr_ref,      # (n_fno*M, Wf, Wf)   Re spectral weights, (mode, in, out)
        wi_ref,      # (n_fno*M, Wf, Wf)   Im spectral weights
        cw_ref,      # (n_fno, Wf, Wf)     pointwise Conv1d weights, stored (in, out)
        cb_ref,      # (n_fno, 1, Wf)
        fc1_w_ref,   # (Wf, E)
        fc1_b_ref,   # (1, E)
        w1e_ref,     # (E, LW)             first MLP linear, embedding half
        w1b_ref,     # (2*dim_out, LW)     first MLP linear, bounds half
        b1_ref,      # (1, LW)
        mw_ref,      # (num_blocks*repeats, LW, LW)
        mb_ref,      # (num_blocks*repeats, 1, LW)
        wl_ref,      # (LW, dim_out)
        bl_ref,      # (1, dim_out)
        out_ref,     # (Bt, dim_out)
        *, modes, seq_len, batch_tile, n_fno_blocks, num_blocks, repeats):
    f32 = jnp.float32
    M, L, Bt = modes, seq_len, batch_tile

    fwd = fwd_ref[...]        # (2M, L)   loaded once per grid step (VMEM resident)
    inv = inv_ref[...]        # (L, 2M)
    pool = pool_ref[...]      # (1, L)

    # ---------------- FNO blocks ----------------
    def fno_block(blk, h):    # h: (Bt*L, Wf) position-major slab
        wr_b = wr_ref[pl.ds(blk * M, M)]      # (M, Wf, Wf)
        wi_b = wi_ref[pl.ds(blk * M, M)]
        # forward real DFT of every sequence in the tile: one 2-D MXU matmul per batch.
        xr_parts, xi_parts = [], []
        for b in range(Bt):
            xf_b = jnp.dot(fwd, h[b * L:(b + 1) * L, :], preferred_element_type=f32)
            xr_parts.append(xf_b[:M])         # (M, Wf) real rows
            xi_parts.append(xf_b[M:])         # (M, Wf) imag rows
        xr = jnp.stack(xr_parts, axis=1)      # (M, Bt, Wf)
        xi = jnp.stack(xi_parts, axis=1)
        # complex per-mode channel mixing, one batched dot_general per term
        # (batch dim = mode, Bt rows per matmul -> no masked accumulation).
        yr = (jnp.einsum("mbi,mio->mbo", xr, wr_b, preferred_element_type=f32)
              - jnp.einsum("mbi,mio->mbo", xi, wi_b, preferred_element_type=f32))
        yi = (jnp.einsum("mbi,mio->mbo", xr, wi_b, preferred_element_type=f32)
              + jnp.einsum("mbi,mio->mbo", xi, wr_b, preferred_element_type=f32))
        # inverse real DFT (spectrum zero beyond `modes`) back to sequence space.
        spec_parts = []
        for b in range(Bt):
            y_b = jnp.concatenate([yr[:, b, :], yi[:, b, :]], axis=0)   # (2M, Wf)
            spec_parts.append(jnp.dot(inv, y_b, preferred_element_type=f32))
        spec = jnp.concatenate(spec_parts, axis=0)                      # (Bt*L, Wf)
        # pointwise Conv1d(kernel_size=1) + bias on the whole slab.
        pw = jnp.dot(h, cw_ref[blk], preferred_element_type=f32) + cb_ref[blk]
        # TODO(synk): PyTorch nn.GELU defaults to exact erf; tanh approximation used.
        return jax.nn.gelu(spec + pw)

    h = lax.fori_loop(0, n_fno_blocks, fno_block, h_ref[...])

    # ---- mean over the sequence (per-tile pooling matmul) then fc1 (they commute) ----
    hm = jnp.concatenate(
        [jnp.dot(pool, h[b * L:(b + 1) * L, :], preferred_element_type=f32)
         for b in range(Bt)], axis=0)                                   # (Bt, Wf)
    emb = jnp.dot(hm, fc1_w_ref[...], preferred_element_type=f32) + fc1_b_ref[...]

    # ---- conditioning='concat' folded into a split first matmul + ResidualMLP ----
    z = (jnp.dot(emb, w1e_ref[...], preferred_element_type=f32)
         + jnp.dot(bounds_ref[...], w1b_ref[...], preferred_element_type=f32)
         + b1_ref[...])

    def mlp_block(nb, z):
        skip = z
        for r in range(repeats):
            idx = nb * repeats + r
            z = jax.nn.gelu(z)
            z = jnp.dot(z, mw_ref[idx], preferred_element_type=f32) + mb_ref[idx]
        return z + skip

    z = lax.fori_loop(0, num_blocks, mlp_block, z)
    out_ref[...] = jnp.dot(z, wl_ref[...], preferred_element_type=f32) + bl_ref[...]


# ============================================================================
# Host-side operand preparation (per-sequence DFT operators, layout re-packing)
# ============================================================================

def build_dft_operators(L, M):
    """Per-sequence real forward/inverse DFT operators equivalent to rfft / irfft
    restricted to the first M modes (O(L*M) storage, applied per batch in the tile)."""
    l = np.arange(L, dtype=np.float64)[:, None]
    m = np.arange(M, dtype=np.float64)[None, :]
    ang = 2.0 * np.pi * l * m / L
    cf = np.cos(ang)                                   # (L, M): Re(rfft) = cf.T @ x
    sf = -np.sin(ang)                                  # (L, M): Im(rfft) = sf.T @ x
    fwd = np.concatenate([cf.T, sf.T], axis=0)         # (2M, L)
    factor = np.full((M,), 2.0 / L)
    factor[0] = 1.0 / L
    if L % 2 == 0 and M == L // 2 + 1:
        factor[-1] = 1.0 / L                           # Nyquist bin
    ang_inv = 2.0 * np.pi * np.arange(M)[:, None] * np.arange(L)[None, :] / L
    ci = factor[:, None] * np.cos(ang_inv)             # (M, L)
    si = -factor[:, None] * np.sin(ang_inv)
    inv = np.concatenate([ci.T, si.T], axis=1)         # (L, 2M): irfft = [Yr|Yi] path
    pool = np.full((1, L), 1.0 / L)
    return (jnp.asarray(fwd, jnp.float32),
            jnp.asarray(inv, jnp.float32),
            jnp.asarray(pool, jnp.float32))


def prepare_operands(params, *, L, modes):
    """Repack parameters into kernel-friendly layouts (row biases, (mode, in, out)
    spectral weights stacked along a leading block*mode axis, split first MLP matrix,
    per-sequence DFT operators)."""
    fwd, inv, pool = build_dft_operators(L, modes)
    fno = params["fno_blocks"]
    wr = jnp.concatenate([jnp.transpose(b["wr"], (2, 0, 1)) for b in fno], axis=0)
    wi = jnp.concatenate([jnp.transpose(b["wi"], (2, 0, 1)) for b in fno], axis=0)
    cw = jnp.stack([b["cw"].T for b in fno], axis=0)            # (n_fno, Wf, Wf) (in,out)
    cb = jnp.stack([b["cb"].T for b in fno], axis=0)            # (n_fno, 1, Wf)
    E = params["fc1_w"].shape[1]
    w1e = params["mlp_first_w"][:E]
    w1b = params["mlp_first_w"][E:]
    mw = jnp.concatenate([b["ws"] for b in params["mlp_blocks"]], axis=0)
    mb = jnp.concatenate([b["bs"] for b in params["mlp_blocks"]], axis=0)
    return (fwd, inv, pool, wr, wi, cw, cb,
            params["fc1_w"], params["fc1_b"],
            w1e, w1b, params["mlp_first_b"],
            mw, mb, params["mlp_last_w"], params["mlp_last_b"])


# ============================================================================
# Forward pass (one pallas_call with a parallel batch-tile grid)
# ============================================================================

def network_with_priors_fno_emb(params, curves, bounds, q_values=None, *,
                                batch_tile=None, vmem_limit_bytes=32 * 1024 * 1024):
    # TODO(synk): fusion_self_attention, batch-norm, dropout and glu/film conditioning
    # are config-off by default in the reference module and are not implemented here.
    if curves.ndim < 3:
        curves = curves[:, None, :]
    if q_values is not None:
        curves = jnp.concatenate([curves, q_values[:, None, :]], axis=1)   # (B, C_in, L)
    B, _, L = curves.shape
    modes = params["fno_blocks"][0]["wr"].shape[2]
    n_fno = len(params["fno_blocks"])
    num_blocks = len(params["mlp_blocks"])
    repeats = params["mlp_blocks"][0]["ws"].shape[0]
    dim_out = params["mlp_last_w"].shape[1]
    width_fno = params["fc0_w"].shape[0]
    dim_emb = params["fc1_w"].shape[1]
    layer_width = params["mlp_first_b"].shape[1]
    assert L % 8 == 0, "sequence length must be a multiple of 8 (sublane tiling)"

    # batch tile: tunable; default 8 rows per step (multiple of the sublane count).
    if batch_tile is None:
        batch_tile = 8 if B % 8 == 0 else B
    bt = min(batch_tile, B)
    assert B % bt == 0 and (bt % 8 == 0 or bt == B), (B, bt)

    # fc0 (K = in_channels = 2 pointwise linear) stays in the XLA wrapper: feeding the
    # (B*L, width_fno) result keeps the streamed kernel operand lane-dense instead of a
    # 2-wide (128-lane padded) input, and a K=2 contraction is a poor MXU fit anyway.
    h0 = (jnp.einsum("wc,bcl->blw", params["fc0_w"], curves)
          + params["fc0_b"][:, 0][None, None, :]).reshape(B * L, width_fno)
    h0 = h0.astype(jnp.float32)
    bounds = bounds.astype(jnp.float32)

    ops = prepare_operands(params, L=L, modes=modes)

    kernel = functools.partial(
        _fused_forward_kernel, modes=modes, seq_len=L, batch_tile=bt,
        n_fno_blocks=n_fno, num_blocks=num_blocks, repeats=repeats)

    def _resident(a):
        # full-array block, constant block index -> DMA'd once, VMEM-resident.
        ndim = a.ndim

        def index_map(i):
            return (0,) * ndim
        return pl.BlockSpec(a.shape, index_map)

    in_specs = ([pl.BlockSpec((bt * L, width_fno), lambda i: (i, 0)),   # streamed slab
                 pl.BlockSpec((bt, 2 * dim_out), lambda i: (i, 0))]     # streamed bounds
                + [_resident(a) for a in ops])
    out_specs = pl.BlockSpec((bt, dim_out), lambda i: (i, 0))

    # rough advisory cost for XLA's scheduler around this (long-running) fused kernel
    macs_fno = n_fno * (2 * modes * L * width_fno            # forward DFT
                        + 4 * modes * width_fno * width_fno  # complex channel mixing
                        + 2 * modes * L * width_fno          # inverse DFT
                        + L * width_fno * width_fno)         # pointwise conv
    macs_head = L * width_fno + width_fno * dim_emb
    macs_mlp = ((dim_emb + 2 * dim_out) * layer_width
                + num_blocks * repeats * layer_width * layer_width
                + layer_width * dim_out)
    flops = int(2 * B * (macs_fno + macs_head + macs_mlp))
    transcendentals = int(B * (n_fno * L * width_fno + num_blocks * repeats * layer_width))
    bytes_accessed = int(4 * (h0.size + bounds.size + B * dim_out
                              + sum(int(np.prod(a.shape)) for a in ops)))

    return pl.pallas_call(
        kernel,
        out_shape=jax.ShapeDtypeStruct((B, dim_out), jnp.float32),
        grid_spec=pltpu.PrefetchScalarGridSpec(
            num_scalar_prefetch=0, grid=(B // bt,),
            in_specs=in_specs, out_specs=out_specs),
        compiler_params=pltpu.CompilerParams(
            dimension_semantics=("parallel",),
            vmem_limit_bytes=vmem_limit_bytes),
        cost_estimate=pl.CostEstimate(flops=flops, transcendentals=transcendentals,
                                      bytes_accessed=bytes_accessed),
    )(h0, bounds, *ops)


# ============================================================================
# Parameter initialization + pure-JAX reference (uses jnp.fft) for validation
# ============================================================================

def init_params(key, *, in_channels, dim_embedding, modes, width_fno, n_fno_blocks,
                dim_out, layer_width, num_blocks, repeats_per_block):
    keys = iter(jax.random.split(key, 128))

    def nrm(shape, scale):
        return scale * jax.random.normal(next(keys), shape, jnp.float32)

    p = {}
    p["fc0_w"] = nrm((width_fno, in_channels), 0.3)
    p["fc0_b"] = nrm((width_fno, 1), 0.1)

    spec_scale = 1.0 / (width_fno * width_fno)
    p["fno_blocks"] = []
    for _ in range(n_fno_blocks):
        p["fno_blocks"].append(dict(
            wr=spec_scale * jax.random.uniform(next(keys), (width_fno, width_fno, modes), jnp.float32),
            wi=spec_scale * jax.random.uniform(next(keys), (width_fno, width_fno, modes), jnp.float32),
            cw=nrm((width_fno, width_fno), 0.2),
            cb=nrm((width_fno, 1), 0.1),
        ))

    p["fc1_w"] = nrm((width_fno, dim_embedding), 0.2)     # stored (in, out)
    p["fc1_b"] = nrm((1, dim_embedding), 0.1)

    dim_mlp_in = dim_embedding + 2 * dim_out               # conditioning='concat'
    p["mlp_first_w"] = nrm((dim_mlp_in, layer_width), 0.2)
    p["mlp_first_b"] = nrm((1, layer_width), 0.1)
    p["mlp_blocks"] = []
    for _ in range(num_blocks):
        p["mlp_blocks"].append(dict(
            ws=nrm((repeats_per_block, layer_width, layer_width), 0.1),
            bs=nrm((repeats_per_block, 1, layer_width), 0.05),
        ))
    p["mlp_last_w"] = nrm((layer_width, dim_out), 0.2)
    p["mlp_last_b"] = nrm((1, dim_out), 0.1)
    return p


def reference_forward(params, curves, bounds, q_values, modes, L):
    """Pure-JAX reference (uses jnp.fft) for a numerical sanity check."""
    if curves.ndim < 3:
        curves = curves[:, None, :]
    if q_values is not None:
        curves = jnp.concatenate([curves, q_values[:, None, :]], axis=1)
    x = jnp.einsum("wc,bcl->bwl", params["fc0_w"], curves) + params["fc0_b"][None]
    for blk in params["fno_blocks"]:
        xft = jnp.fft.rfft(x, axis=-1)
        w_c = blk["wr"].astype(jnp.complex64) + 1j * blk["wi"].astype(jnp.complex64)
        mixed = jnp.einsum("bim,iom->bom", xft[:, :, :modes], w_c)
        out_ft = jnp.zeros(x.shape[:2] + (L // 2 + 1,), jnp.complex64).at[:, :, :modes].set(mixed)
        spec = jnp.fft.irfft(out_ft, n=L, axis=-1)
        pw = jnp.einsum("oi,bil->bol", blk["cw"], x) + blk["cb"][None]
        x = jax.nn.gelu(spec + pw)
    emb = (jnp.einsum("bwl,we->ble", x, params["fc1_w"]) + params["fc1_b"]).mean(axis=1)
    h = jnp.concatenate([emb, bounds], axis=-1)
    h = h @ params["mlp_first_w"] + params["mlp_first_b"]
    for blk in params["mlp_blocks"]:
        skip = h
        for r in range(blk["ws"].shape[0]):
            h = jax.nn.gelu(h)
            h = h @ blk["ws"][r] + blk["bs"][r]
        h = h + skip
    return h @ params["mlp_last_w"] + params["mlp_last_b"]


# ============================================================================

if __name__ == "__main__":
    # small, forward-consistent shapes (B chosen so the grid has 2 batch tiles)
    B, L = 16, 32
    in_channels = 2          # curves + q_values
    dim_embedding = 32
    modes = 4                # <= L//2 + 1
    width_fno = 16
    n_fno_blocks = 2
    dim_out = 4              # bounds has 2*dim_out entries
    layer_width = 64
    num_blocks = 2
    repeats_per_block = 2

    key = jax.random.PRNGKey(0)
    k_curves, k_bounds, k_params = jax.random.split(key, 3)
    curves = jax.random.uniform(k_curves, (B, L), jnp.float32)
    q_values = jnp.broadcast_to(jnp.linspace(0.02, 0.3, L, dtype=jnp.float32), (B, L))
    bounds = jax.random.uniform(k_bounds, (B, 2 * dim_out), jnp.float32)

    params = init_params(k_params, in_channels=in_channels, dim_embedding=dim_embedding,
                         modes=modes, width_fno=width_fno, n_fno_blocks=n_fno_blocks,
                         dim_out=dim_out, layer_width=layer_width,
                         num_blocks=num_blocks, repeats_per_block=repeats_per_block)

    out = network_with_priors_fno_emb(params, curves, bounds, q_values, batch_tile=8)
    out = jax.block_until_ready(out)

    assert out.shape == (B, dim_out), out.shape
    assert bool(jnp.all(jnp.isfinite(out)))

    ref = jax.block_until_ready(reference_forward(params, curves, bounds, q_values, modes, L))
    np.testing.assert_allclose(np.asarray(out), np.asarray(ref), rtol=1e-3, atol=1e-3)

    print("KERNEL_OK")
</pallas_src>

<mosaic_0001>
module attributes {stable_mosaic.version = 11 : i64} {
  func.func @_fused_forward_kernel(%arg0: i32, %arg1: memref<256x16xf32, #tpu.memory_space<vmem>>, %arg2: memref<8x8xf32, #tpu.memory_space<vmem>>, %arg3: memref<8x32xf32, #tpu.memory_space<vmem>>, %arg4: memref<32x8xf32, #tpu.memory_space<vmem>>, %arg5: memref<1x32xf32, #tpu.memory_space<vmem>>, %arg6: memref<8x16x16xf32, #tpu.memory_space<vmem>>, %arg7: memref<8x16x16xf32, #tpu.memory_space<vmem>>, %arg8: memref<2x16x16xf32, #tpu.memory_space<vmem>>, %arg9: memref<2x1x16xf32, #tpu.memory_space<vmem>>, %arg10: memref<16x32xf32, #tpu.memory_space<vmem>>, %arg11: memref<1x32xf32, #tpu.memory_space<vmem>>, %arg12: memref<32x64xf32, #tpu.memory_space<vmem>>, %arg13: memref<8x64xf32, #tpu.memory_space<vmem>>, %arg14: memref<1x64xf32, #tpu.memory_space<vmem>>, %arg15: memref<4x64x64xf32, #tpu.memory_space<vmem>>, %arg16: memref<4x1x64xf32, #tpu.memory_space<vmem>>, %arg17: memref<64x4xf32, #tpu.memory_space<vmem>>, %arg18: memref<1x4xf32, #tpu.memory_space<vmem>>, %arg19: memref<8x4xf32, #tpu.memory_space<vmem>>) attributes {dimension_semantics = [#tpu.dimension_semantics<parallel>], iteration_bounds = array<i64: 2>, scalar_prefetch = 0 : i64, scratch_operands = 0 : i64, tpu.core_type = #tpu.core_type<tc>, window_params = [{transform_indices = @transform_0, window_bounds = array<i64: 256, 16>}, {transform_indices = @transform_1, window_bounds = array<i64: 8, 8>}, {pipeline_mode = #tpu.pipeline_mode<synchronous>, transform_indices = @transform_2, window_bounds = array<i64: 8, 32>}, {pipeline_mode = #tpu.pipeline_mode<synchronous>, transform_indices = @transform_3, window_bounds = array<i64: 32, 8>}, {pipeline_mode = #tpu.pipeline_mode<synchronous>, transform_indices = @transform_4, window_bounds = array<i64: 1, 32>}, {pipeline_mode = #tpu.pipeline_mode<synchronous>, transform_indices = @transform_5, window_bounds = array<i64: 8, 16, 16>}, {pipeline_mode = #tpu.pipeline_mode<synchronous>, transform_indices = @transform_6, window_bounds = array<i64: 8, 16, 16>}, {pipeline_mode = #tpu.pipeline_mode<synchronous>, transform_indices = @transform_7, window_bounds = array<i64: 2, 16, 16>}, {pipeline_mode = #tpu.pipeline_mode<synchronous>, transform_indices = @transform_8, window_bounds = array<i64: 2, 1, 16>}, {pipeline_mode = #tpu.pipeline_mode<synchronous>, transform_indices = @transform_9, window_bounds = array<i64: 16, 32>}, {pipeline_mode = #tpu.pipeline_mode<synchronous>, transform_indices = @transform_10, window_bounds = array<i64: 1, 32>}, {pipeline_mode = #tpu.pipeline_mode<synchronous>, transform_indices = @transform_11, window_bounds = array<i64: 32, 64>}, {pipeline_mode = #tpu.pipeline_mode<synchronous>, transform_indices = @transform_12, window_bounds = array<i64: 8, 64>}, {pipeline_mode = #tpu.pipeline_mode<synchronous>, transform_indices = @transform_13, window_bounds = array<i64: 1, 64>}, {pipeline_mode = #tpu.pipeline_mode<synchronous>, transform_indices = @transform_14, window_bounds = array<i64: 4, 64, 64>}, {pipeline_mode = #tpu.pipeline_mode<synchronous>, transform_indices = @transform_15, window_bounds = array<i64: 4, 1, 64>}, {pipeline_mode = #tpu.pipeline_mode<synchronous>, transform_indices = @transform_16, window_bounds = array<i64: 64, 4>}, {pipeline_mode = #tpu.pipeline_mode<synchronous>, transform_indices = @transform_17, window_bounds = array<i64: 1, 4>}, {transform_indices = @transform_18, window_bounds = array<i64: 8, 4>}]} {
    %c0 = arith.constant 0 : index
    %c0_0 = arith.constant 0 : index
    %0 = vector.load %arg3[%c0, %c0_0] : memref<8x32xf32, #tpu.memory_space<vmem>>, vector<8x32xf32>
    %c0_1 = arith.constant 0 : index
    %c0_2 = arith.constant 0 : index
    %1 = vector.load %arg4[%c0_1, %c0_2] : memref<32x8xf32, #tpu.memory_space<vmem>>, vector<32x8xf32>
    %c0_3 = arith.constant 0 : index
    %c0_4 = arith.constant 0 : index
    %2 = vector.load %arg5[%c0_3, %c0_4] : memref<1x32xf32, #tpu.memory_space<vmem>>, vector<1x32xf32>
    %c0_5 = arith.constant 0 : index
    %c0_6 = arith.constant 0 : index
    %3 = vector.load %arg1[%c0_5, %c0_6] : memref<256x16xf32, #tpu.memory_space<vmem>>, vector<256x16xf32>
    %c0_i32 = arith.constant 0 : i32
    %c2_i32 = arith.constant 2 : i32
    %4 = arith.addi %c0_i32, %c2_i32 : i32
    %c1_i32 = arith.constant 1 : i32
    %5 = scf.for %arg20 = %c0_i32 to %4 step %c1_i32 iter_args(%arg21 = %3) -> (vector<256x16xf32>)  : i32 {
      %c4_i32 = arith.constant 4 : i32
      %45 = arith.muli %arg20, %c4_i32 : i32
      %46 = arith.index_cast %45 : i32 to index
      %c0_41 = arith.constant 0 : index
      %c0_42 = arith.constant 0 : index
      %47 = vector.load %arg6[%46, %c0_41, %c0_42] : memref<8x16x16xf32, #tpu.memory_space<vmem>>, vector<4x16x16xf32>
      %c4_i32_43 = arith.constant 4 : i32
      %48 = arith.muli %arg20, %c4_i32_43 : i32
      %49 = arith.index_cast %48 : i32 to index
      %c0_44 = arith.constant 0 : index
      %c0_45 = arith.constant 0 : index
      %50 = vector.load %arg7[%49, %c0_44, %c0_45] : memref<8x16x16xf32, #tpu.memory_space<vmem>>, vector<4x16x16xf32>
      %51 = vector.extract_strided_slice %arg21 {offsets = [0, 0], sizes = [32, 16], strides = [1, 1]} : vector<256x16xf32> to vector<32x16xf32>
      %cst_46 = arith.constant dense<0.000000e+00> : vector<8x16xf32>
      %52 = tpu.matmul %0, %51, %cst_46 {dimension_numbers = #tpu.dot_dimension_numbers<[1], [0], [0], [1], [0, 0, 1, 1], [], []>} : vector<8x32xf32>, vector<32x16xf32>, vector<8x16xf32> -> vector<8x16xf32>
      %53 = vector.extract_strided_slice %52 {offsets = [0, 0], sizes = [4, 16], strides = [1, 1]} : vector<8x16xf32> to vector<4x16xf32>
      %54 = vector.extract_strided_slice %52 {offsets = [4, 0], sizes = [4, 16], strides = [1, 1]} : vector<8x16xf32> to vector<4x16xf32>
      %55 = vector.extract_strided_slice %arg21 {offsets = [32, 0], sizes = [32, 16], strides = [1, 1]} : vector<256x16xf32> to vector<32x16xf32>
      %cst_47 = arith.constant dense<0.000000e+00> : vector<8x16xf32>
      %56 = tpu.matmul %0, %55, %cst_47 {dimension_numbers = #tpu.dot_dimension_numbers<[1], [0], [0], [1], [0, 0, 1, 1], [], []>} : vector<8x32xf32>, vector<32x16xf32>, vector<8x16xf32> -> vector<8x16xf32>
      %57 = vector.extract_strided_slice %56 {offsets = [0, 0], sizes = [4, 16], strides = [1, 1]} : vector<8x16xf32> to vector<4x16xf32>
      %58 = vector.extract_strided_slice %56 {offsets = [4, 0], sizes = [4, 16], strides = [1, 1]} : vector<8x16xf32> to vector<4x16xf32>
      %59 = vector.extract_strided_slice %arg21 {offsets = [64, 0], sizes = [32, 16], strides = [1, 1]} : vector<256x16xf32> to vector<32x16xf32>
      %cst_48 = arith.constant dense<0.000000e+00> : vector<8x16xf32>
      %60 = tpu.matmul %0, %59, %cst_48 {dimension_numbers = #tpu.dot_dimension_numbers<[1], [0], [0], [1], [0, 0, 1, 1], [], []>} : vector<8x32xf32>, vector<32x16xf32>, vector<8x16xf32> -> vector<8x16xf32>
      %61 = vector.extract_strided_slice %60 {offsets = [0, 0], sizes = [4, 16], strides = [1, 1]} : vector<8x16xf32> to vector<4x16xf32>
      %62 = vector.extract_strided_slice %60 {offsets = [4, 0], sizes = [4, 16], strides = [1, 1]} : vector<8x16xf32> to vector<4x16xf32>
      %63 = vector.extract_strided_slice %arg21 {offsets = [96, 0], sizes = [32, 16], strides = [1, 1]} : vector<256x16xf32> to vector<32x16xf32>
      %cst_49 = arith.constant dense<0.000000e+00> : vector<8x16xf32>
      %64 = tpu.matmul %0, %63, %cst_49 {dimension_numbers = #tpu.dot_dimension_numbers<[1], [0], [0], [1], [0, 0, 1, 1], [], []>} : vector<8x32xf32>, vector<32x16xf32>, vector<8x16xf32> -> vector<8x16xf32>
      %65 = vector.extract_strided_slice %64 {offsets = [0, 0], sizes = [4, 16], strides = [1, 1]} : vector<8x16xf32> to vector<4x16xf32>
      %66 = vector.extract_strided_slice %64 {offsets = [4, 0], sizes = [4, 16], strides = [1, 1]} : vector<8x16xf32> to vector<4x16xf32>
      %67 = vector.extract_strided_slice %arg21 {offsets = [128, 0], sizes = [32, 16], strides = [1, 1]} : vector<256x16xf32> to vector<32x16xf32>
      %cst_50 = arith.constant dense<0.000000e+00> : vector<8x16xf32>
      %68 = tpu.matmul %0, %67, %cst_50 {dimension_numbers = #tpu.dot_dimension_numbers<[1], [0], [0], [1], [0, 0, 1, 1], [], []>} : vector<8x32xf32>, vector<32x16xf32>, vector<8x16xf32> -> vector<8x16xf32>
      %69 = vector.extract_strided_slice %68 {offsets = [0, 0], sizes = [4, 16], strides = [1, 1]} : vector<8x16xf32> to vector<4x16xf32>
      %70 = vector.extract_strided_slice %68 {offsets = [4, 0], sizes = [4, 16], strides = [1, 1]} : vector<8x16xf32> to vector<4x16xf32>
      %71 = vector.extract_strided_slice %arg21 {offsets = [160, 0], sizes = [32, 16], strides = [1, 1]} : vector<256x16xf32> to vector<32x16xf32>
      %cst_51 = arith.constant dense<0.000000e+00> : vector<8x16xf32>
      %72 = tpu.matmul %0, %71, %cst_51 {dimension_numbers = #tpu.dot_dimension_numbers<[1], [0], [0], [1], [0, 0, 1, 1], [], []>} : vector<8x32xf32>, vector<32x16xf32>, vector<8x16xf32> -> vector<8x16xf32>
      %73 = vector.extract_strided_slice %72 {offsets = [0, 0], sizes = [4, 16], strides = [1, 1]} : vector<8x16xf32> to vector<4x16xf32>
      %74 = vector.extract_strided_slice %72 {offsets = [4, 0], sizes = [4, 16], strides = [1, 1]} : vector<8x16xf32> to vector<4x16xf32>
      %75 = vector.extract_strided_slice %arg21 {offsets = [192, 0], sizes = [32, 16], strides = [1, 1]} : vector<256x16xf32> to vector<32x16xf32>
      %cst_52 = arith.constant dense<0.000000e+00> : vector<8x16xf32>
      %76 = tpu.matmul %0, %75, %cst_52 {dimension_numbers = #tpu.dot_dimension_numbers<[1], [0], [0], [1], [0, 0, 1, 1], [], []>} : vector<8x32xf32>, vector<32x16xf32>, vector<8x16xf32> -> vector<8x16xf32>
      %77 = vector.extract_strided_slice %76 {offsets = [0, 0], sizes = [4, 16], strides = [1, 1]} : vector<8x16xf32> to vector<4x16xf32>
      %78 = vector.extract_strided_slice %76 {offsets = [4, 0], sizes = [4, 16], strides = [1, 1]} : vector<8x16xf32> to vector<4x16xf32>
      %79 = vector.extract_strided_slice %arg21 {offsets = [224, 0], sizes = [32, 16], strides = [1, 1]} : vector<256x16xf32> to vector<32x16xf32>
      %cst_53 = arith.constant dense<0.000000e+00> : vector<8x16xf32>
      %80 = tpu.matmul %0, %79, %cst_53 {dimension_numbers = #tpu.dot_dimension_numbers<[1], [0], [0], [1], [0, 0, 1, 1], [], []>} : vector<8x32xf32>, vector<32x16xf32>, vector<8x16xf32> -> vector<8x16xf32>
      %81 = vector.extract_strided_slice %80 {offsets = [0, 0], sizes = [4, 16], strides = [1, 1]} : vector<8x16xf32> to vector<4x16xf32>
      %82 = vector.extract_strided_slice %80 {offsets = [4, 0], sizes = [4, 16], strides = [1, 1]} : vector<8x16xf32> to vector<4x16xf32>
      %83 = vector.shape_cast %53 : vector<4x16xf32> to vector<4x1x16xf32>
      %84 = vector.shape_cast %57 : vector<4x16xf32> to vector<4x1x16xf32>
      %85 = vector.shape_cast %61 : vector<4x16xf32> to vector<4x1x16xf32>
      %86 = vector.shape_cast %65 : vector<4x16xf32> to vector<4x1x16xf32>
      %87 = vector.shape_cast %69 : vector<4x16xf32> to vector<4x1x16xf32>
      %88 = vector.shape_cast %73 : vector<4x16xf32> to vector<4x1x16xf32>
      %89 = vector.shape_cast %77 : vector<4x16xf32> to vector<4x1x16xf32>
      %90 = vector.shape_cast %81 : vector<4x16xf32> to vector<4x1x16xf32>
      %91 = tpu.concatenate %83, %84, %85, %86, %87, %88, %89, %90 in 1 : vector<4x1x16xf32>, vector<4x1x16xf32>, vector<4x1x16xf32>, vector<4x1x16xf32>, vector<4x1x16xf32>, vector<4x1x16xf32>, vector<4x1x16xf32>, vector<4x1x16xf32> -> vector<4x8x16xf32>
      %92 = vector.shape_cast %54 : vector<4x16xf32> to vector<4x1x16xf32>
      %93 = vector.shape_cast %58 : vector<4x16xf32> to vector<4x1x16xf32>
      %94 = vector.shape_cast %62 : vector<4x16xf32> to vector<4x1x16xf32>
      %95 = vector.shape_cast %66 : vector<4x16xf32> to vector<4x1x16xf32>
      %96 = vector.shape_cast %70 : vector<4x16xf32> to vector<4x1x16xf32>
      %97 = vector.shape_cast %74 : vector<4x16xf32> to vector<4x1x16xf32>
      %98 = vector.shape_cast %78 : vector<4x16xf32> to vector<4x1x16xf32>
      %99 = vector.shape_cast %82 : vector<4x16xf32> to vector<4x1x16xf32>
      %100 = tpu.concatenate %92, %93, %94, %95, %96, %97, %98, %99 in 1 : vector<4x1x16xf32>, vector<4x1x16xf32>, vector<4x1x16xf32>, vector<4x1x16xf32>, vector<4x1x16xf32>, vector<4x1x16xf32>, vector<4x1x16xf32>, vector<4x1x16xf32> -> vector<4x8x16xf32>
      "tpu.trace_start"() <{level = 10 : i32, message = "mbi,mio->mbo"}> : () -> ()
      %cst_54 = arith.constant dense<0.000000e+00> : vector<4x8x16xf32>
      %101 = tpu.matmul %91, %47, %cst_54 {dimension_numbers = #tpu.dot_dimension_numbers<[2], [1], [1], [2], [0, 0, 0, 1, 1, 2], [0], [0]>} : vector<4x8x16xf32>, vector<4x16x16xf32>, vector<4x8x16xf32> -> vector<4x8x16xf32>
      %cst_55 = arith.constant dense<0.000000e+00> : vector<4x8x16xf32>
      %102 = tpu.matmul %100, %50, %cst_55 {dimension_numbers = #tpu.dot_dimension_numbers<[2], [1], [1], [2], [0, 0, 0, 1, 1, 2], [0], [0]>} : vector<4x8x16xf32>, vector<4x16x16xf32>, vector<4x8x16xf32> -> vector<4x8x16xf32>
      "tpu.trace_stop"() : () -> ()
      %103 = arith.subf %101, %102 : vector<4x8x16xf32>
      "tpu.trace_start"() <{level = 10 : i32, message = "mbi,mio->mbo"}> : () -> ()
      %cst_56 = arith.constant dense<0.000000e+00> : vector<4x8x16xf32>
      %104 = tpu.matmul %91, %50, %cst_56 {dimension_numbers = #tpu.dot_dimension_numbers<[2], [1], [1], [2], [0, 0, 0, 1, 1, 2], [0], [0]>} : vector<4x8x16xf32>, vector<4x16x16xf32>, vector<4x8x16xf32> -> vector<4x8x16xf32>
      %cst_57 = arith.constant dense<0.000000e+00> : vector<4x8x16xf32>
      %105 = tpu.matmul %100, %47, %cst_57 {dimension_numbers = #tpu.dot_dimension_numbers<[2], [1], [1], [2], [0, 0, 0, 1, 1, 2], [0], [0]>} : vector<4x8x16xf32>, vector<4x16x16xf32>, vector<4x8x16xf32> -> vector<4x8x16xf32>
      "tpu.trace_stop"() : () -> ()
      %106 = arith.addf %104, %105 : vector<4x8x16xf32>
      %107 = vector.extract_strided_slice %103 {offsets = [0, 0, 0], sizes = [4, 1, 16], strides = [1, 1, 1]} : vector<4x8x16xf32> to vector<4x1x16xf32>
      %108 = vector.shape_cast %107 : vector<4x1x16xf32> to vector<4x16xf32>
      %109 = vector.extract_strided_slice %106 {offsets = [0, 0, 0], sizes = [4, 1, 16], strides = [1, 1, 1]} : vector<4x8x16xf32> to vector<4x1x16xf32>
      %110 = vector.shape_cast %109 : vector<4x1x16xf32> to vector<4x16xf32>
      %111 = tpu.concatenate %108, %110 in 0 : vector<4x16xf32>, vector<4x16xf32> -> vector<8x16xf32>
      %cst_58 = arith.constant dense<0.000000e+00> : vector<32x16xf32>
      %112 = tpu.matmul %1, %111, %cst_58 {dimension_numbers = #tpu.dot_dimension_numbers<[1], [0], [0], [1], [0, 0, 1, 1], [], []>} : vector<32x8xf32>, vector<8x16xf32>, vector<32x16xf32> -> vector<32x16xf32>
      %113 = vector.extract_strided_slice %103 {offsets = [0, 1, 0], sizes = [4, 1, 16], strides = [1, 1, 1]} : vector<4x8x16xf32> to vector<4x1x16xf32>
      %114 = vector.shape_cast %113 : vector<4x1x16xf32> to vector<4x16xf32>
      %115 = vector.extract_strided_slice %106 {offsets = [0, 1, 0], sizes = [4, 1, 16], strides = [1, 1, 1]} : vector<4x8x16xf32> to vector<4x1x16xf32>
      %116 = vector.shape_cast %115 : vector<4x1x16xf32> to vector<4x16xf32>
      %117 = tpu.concatenate %114, %116 in 0 : vector<4x16xf32>, vector<4x16xf32> -> vector<8x16xf32>
      %cst_59 = arith.constant dense<0.000000e+00> : vector<32x16xf32>
      %118 = tpu.matmul %1, %117, %cst_59 {dimension_numbers = #tpu.dot_dimension_numbers<[1], [0], [0], [1], [0, 0, 1, 1], [], []>} : vector<32x8xf32>, vector<8x16xf32>, vector<32x16xf32> -> vector<32x16xf32>
      %119 = vector.extract_strided_slice %103 {offsets = [0, 2, 0], sizes = [4, 1, 16], strides = [1, 1, 1]} : vector<4x8x16xf32> to vector<4x1x16xf32>
      %120 = vector.shape_cast %119 : vector<4x1x16xf32> to vector<4x16xf32>
      %121 = vector.extract_strided_slice %106 {offsets = [0, 2, 0], sizes = [4, 1, 16], strides = [1, 1, 1]} : vector<4x8x16xf32> to vector<4x1x16xf32>
      %122 = vector.shape_cast %121 : vector<4x1x16xf32> to vector<4x16xf32>
      %123 = tpu.concatenate %120, %122 in 0 : vector<4x16xf32>, vector<4x16xf32> -> vector<8x16xf32>
      %cst_60 = arith.constant dense<0.000000e+00> : vector<32x16xf32>
      %124 = tpu.matmul %1, %123, %cst_60 {dimension_numbers = #tpu.dot_dimension_numbers<[1], [0], [0], [1], [0, 0, 1, 1], [], []>} : vector<32x8xf32>, vector<8x16xf32>, vector<32x16xf32> -> vector<32x16xf32>
      %125 = vector.extract_strided_slice %103 {offsets = [0, 3, 0], sizes = [4, 1, 16], strides = [1, 1, 1]} : vector<4x8x16xf32> to vector<4x1x16xf32>
      %126 = vector.shape_cast %125 : vector<4x1x16xf32> to vector<4x16xf32>
      %127 = vector.extract_strided_slice %106 {offsets = [0, 3, 0], sizes = [4, 1, 16], strides = [1, 1, 1]} : vector<4x8x16xf32> to vector<4x1x16xf32>
      %128 = vector.shape_cast %127 : vector<4x1x16xf32> to vector<4x16xf32>
      %129 = tpu.concatenate %126, %128 in 0 : vector<4x16xf32>, vector<4x16xf32> -> vector<8x16xf32>
      %cst_61 = arith.constant dense<0.000000e+00> : vector<32x16xf32>
      %130 = tpu.matmul %1, %129, %cst_61 {dimension_numbers = #tpu.dot_dimension_numbers<[1], [0], [0], [1], [0, 0, 1, 1], [], []>} : vector<32x8xf32>, vector<8x16xf32>, vector<32x16xf32> -> vector<32x16xf32>
      %131 = vector.extract_strided_slice %103 {offsets = [0, 4, 0], sizes = [4, 1, 16], strides = [1, 1, 1]} : vector<4x8x16xf32> to vector<4x1x16xf32>
      %132 = vector.shape_cast %131 : vector<4x1x16xf32> to vector<4x16xf32>
      %133 = vector.extract_strided_slice %106 {offsets = [0, 4, 0], sizes = [4, 1, 16], strides = [1, 1, 1]} : vector<4x8x16xf32> to vector<4x1x16xf32>
      %134 = vector.shape_cast %133 : vector<4x1x16xf32> to vector<4x16xf32>
      %135 = tpu.concatenate %132, %134 in 0 : vector<4x16xf32>, vector<4x16xf32> -> vector<8x16xf32>
      %cst_62 = arith.constant dense<0.000000e+00> : vector<32x16xf32>
      %136 = tpu.matmul %1, %135, %cst_62 {dimension_numbers = #tpu.dot_dimension_numbers<[1], [0], [0], [1], [0, 0, 1, 1], [], []>} : vector<32x8xf32>, vector<8x16xf32>, vector<32x16xf32> -> vector<32x16xf32>
      %137 = vector.extract_strided_slice %103 {offsets = [0, 5, 0], sizes = [4, 1, 16], strides = [1, 1, 1]} : vector<4x8x16xf32> to vector<4x1x16xf32>
      %138 = vector.shape_cast %137 : vector<4x1x16xf32> to vector<4x16xf32>
      %139 = vector.extract_strided_slice %106 {offsets = [0, 5, 0], sizes = [4, 1, 16], strides = [1, 1, 1]} : vector<4x8x16xf32> to vector<4x1x16xf32>
      %140 = vector.shape_cast %139 : vector<4x1x16xf32> to vector<4x16xf32>
      %141 = tpu.concatenate %138, %140 in 0 : vector<4x16xf32>, vector<4x16xf32> -> vector<8x16xf32>
      %cst_63 = arith.constant dense<0.000000e+00> : vector<32x16xf32>
      %142 = tpu.matmul %1, %141, %cst_63 {dimension_numbers = #tpu.dot_dimension_numbers<[1], [0], [0], [1], [0, 0, 1, 1], [], []>} : vector<32x8xf32>, vector<8x16xf32>, vector<32x16xf32> -> vector<32x16xf32>
      %143 = vector.extract_strided_slice %103 {offsets = [0, 6, 0], sizes = [4, 1, 16], strides = [1, 1, 1]} : vector<4x8x16xf32> to vector<4x1x16xf32>
      %144 = vector.shape_cast %143 : vector<4x1x16xf32> to vector<4x16xf32>
      %145 = vector.extract_strided_slice %106 {offsets = [0, 6, 0], sizes = [4, 1, 16], strides = [1, 1, 1]} : vector<4x8x16xf32> to vector<4x1x16xf32>
      %146 = vector.shape_cast %145 : vector<4x1x16xf32> to vector<4x16xf32>
      %147 = tpu.concatenate %144, %146 in 0 : vector<4x16xf32>, vector<4x16xf32> -> vector<8x16xf32>
      %cst_64 = arith.constant dense<0.000000e+00> : vector<32x16xf32>
      %148 = tpu.matmul %1, %147, %cst_64 {dimension_numbers = #tpu.dot_dimension_numbers<[1], [0], [0], [1], [0, 0, 1, 1], [], []>} : vector<32x8xf32>, vector<8x16xf32>, vector<32x16xf32> -> vector<32x16xf32>
      %149 = vector.extract_strided_slice %103 {offsets = [0, 7, 0], sizes = [4, 1, 16], strides = [1, 1, 1]} : vector<4x8x16xf32> to vector<4x1x16xf32>
      %150 = vector.shape_cast %149 : vector<4x1x16xf32> to vector<4x16xf32>
      %151 = vector.extract_strided_slice %106 {offsets = [0, 7, 0], sizes = [4, 1, 16], strides = [1, 1, 1]} : vector<4x8x16xf32> to vector<4x1x16xf32>
      %152 = vector.shape_cast %151 : vector<4x1x16xf32> to vector<4x16xf32>
      %153 = tpu.concatenate %150, %152 in 0 : vector<4x16xf32>, vector<4x16xf32> -> vector<8x16xf32>
      %cst_65 = arith.constant dense<0.000000e+00> : vector<32x16xf32>
      %154 = tpu.matmul %1, %153, %cst_65 {dimension_numbers = #tpu.dot_dimension_numbers<[1], [0], [0], [1], [0, 0, 1, 1], [], []>} : vector<32x8xf32>, vector<8x16xf32>, vector<32x16xf32> -> vector<32x16xf32>
      %155 = tpu.concatenate %112, %118, %124, %130, %136, %142, %148, %154 in 0 : vector<32x16xf32>, vector<32x16xf32>, vector<32x16xf32>, vector<32x16xf32>, vector<32x16xf32>, vector<32x16xf32>, vector<32x16xf32>, vector<32x16xf32> -> vector<256x16xf32>
      %156 = arith.index_cast %arg20 : i32 to index
      %c0_66 = arith.constant 0 : index
      %c0_67 = arith.constant 0 : index
      %157 = vector.load %arg8[%156, %c0_66, %c0_67] : memref<2x16x16xf32, #tpu.memory_space<vmem>>, vector<1x16x16xf32>
      %158 = vector.shape_cast %157 : vector<1x16x16xf32> to vector<16x16xf32>
      %cst_68 = arith.constant dense<0.000000e+00> : vector<256x16xf32>
      %159 = tpu.matmul %arg21, %158, %cst_68 {dimension_numbers = #tpu.dot_dimension_numbers<[1], [0], [0], [1], [0, 0, 1, 1], [], []>} : vector<256x16xf32>, vector<16x16xf32>, vector<256x16xf32> -> vector<256x16xf32>
      %160 = arith.index_cast %arg20 : i32 to index
      %c0_69 = arith.constant 0 : index
      %c0_70 = arith.constant 0 : index
      %161 = vector.load %arg9[%160, %c0_69, %c0_70] : memref<2x1x16xf32, #tpu.memory_space<vmem>>, vector<1x1x16xf32>
      %162 = vector.shape_cast %161 : vector<1x1x16xf32> to vector<1x16xf32>
      %163 = vector.broadcast %162 : vector<1x16xf32> to vector<256x16xf32>
      %164 = arith.addf %159, %163 : vector<256x16xf32>
      %165 = arith.addf %155, %164 : vector<256x16xf32>
      %166 = arith.mulf %165, %165 : vector<256x16xf32>
      %167 = arith.mulf %165, %166 : vector<256x16xf32>
      %cst_71 = arith.constant 4.471500e-02 : f32
      %168 = vector.broadcast %cst_71 : f32 to vector<256x16xf32>
      %169 = arith.mulf %168, %167 : vector<256x16xf32>
      %170 = arith.addf %165, %169 : vector<256x16xf32>
      %cst_72 = arith.constant 0.797884583 : f32
      %171 = vector.broadcast %cst_72 : f32 to vector<256x16xf32>
      %172 = arith.mulf %171, %170 : vector<256x16xf32>
      %173 = math.tanh %172 : vector<256x16xf32>
      %cst_73 = arith.constant 1.000000e+00 : f32
      %174 = vector.broadcast %cst_73 : f32 to vector<256x16xf32>
      %175 = arith.addf %174, %173 : vector<256x16xf32>
      %cst_74 = arith.constant 5.000000e-01 : f32
      %176 = vector.broadcast %cst_74 : f32 to vector<256x16xf32>
      %177 = arith.mulf %176, %175 : vector<256x16xf32>
      %178 = arith.mulf %165, %177 : vector<256x16xf32>
      scf.yield %178 : vector<256x16xf32>
    }
    %c2_i32_7 = arith.constant 2 : i32
    %6 = vector.extract_strided_slice %5 {offsets = [0, 0], sizes = [32, 16], strides = [1, 1]} : vector<256x16xf32> to vector<32x16xf32>
    %cst = arith.constant dense<0.000000e+00> : vector<1x16xf32>
    %7 = tpu.matmul %2, %6, %cst {dimension_numbers = #tpu.dot_dimension_numbers<[1], [0], [0], [1], [0, 0, 1, 1], [], []>} : vector<1x32xf32>, vector<32x16xf32>, vector<1x16xf32> -> vector<1x16xf32>
    %8 = vector.extract_strided_slice %5 {offsets = [32, 0], sizes = [32, 16], strides = [1, 1]} : vector<256x16xf32> to vector<32x16xf32>
    %cst_8 = arith.constant dense<0.000000e+00> : vector<1x16xf32>
    %9 = tpu.matmul %2, %8, %cst_8 {dimension_numbers = #tpu.dot_dimension_numbers<[1], [0], [0], [1], [0, 0, 1, 1], [], []>} : vector<1x32xf32>, vector<32x16xf32>, vector<1x16xf32> -> vector<1x16xf32>
    %10 = vector.extract_strided_slice %5 {offsets = [64, 0], sizes = [32, 16], strides = [1, 1]} : vector<256x16xf32> to vector<32x16xf32>
    %cst_9 = arith.constant dense<0.000000e+00> : vector<1x16xf32>
    %11 = tpu.matmul %2, %10, %cst_9 {dimension_numbers = #tpu.dot_dimension_numbers<[1], [0], [0], [1], [0, 0, 1, 1], [], []>} : vector<1x32xf32>, vector<32x16xf32>, vector<1x16xf32> -> vector<1x16xf32>
    %12 = vector.extract_strided_slice %5 {offsets = [96, 0], sizes = [32, 16], strides = [1, 1]} : vector<256x16xf32> to vector<32x16xf32>
    %cst_10 = arith.constant dense<0.000000e+00> : vector<1x16xf32>
    %13 = tpu.matmul %2, %12, %cst_10 {dimension_numbers = #tpu.dot_dimension_numbers<[1], [0], [0], [1], [0, 0, 1, 1], [], []>} : vector<1x32xf32>, vector<32x16xf32>, vector<1x16xf32> -> vector<1x16xf32>
    %14 = vector.extract_strided_slice %5 {offsets = [128, 0], sizes = [32, 16], strides = [1, 1]} : vector<256x16xf32> to vector<32x16xf32>
    %cst_11 = arith.constant dense<0.000000e+00> : vector<1x16xf32>
    %15 = tpu.matmul %2, %14, %cst_11 {dimension_numbers = #tpu.dot_dimension_numbers<[1], [0], [0], [1], [0, 0, 1, 1], [], []>} : vector<1x32xf32>, vector<32x16xf32>, vector<1x16xf32> -> vector<1x16xf32>
    %16 = vector.extract_strided_slice %5 {offsets = [160, 0], sizes = [32, 16], strides = [1, 1]} : vector<256x16xf32> to vector<32x16xf32>
    %cst_12 = arith.constant dense<0.000000e+00> : vector<1x16xf32>
    %17 = tpu.matmul %2, %16, %cst_12 {dimension_numbers = #tpu.dot_dimension_numbers<[1], [0], [0], [1], [0, 0, 1, 1], [], []>} : vector<1x32xf32>, vector<32x16xf32>, vector<1x16xf32> -> vector<1x16xf32>
    %18 = vector.extract_strided_slice %5 {offsets = [192, 0], sizes = [32, 16], strides = [1, 1]} : vector<256x16xf32> to vector<32x16xf32>
    %cst_13 = arith.constant dense<0.000000e+00> : vector<1x16xf32>
    %19 = tpu.matmul %2, %18, %cst_13 {dimension_numbers = #tpu.dot_dimension_numbers<[1], [0], [0], [1], [0, 0, 1, 1], [], []>} : vector<1x32xf32>, vector<32x16xf32>, vector<1x16xf32> -> vector<1x16xf32>
    %20 = vector.extract_strided_slice %5 {offsets = [224, 0], sizes = [32, 16], strides = [1, 1]} : vector<256x16xf32> to vector<32x16xf32>
    %cst_14 = arith.constant dense<0.000000e+00> : vector<1x16xf32>
    %21 = tpu.matmul %2, %20, %cst_14 {dimension_numbers = #tpu.dot_dimension_numbers<[1], [0], [0], [1], [0, 0, 1, 1], [], []>} : vector<1x32xf32>, vector<32x16xf32>, vector<1x16xf32> -> vector<1x16xf32>
    %22 = tpu.concatenate %7, %9, %11, %13, %15, %17, %19, %21 in 0 : vector<1x16xf32>, vector<1x16xf32>, vector<1x16xf32>, vector<1x16xf32>, vector<1x16xf32>, vector<1x16xf32>, vector<1x16xf32>, vector<1x16xf32> -> vector<8x16xf32>
    %c0_15 = arith.constant 0 : index
    %c0_16 = arith.constant 0 : index
    %23 = vector.load %arg10[%c0_15, %c0_16] : memref<16x32xf32, #tpu.memory_space<vmem>>, vector<16x32xf32>
    %cst_17 = arith.constant dense<0.000000e+00> : vector<8x32xf32>
    %24 = tpu.matmul %22, %23, %cst_17 {dimension_numbers = #tpu.dot_dimension_numbers<[1], [0], [0], [1], [0, 0, 1, 1], [], []>} : vector<8x16xf32>, vector<16x32xf32>, vector<8x32xf32> -> vector<8x32xf32>
    %c0_18 = arith.constant 0 : index
    %c0_19 = arith.constant 0 : index
    %25 = vector.load %arg11[%c0_18, %c0_19] : memref<1x32xf32, #tpu.memory_space<vmem>>, vector<1x32xf32>
    %26 = vector.broadcast %25 : vector<1x32xf32> to vector<8x32xf32>
    %27 = arith.addf %24, %26 : vector<8x32xf32>
    %c0_20 = arith.constant 0 : index
    %c0_21 = arith.constant 0 : index
    %28 = vector.load %arg12[%c0_20, %c0_21] : memref<32x64xf32, #tpu.memory_space<vmem>>, vector<32x64xf32>
    %cst_22 = arith.constant dense<0.000000e+00> : vector<8x64xf32>
    %29 = tpu.matmul %27, %28, %cst_22 {dimension_numbers = #tpu.dot_dimension_numbers<[1], [0], [0], [1], [0, 0, 1, 1], [], []>} : vector<8x32xf32>, vector<32x64xf32>, vector<8x64xf32> -> vector<8x64xf32>
    %c0_23 = arith.constant 0 : index
    %c0_24 = arith.constant 0 : index
    %30 = vector.load %arg2[%c0_23, %c0_24] : memref<8x8xf32, #tpu.memory_space<vmem>>, vector<8x8xf32>
    %c0_25 = arith.constant 0 : index
    %c0_26 = arith.constant 0 : index
    %31 = vector.load %arg13[%c0_25, %c0_26] : memref<8x64xf32, #tpu.memory_space<vmem>>, vector<8x64xf32>
    %cst_27 = arith.constant dense<0.000000e+00> : vector<8x64xf32>
    %32 = tpu.matmul %30, %31, %cst_27 {dimension_numbers = #tpu.dot_dimension_numbers<[1], [0], [0], [1], [0, 0, 1, 1], [], []>} : vector<8x8xf32>, vector<8x64xf32>, vector<8x64xf32> -> vector<8x64xf32>
    %33 = arith.addf %29, %32 : vector<8x64xf32>
    %c0_28 = arith.constant 0 : index
    %c0_29 = arith.constant 0 : index
    %34 = vector.load %arg14[%c0_28, %c0_29] : memref<1x64xf32, #tpu.memory_space<vmem>>, vector<1x64xf32>
    %35 = vector.broadcast %34 : vector<1x64xf32> to vector<8x64xf32>
    %36 = arith.addf %33, %35 : vector<8x64xf32>
    %c0_i32_30 = arith.constant 0 : i32
    %c2_i32_31 = arith.constant 2 : i32
    %37 = arith.addi %c0_i32_30, %c2_i32_31 : i32
    %c1_i32_32 = arith.constant 1 : i32
    %38 = scf.for %arg20 = %c0_i32_30 to %37 step %c1_i32_32 iter_args(%arg21 = %36) -> (vector<8x64xf32>)  : i32 {
      %c2_i32_41 = arith.constant 2 : i32
      %45 = arith.muli %arg20, %c2_i32_41 : i32
      %c0_i32_42 = arith.constant 0 : i32
      %46 = arith.addi %45, %c0_i32_42 : i32
      %47 = arith.mulf %arg21, %arg21 : vector<8x64xf32>
      %48 = arith.mulf %arg21, %47 : vector<8x64xf32>
      %cst_43 = arith.constant 4.471500e-02 : f32
      %49 = vector.broadcast %cst_43 : f32 to vector<8x64xf32>
      %50 = arith.mulf %49, %48 : vector<8x64xf32>
      %51 = arith.addf %arg21, %50 : vector<8x64xf32>
      %cst_44 = arith.constant 0.797884583 : f32
      %52 = vector.broadcast %cst_44 : f32 to vector<8x64xf32>
      %53 = arith.mulf %52, %51 : vector<8x64xf32>
      %54 = math.tanh %53 : vector<8x64xf32>
      %cst_45 = arith.constant 1.000000e+00 : f32
      %55 = vector.broadcast %cst_45 : f32 to vector<8x64xf32>
      %56 = arith.addf %55, %54 : vector<8x64xf32>
      %cst_46 = arith.constant 5.000000e-01 : f32
      %57 = vector.broadcast %cst_46 : f32 to vector<8x64xf32>
      %58 = arith.mulf %57, %56 : vector<8x64xf32>
      %59 = arith.mulf %arg21, %58 : vector<8x64xf32>
      %60 = arith.index_cast %46 : i32 to index
      %c0_47 = arith.constant 0 : index
      %c0_48 = arith.constant 0 : index
      %61 = vector.load %arg15[%60, %c0_47, %c0_48] : memref<4x64x64xf32, #tpu.memory_space<vmem>>, vector<1x64x64xf32>
      %62 = vector.shape_cast %61 : vector<1x64x64xf32> to vector<64x64xf32>
      %cst_49 = arith.constant dense<0.000000e+00> : vector<8x64xf32>
      %63 = tpu.matmul %59, %62, %cst_49 {dimension_numbers = #tpu.dot_dimension_numbers<[1], [0], [0], [1], [0, 0, 1, 1], [], []>} : vector<8x64xf32>, vector<64x64xf32>, vector<8x64xf32> -> vector<8x64xf32>
      %64 = arith.index_cast %46 : i32 to index
      %c0_50 = arith.constant 0 : index
      %c0_51 = arith.constant 0 : index
      %65 = vector.load %arg16[%64, %c0_50, %c0_51] : memref<4x1x64xf32, #tpu.memory_space<vmem>>, vector<1x1x64xf32>
      %66 = vector.shape_cast %65 : vector<1x1x64xf32> to vector<1x64xf32>
      %67 = vector.broadcast %66 : vector<1x64xf32> to vector<8x64xf32>
      %68 = arith.addf %63, %67 : vector<8x64xf32>
      %c2_i32_52 = arith.constant 2 : i32
      %69 = arith.muli %arg20, %c2_i32_52 : i32
      %c1_i32_53 = arith.constant 1 : i32
      %70 = arith.addi %69, %c1_i32_53 : i32
      %71 = arith.mulf %68, %68 : vector<8x64xf32>
      %72 = arith.mulf %68, %71 : vector<8x64xf32>
      %cst_54 = arith.constant 4.471500e-02 : f32
      %73 = vector.broadcast %cst_54 : f32 to vector<8x64xf32>
      %74 = arith.mulf %73, %72 : vector<8x64xf32>
      %75 = arith.addf %68, %74 : vector<8x64xf32>
      %cst_55 = arith.constant 0.797884583 : f32
      %76 = vector.broadcast %cst_55 : f32 to vector<8x64xf32>
      %77 = arith.mulf %76, %75 : vector<8x64xf32>
      %78 = math.tanh %77 : vector<8x64xf32>
      %cst_56 = arith.constant 1.000000e+00 : f32
      %79 = vector.broadcast %cst_56 : f32 to vector<8x64xf32>
      %80 = arith.addf %79, %78 : vector<8x64xf32>
      %cst_57 = arith.constant 5.000000e-01 : f32
      %81 = vector.broadcast %cst_57 : f32 to vector<8x64xf32>
      %82 = arith.mulf %81, %80 : vector<8x64xf32>
      %83 = arith.mulf %68, %82 : vector<8x64xf32>
      %84 = arith.index_cast %70 : i32 to index
      %c0_58 = arith.constant 0 : index
      %c0_59 = arith.constant 0 : index
      %85 = vector.load %arg15[%84, %c0_58, %c0_59] : memref<4x64x64xf32, #tpu.memory_space<vmem>>, vector<1x64x64xf32>
      %86 = vector.shape_cast %85 : vector<1x64x64xf32> to vector<64x64xf32>
      %cst_60 = arith.constant dense<0.000000e+00> : vector<8x64xf32>
      %87 = tpu.matmul %83, %86, %cst_60 {dimension_numbers = #tpu.dot_dimension_numbers<[1], [0], [0], [1], [0, 0, 1, 1], [], []>} : vector<8x64xf32>, vector<64x64xf32>, vector<8x64xf32> -> vector<8x64xf32>
      %88 = arith.index_cast %70 : i32 to index
      %c0_61 = arith.constant 0 : index
      %c0_62 = arith.constant 0 : index
      %89 = vector.load %arg16[%88, %c0_61, %c0_62] : memref<4x1x64xf32, #tpu.memory_space<vmem>>, vector<1x1x64xf32>
      %90 = vector.shape_cast %89 : vector<1x1x64xf32> to vector<1x64xf32>
      %91 = vector.broadcast %90 : vector<1x64xf32> to vector<8x64xf32>
      %92 = arith.addf %87, %91 : vector<8x64xf32>
      %93 = arith.addf %92, %arg21 : vector<8x64xf32>
      scf.yield %93 : vector<8x64xf32>
    }
    %c2_i32_33 = arith.constant 2 : i32
    %c0_34 = arith.constant 0 : index
    %c0_35 = arith.constant 0 : index
    %39 = vector.load %arg17[%c0_34, %c0_35] : memref<64x4xf32, #tpu.memory_space<vmem>>, vector<64x4xf32>
    %cst_36 = arith.constant dense<0.000000e+00> : vector<8x4xf32>
    %40 = tpu.matmul %38, %39, %cst_36 {dimension_numbers = #tpu.dot_dimension_numbers<[1], [0], [0], [1], [0, 0, 1, 1], [], []>} : vector<8x64xf32>, vector<64x4xf32>, vector<8x4xf32> -> vector<8x4xf32>
    %c0_37 = arith.constant 0 : index
    %c0_38 = arith.constant 0 : index
    %41 = vector.load %arg18[%c0_37, %c0_38] : memref<1x4xf32, #tpu.memory_space<vmem>>, vector<1x4xf32>
    %42 = vector.broadcast %41 : vector<1x4xf32> to vector<8x4xf32>
    %43 = arith.addf %40, %42 : vector<8x4xf32>
    %c0_39 = arith.constant 0 : index
    %c0_40 = arith.constant 0 : index
    %44 = vector.load %arg19[%c0_39, %c0_40] : memref<8x4xf32, #tpu.memory_space<vmem>>, vector<8x4xf32>
    tpu.vector_store %arg19[%c0_39, %c0_40], %43 {strides = array<i32>} : memref<8x4xf32, #tpu.memory_space<vmem>>, vector<8x4xf32>,
    return
  }
  func.func @transform_0(%arg0: i32) -> (i32, i32) {
    %c0_i32 = arith.constant 0 : i32
    %c0_i32_0 = arith.constant 0 : i32
    return %arg0, %c0_i32 : i32, i32
  }
  func.func @transform_1(%arg0: i32) -> (i32, i32) {
    %c0_i32 = arith.constant 0 : i32
    %c0_i32_0 = arith.constant 0 : i32
    return %arg0, %c0_i32 : i32, i32
  }
  func.func @transform_2(%arg0: i32) -> (i32, i32) {
    %c0_i32 = arith.constant 0 : i32
    %c0_i32_0 = arith.constant 0 : i32
    %c0_i32_1 = arith.constant 0 : i32
    return %c0_i32, %c0_i32_0 : i32, i32
  }
  func.func @transform_3(%arg0: i32) -> (i32, i32) {
    %c0_i32 = arith.constant 0 : i32
    %c0_i32_0 = arith.constant 0 : i32
    %c0_i32_1 = arith.constant 0 : i32
    return %c0_i32, %c0_i32_0 : i32, i32
  }
  func.func @transform_4(%arg0: i32) -> (i32, i32) {
    %c0_i32 = arith.constant 0 : i32
    %c0_i32_0 = arith.constant 0 : i32
    %c0_i32_1 = arith.constant 0 : i32
    return %c0_i32, %c0_i32_0 : i32, i32
  }
  func.func @transform_5(%arg0: i32) -> (i32, i32, i32) {
    %c0_i32 = arith.constant 0 : i32
    %c0_i32_0 = arith.constant 0 : i32
    %c0_i32_1 = arith.constant 0 : i32
    %c0_i32_2 = arith.constant 0 : i32
    return %c0_i32, %c0_i32_0, %c0_i32_1 : i32, i32, i32
  }
  func.func @transform_6(%arg0: i32) -> (i32, i32, i32) {
    %c0_i32 = arith.constant 0 : i32
    %c0_i32_0 = arith.constant 0 : i32
    %c0_i32_1 = arith.constant 0 : i32
    %c0_i32_2 = arith.constant 0 : i32
    return %c0_i32, %c0_i32_0, %c0_i32_1 : i32, i32, i32
  }
  func.func @transform_7(%arg0: i32) -> (i32, i32, i32) {
    %c0_i32 = arith.constant 0 : i32
    %c0_i32_0 = arith.constant 0 : i32
    %c0_i32_1 = arith.constant 0 : i32
    %c0_i32_2 = arith.constant 0 : i32
    return %c0_i32, %c0_i32_0, %c0_i32_1 : i32, i32, i32
  }
  func.func @transform_8(%arg0: i32) -> (i32, i32, i32) {
    %c0_i32 = arith.constant 0 : i32
    %c0_i32_0 = arith.constant 0 : i32
    %c0_i32_1 = arith.constant 0 : i32
    %c0_i32_2 = arith.constant 0 : i32
    return %c0_i32, %c0_i32_0, %c0_i32_1 : i32, i32, i32
  }
  func.func @transform_9(%arg0: i32) -> (i32, i32) {
    %c0_i32 = arith.constant 0 : i32
    %c0_i32_0 = arith.constant 0 : i32
    %c0_i32_1 = arith.constant 0 : i32
    return %c0_i32, %c0_i32_0 : i32, i32
  }
  func.func @transform_10(%arg0: i32) -> (i32, i32) {
    %c0_i32 = arith.constant 0 : i32
    %c0_i32_0 = arith.constant 0 : i32
    %c0_i32_1 = arith.constant 0 : i32
    return %c0_i32, %c0_i32_0 : i32, i32
  }
  func.func @transform_11(%arg0: i32) -> (i32, i32) {
    %c0_i32 = arith.constant 0 : i32
    %c0_i32_0 = arith.constant 0 : i32
    %c0_i32_1 = arith.constant 0 : i32
    return %c0_i32, %c0_i32_0 : i32, i32
  }
  func.func @transform_12(%arg0: i32) -> (i32, i32) {
    %c0_i32 = arith.constant 0 : i32
    %c0_i32_0 = arith.constant 0 : i32
    %c0_i32_1 = arith.constant 0 : i32
    return %c0_i32, %c0_i32_0 : i32, i32
  }
  func.func @transform_13(%arg0: i32) -> (i32, i32) {
    %c0_i32 = arith.constant 0 : i32
    %c0_i32_0 = arith.constant 0 : i32
    %c0_i32_1 = arith.constant 0 : i32
    return %c0_i32, %c0_i32_0 : i32, i32
  }
  func.func @transform_14(%arg0: i32) -> (i32, i32, i32) {
    %c0_i32 = arith.constant 0 : i32
    %c0_i32_0 = arith.constant 0 : i32
    %c0_i32_1 = arith.constant 0 : i32
    %c0_i32_2 = arith.constant 0 : i32
    return %c0_i32, %c0_i32_0, %c0_i32_1 : i32, i32, i32
  }
  func.func @transform_15(%arg0: i32) -> (i32, i32, i32) {
    %c0_i32 = arith.constant 0 : i32
    %c0_i32_0 = arith.constant 0 : i32
    %c0_i32_1 = arith.constant 0 : i32
    %c0_i32_2 = arith.constant 0 : i32
    return %c0_i32, %c0_i32_0, %c0_i32_1 : i32, i32, i32
  }
  func.func @transform_16(%arg0: i32) -> (i32, i32) {
    %c0_i32 = arith.constant 0 : i32
    %c0_i32_0 = arith.constant 0 : i32
    %c0_i32_1 = arith.constant 0 : i32
    return %c0_i32, %c0_i32_0 : i32, i32
  }
  func.func @transform_17(%arg0: i32) -> (i32, i32) {
    %c0_i32 = arith.constant 0 : i32
    %c0_i32_0 = arith.constant 0 : i32
    %c0_i32_1 = arith.constant 0 : i32
    return %c0_i32, %c0_i32_0 : i32, i32
  }
  func.func @transform_18(%arg0: i32) -> (i32, i32) {
    %c0_i32 = arith.constant 0 : i32
    %c0_i32_0 = arith.constant 0 : i32
    return %arg0, %c0_i32 : i32, i32
  }
}

</mosaic_0001>

<bundles_post_ra>
// kernel: tpu_custom_call.1
= control target key start
LH: loop header
LB: loop body
LE: loop exit
PB: predicated region body
PF: predicated region fallthrough
CT: control target
= control target key end

     0   :  { %s7866_s27 = smov 0   ;;  %s9532_s0 = inlined_call_operand.vmem [shape: f32[512,16], index: 0, kind: input, shape index: {}]   ;;  %s9533_s1 = inlined_call_operand.vmem [shape: f32[16,8], index: 1, kind: input, shape index: {}]   ;;  %s9534_s2 = inlined_call_operand.vmem [shape: f32[8,32], index: 2, kind: input, shape index: {}]   ;;  %s9535_s3 = inlined_call_operand.vmem [shape: f32[32,8], index: 3, kind: input, shape index: {}]   ;;  %s9536_s4 = inlined_call_operand.vmem [shape: f32[1,32], index: 4, kind: input, shape index: {}]   ;;  %s9537_s5 = inlined_call_operand.vmem [shape: f32[8,16,16], index: 5, kind: input, shape index: {}]   ;;  %s9538_s6 = inlined_call_operand.vmem [shape: f32[8,16,16], index: 6, kind: input, shape index: {}]   ;;  %s9539_s7 = inlined_call_operand.vmem [shape: f32[2,16,16], index: 7, kind: input, shape index: {}]   ;;  %s9540_s8 = inlined_call_operand.vmem [shape: f32[2,1,16], index: 8, kind: input, shape index: {}]   ;;  %s9541_s9 = inlined_call_operand.vmem [shape: f32[16,32], index: 9, kind: input, shape index: {}]   ;;  %s9542_s10 = inlined_call_operand.vmem [shape: f32[1,32], index: 10, kind: input, shape index: {}]   ;;  %s9543_s11 = inlined_call_operand.vmem [shape: f32[32,64], index: 11, kind: input, shape index: {}]   ;;  %s9544_s12 = inlined_call_operand.vmem [shape: f32[8,64], index: 12, kind: input, shape index: {}]   ;;  %s9545_s13 = inlined_call_operand.vmem [shape: f32[1,64], index: 13, kind: input, shape index: {}]   ;;  %s9546_s14 = inlined_call_operand.vmem [shape: f32[4,64,64], index: 14, kind: input, shape index: {}]   ;;  %s9547_s15 = inlined_call_operand.vmem [shape: f32[4,1,64], index: 15, kind: input, shape index: {}]   ;;  %s9548_s16 = inlined_call_operand.vmem [shape: f32[64,4], index: 16, kind: input, shape index: {}]   ;;  %s9549_s17 = inlined_call_operand.vmem [shape: f32[1,4], index: 17, kind: input, shape index: {}]   ;;  %s9550_s18 = inlined_call_operand.vmem [shape: f32[16,4], index: 18, kind: output, shape index: {}]  }
   0x1   :  { %9590 = sst [smem:[#allocation40_spill]] %s9532_s0 }
   0x2   :  { %9591 = sst [smem:[#allocation41_spill]] %s9533_s1 }
   0x3   :  { %9592 = sst [smem:[#allocation42_spill]] %s9534_s2 }
   0x4   :  { %9593 = sst [smem:[#allocation43_spill]] %s9535_s3 }
   0x5 LB: > { %9594 = sst [smem:[#allocation2_spill]] %s7619_s27  ;;  %s5978_s28 = sadd.s32 4294967295, %s7619_s27   ;;  %s7619_s27 = sphi %s7866_s27, %s28_s27  }
   0x6   : > { %p5982_p0 = scmp.ge.s32.totalorder %s7619_s27, 1  ;;  %p522_p1 = scmp.lt.s32.totalorder %s7619_s27, 3 }
   0x8   : > { %p523_p2 = pnand %p5982_p0, %p522_p1 }
   0xa   : > { %526 = sbr.rel (%p523_p2) target bundleno = 2287 (0x8ef), region = 92 }
  0x11   : > { %s5983_s29 = sshll.u32 %s5978_s28, 5  ;;  %p585_p3 = scmp.lt.s32.totalorder %s5978_s28, 1  ;;  %v7902_v5 = vld [vmem:[%s9536_s4] sm:$0x1] }
  0x12   : > { %s9595_s19 = sld [smem:[#allocation42_spill]]  ;;  %s9597_s3 = sld [smem:[#allocation43_spill]]  ;;  %9602 = vst [vmem:[#allocation8_spill] sm:$0xff] %v7902_v5 }
  0x13   : > { %p580_p4 = scmp.lt.s32.totalorder %s5983_s29, 63  ;;  %s9739_s28 = smov (!%p585_p3, %s5978_s28), 1 }
  0x14   : > { %s5985_s0 = sshll.u32 %s9739_s28, 3  ;;  %s9603_s21 = sld [smem:[#allocation41_spill]] }
  0x15   : > { %s9741_s29 = smov (!%p580_p4, %s5983_s29), 63  ;;  %s9604_s27 = sld [smem:[#allocation40_spill]] }
  0x18   : > { %v7877_v0 = vld [vmem:[%s9595_s19] sm:$0xff]  ;;  %v7887_v2 = vld [vmem:[%s9597_s3 + $0x8] sm:$0xff]  ;;  %v7892_v3 = vld [vmem:[%s9597_s3 + $0x10] sm:$0xff]  ;;  %s5984_s19 = sshll.u32 %s9741_s29, 3 }
  0x19   : > { %9596 = vst [vmem:[#allocation3_spill] sm:$0xff] %v7877_v0  ;;  %v7882_v1 = vld [vmem:[%s9597_s3] sm:$0xff]  ;;  %9599 = vst [vmem:[#allocation5_spill] sm:$0xff] %v7887_v2  ;;  %v7897_v4 = vld [vmem:[%s9597_s3 + $0x18] sm:$0xff]  ;;  %s8015_s3 = smov 0  }
  0x1a   : > { %9598 = vst [vmem:[#allocation4_spill] sm:$0xff] %v7882_v1  ;;  %9600 = vst [vmem:[#allocation6_spill] sm:$0xff] %v7892_v3  ;;  %s7907_s22 = scalar_lea.vmem %s9603_s21, %s5985_s0 }
  0x1b   : > { %9601 = vst [vmem:[#allocation7_spill] sm:$0xff] %v7897_v4  ;;  %s7912_s24 = scalar_lea.vmem %s9604_s27, %s5984_s19  ;;  %s7917_s27 = scalar_lea.vmem %s9550_s18, %s5985_s0 }
  0x1c   : > { %v599_v6 = vld [vmem:[%s7912_s24] sm:$0xff]   ;;  %v600_v7 = vld [vmem:[%s7912_s24 + $0x8] sm:$0xff]   ;;  %v601_v8 = vld [vmem:[%s7912_s24 + $0x10] sm:$0xff]  }
  0x1d   : > { %v602_v9 = vld [vmem:[%s7912_s24 + $0x18] sm:$0xff]   ;;  %v603_v10 = vld [vmem:[%s7912_s24 + $0x20] sm:$0xff]   ;;  %v604_v11 = vld [vmem:[%s7912_s24 + $0x28] sm:$0xff]  }
  0x1e   : > { %v605_v12 = vld [vmem:[%s7912_s24 + $0x30] sm:$0xff]   ;;  %v606_v13 = vld [vmem:[%s7912_s24 + $0x38] sm:$0xff]   ;;  %v607_v14 = vld [vmem:[%s7912_s24 + $0x40] sm:$0xff]  }
  0x1f   : > { %v608_v15 = vld [vmem:[%s7912_s24 + $0x48] sm:$0xff]   ;;  %v609_v16 = vld [vmem:[%s7912_s24 + $0x50] sm:$0xff]   ;;  %v610_v17 = vld [vmem:[%s7912_s24 + $0x58] sm:$0xff]  }
  0x20   : > { %v611_v18 = vld [vmem:[%s7912_s24 + $0x60] sm:$0xff]   ;;  %v612_v19 = vld [vmem:[%s7912_s24 + $0x68] sm:$0xff]   ;;  %v613_v20 = vld [vmem:[%s7912_s24 + $0x70] sm:$0xff]  }
  0x21   : > { %v614_v21 = vld [vmem:[%s7912_s24 + $0x78] sm:$0xff]   ;;  %v615_v22 = vld [vmem:[%s7912_s24 + $0x80] sm:$0xff]   ;;  %v616_v23 = vld [vmem:[%s7912_s24 + $0x88] sm:$0xff]  }
  0x22   : > { %v617_v24 = vld [vmem:[%s7912_s24 + $0x90] sm:$0xff]   ;;  %v618_v25 = vld [vmem:[%s7912_s24 + $0x98] sm:$0xff]   ;;  %v619_v26 = vld [vmem:[%s7912_s24 + $0xa0] sm:$0xff]  }
  0x23   : > { %v620_v27 = vld [vmem:[%s7912_s24 + $0xa8] sm:$0xff]   ;;  %v621_v28 = vld [vmem:[%s7912_s24 + $0xb0] sm:$0xff]   ;;  %v622_v29 = vld [vmem:[%s7912_s24 + $0xb8] sm:$0xff]  }
  0x24   : > { %v623_v30 = vld [vmem:[%s7912_s24 + $0xc0] sm:$0xff]   ;;  %v624_v31 = vld [vmem:[%s7912_s24 + $0xc8] sm:$0xff]   ;;  %v625_v32 = vld [vmem:[%s7912_s24 + $0xd0] sm:$0xff]  }
  0x25   : > { %v626_v33 = vld [vmem:[%s7912_s24 + $0xd8] sm:$0xff]   ;;  %v627_v34 = vld [vmem:[%s7912_s24 + $0xe0] sm:$0xff]   ;;  %v628_v35 = vld [vmem:[%s7912_s24 + $0xe8] sm:$0xff]  }
  0x26   : > { %v629_v36 = vld [vmem:[%s7912_s24 + $0xf0] sm:$0xff]   ;;  %v630_v37 = vld [vmem:[%s7912_s24 + $0xf8] sm:$0xff]  }
  0x27 LB: >> { %v9605_v4 = vld [vmem:[#allocation7_spill] sm:$0xff]  ;;  %v9606_v3 = vld [vmem:[#allocation6_spill] sm:$0xff]  ;;  %v9607_v2 = vld [vmem:[#allocation5_spill] sm:$0xff]  ;;  %9610 = vst [vmem:[#allocation9_spill] sm:$0xff] %v7623_v37  ;;  %v9552_v38 = vmov 0.0|0.0   ;;  %v6841_v39 = vpack.c.bf16 %v7743_v7, %v7747_v6  ;;  %v6847_v40 = vpack.c.bf16 %v7727_v11, %v7731_v10  ;;  %v6844_v41 = vpack.c.bf16 %v7735_v9, %v7739_v8  ;;  %s6114_s28 = sshll.u32 %s7751_s3, 6  ;;  %v7639_v33 = vphi %v626_v33, %v9699_v33   ;;  %v7635_v34 = vphi %v627_v34, %v9698_v34   ;;  %v7631_v35 = vphi %v628_v35, %v9697_v35   ;;  %v7627_v36 = vphi %v629_v36, %v9696_v36   ;;  %v7623_v37 = vphi %v630_v37, %v9694_v37   ;;  %s7751_s3 = sphi %s8015_s3, %s9727_s3   ;;  %v7747_v6 = vphi %v599_v6, %v9726_v6   ;;  %v7743_v7 = vphi %v600_v7, %v9725_v7   ;;  %v7739_v8 = vphi %v601_v8, %v9724_v8   ;;  %v7735_v9 = vphi %v602_v9, %v9723_v9   ;;  %v7731_v10 = vphi %v603_v10, %v9722_v10   ;;  %v7727_v11 = vphi %v604_v11, %v9721_v11   ;;  %v7723_v12 = vphi %v605_v12, %v9720_v12   ;;  %v7719_v13 = vphi %v606_v13, %v9719_v13   ;;  %v7715_v14 = vphi %v607_v14, %v9718_v14   ;;  %v7711_v15 = vphi %v608_v15, %v9717_v15   ;;  %v7707_v16 = vphi %v609_v16, %v9716_v16   ;;  %v7703_v17 = vphi %v610_v17, %v9715_v17   ;;  %v7699_v18 = vphi %v611_v18, %v9714_v18   ;;  %v7695_v19 = vphi %v612_v19, %v9713_v19   ;;  %v7691_v20 = vphi %v613_v20, %v9712_v20   ;;  %v7687_v21 = vphi %v614_v21, %v9711_v21   ;;  %v7683_v22 = vphi %v615_v22, %v9710_v22   ;;  %v7679_v23 = vphi %v616_v23, %v9709_v23   ;;  %v7675_v24 = vphi %v617_v24, %v9708_v24   ;;  %v7671_v25 = vphi %v618_v25, %v9707_v25   ;;  %v7667_v26 = vphi %v619_v26, %v9706_v26   ;;  %v7663_v27 = vphi %v620_v27, %v9705_v27   ;;  %v7659_v28 = vphi %v621_v28, %v9704_v28   ;;  %v7655_v29 = vphi %v622_v29, %v9703_v29   ;;  %v7651_v30 = vphi %v623_v30, %v9702_v30   ;;  %v7647_v31 = vphi %v624_v31, %v9701_v31   ;;  %v7643_v32 = vphi %v625_v32, %v9700_v32  }
  0x28   : >> { %v9608_v1 = vld [vmem:[#allocation4_spill] sm:$0xff]  ;;  %v9609_v0 = vld [vmem:[#allocation3_spill] sm:$0xff]  ;;  %9611 = vst [vmem:[#allocation10_spill] sm:$0xff] %v7627_v36  ;;  %9612 = vst [vmem:[#allocation11_spill] sm:$0xff] %v7631_v35  ;;  %6840 = vmatprep.subr.bf16.mxu0 %v9552_v38  ;;  %6846 = vmatprep.subr.bf16.mxu1 %v9552_v38  ;;  %vm689_vm0 = vcmask 261120   ;;  %v6850_v42 = vpack.c.bf16 %v7719_v13, %v7723_v12  ;;  %vm7762_vm1 = vmmov 0   ;;  %v6853_v44 = vpack.c.bf16 %v7711_v15, %v7715_v14  ;;  %s671_s30 = scalar_lea.vmem %s9537_s5, %s6114_s28  ;;  %s8217_s1 = scalar_lea.vmem %s9538_s6, %s6114_s28 }
  0x29   : >> { %9613 = vst [vmem:[#allocation12_spill] sm:$0xff] %v7635_v34  ;;  %9614 = vst [vmem:[#allocation13_spill] sm:$0xff] %v7639_v33  ;;  %6842 = vmatpush3.bf16.msra.mxu0 %v6841_v39  ;;  %6848 = vmatpush3.bf16.msra.mxu1 %v6847_v40  ;;  %v9554_v43 = vmov 0.0   ;;  %v6859_v45 = vpack.c.bf16 %v7695_v19, %v7699_v18  ;;  %v6856_v46 = vpack.c.bf16 %v7703_v17, %v7707_v16  ;;  %v672_v56 = vld [vmem:[%s671_s30] sm:$0xff]  ;;  %v673_v57 = vld [vmem:[%s671_s30 + $0x8] sm:$0xff]  ;;  %v1257_v39 = vlaneseq  ;;  %s6045_s20 = sshll.u32 %s7751_s3, 4  ;;  %s3992_s28 = scalar_lea.vmem %s9540_s8, %s7751_s3 }
  0x2a   : >> { %9615 = vst [vmem:[#allocation14_spill] sm:$0xff] %v7643_v32  ;;  %9616 = vst [vmem:[#allocation15_spill] sm:$0xff] %v7647_v31  ;;  %6843 = vmatprep.subr.bf16.mxu0 %v9552_v38  ;;  %6849 = vmatprep.subr.bf16.mxu1 %v9552_v38  ;;  %v6862_v47 = vpack.c.bf16 %v7687_v21, %v7691_v20  ;;  %v6865_v48 = vpack.c.bf16 %v7679_v23, %v7683_v22  ;;  %v674_v59 = vld [vmem:[%s671_s30 + $0x10] sm:$0xff]  ;;  %v675_v60 = vld [vmem:[%s671_s30 + $0x18] sm:$0xff]  ;;  %v7764_v62 = vmov 1966171168   ;;  %s3989_s23 = scalar_lea.vmem %s9539_s7, %s6045_s20 }
  0x2b   : >> { %9617 = vst [vmem:[#allocation16_spill] sm:$0xff] %v7651_v30  ;;  %9618 = vst [vmem:[#allocation17_spill] sm:$0xff] %v7655_v29  ;;  %6364 = vmatprep.mubr.msk.f32.mxu0 %vm7762_vm1, %v9554_v43  ;;  %6375 = vmatprep.mubr.msk.f32.mxu1 %vm7762_vm1, %v9554_v43  ;;  %v6871_v49 = vpack.c.bf16 %v7663_v27, %v7667_v26  ;;  %v6868_v50 = vpack.c.bf16 %v7671_v25, %v7675_v24  ;;  %v1255_v63 = vunpack.c.l.s4 %v7764_v62  ;;  %vm1597_vm2 = vcmask 1040384   ;;  %v686_v62 = vld [vmem:[%s8217_s1 + $0x28] sm:$0xff]  ;;  %s636_s29 = sadd.s32 1, %s7751_s3  }
  0x2c   : >> { %9619 = vst [vmem:[#allocation18_spill] sm:$0xff] %v7659_v28  ;;  %9620 = vst [vmem:[#allocation19_spill] sm:$0xff] %v7663_v27  ;;  %v6874_v51 = vpack.c.bf16 %v7655_v29, %v7659_v28  ;;  %v6877_v52 = vpack.c.bf16 %v7647_v31, %v7651_v30  ;;  %v6883_v53 = vpack.c.bf16 %v7631_v35, %v7635_v34  ;;  %vm1602_vm3 = vcmask 1041408   ;;  %p9211_p5 = scmp.ge.s32.totalorder %s636_s29, 2   ;;  %s9727_s3 = smov %s636_s29 }
  0x2d   : >> { %9621 = vst [vmem:[#allocation20_spill] sm:$0xff] %v7667_v26  ;;  %9622 = vst [vmem:[#allocation21_spill] sm:$0xff] %v7687_v21  ;;  %6845 = vmatpush3.bf16.msra.mxu0 %v6844_v41  ;;  %6851 = vmatpush3.bf16.msra.mxu1 %v6850_v42  ;;  %v6880_v54 = vpack.c.bf16 %v7639_v33, %v7643_v32  ;;  %v6886_v55 = vpack.c.bf16 %v7623_v37, %v7627_v36  ;;  %v1256_v40 = vunpack.c.0.s8 %v1255_v63  ;;  %vm1607_vm4 = vcmask 1042432  }
  0x2e   : >> { %9623 = vst [vmem:[#allocation22_spill] sm:$0xff] %v7691_v20  ;;  %9624 = vst [vmem:[#allocation23_spill] sm:$0xff] %v7695_v19  ;;  %6852 = vmatprep.subr.bf16.mxu0 %v9552_v38  ;;  %6858 = vmatprep.subr.bf16.mxu1 %v9552_v38  ;;  %v8206_v58 = vpack.c.bf16 %v673_v57, %v672_v56  ;;  %v8209_v61 = vpack.c.bf16 %v675_v60, %v674_v59  ;;  %v1258_v41 = vshrl.u32 %v1257_v39, 7  ;;  %v685_v60 = vld [vmem:[%s8217_s1 + $0x20] sm:$0xff]  ;;  %vm1612_vm5 = vcmask 1043456  }
  0x2f   : >> { %9625 = vst [vmem:[#allocation24_spill] sm:$0xff] %v7699_v18  ;;  %9626 = vst [vmem:[#allocation25_spill] sm:$0xff] %v7703_v17  ;;  %v8243_v37 = vpack.c.bf16 %v686_v62, %v685_v60  ;;  %vm1617_vm6 = vcmask 1044480   ;;  %vm1622_vm7 = vcmask 1045504   ;;  %vm1627_vm8 = vcmask 1046528  }
  0x30   : >> { %9627 = vst [vmem:[#allocation26_spill] sm:$0xff] %v7707_v16  ;;  %9628 = vst [vmem:[#allocation27_spill] sm:$0xff] %v7711_v15  ;;  %6365 = vmatmul.mubr.msk.f32.vlgmr.msra.gmra.mrb[0].mxu0 %vm689_vm0, %v9609_v0  ;;  %6376 = vmatmul.mubr.msk.f32.vlgmr.msra.gmra.mrb[0].mxu1 %vm689_vm0, %v9609_v0  ;;  %v8219_v42 = vsub.s32 %v1256_v40, %v1258_v41  ;;  %vm2004_vm9 = vcmask 130048   ;;  %vm3183_vm10 = vcmask 64512   ;;  %vm3158_vm11 = vcmask 1041409  }
  0x31   : >> { %9629 = vst [vmem:[#allocation28_spill] sm:$0xff] %v7715_v14  ;;  %9630 = vst [vmem:[#allocation29_spill] sm:$0xff] %v7719_v13  ;;  %6854 = vmatpush3.bf16.msra.mxu0 %v6853_v44  ;;  %6860 = vmatpush3.bf16.msra.mxu1 %v6859_v45  ;;  %v676_v44 = vld [vmem:[%s671_s30 + $0x20] sm:$0xff]  ;;  %v677_v45 = vld [vmem:[%s671_s30 + $0x28] sm:$0xff]  ;;  %vm3161_vm12 = vcmask 1042434   ;;  %vm3164_vm13 = vcmask 1043459  }
  0x32   : >> { %9631 = vst [vmem:[#allocation30_spill] sm:$0xff] %v7723_v12  ;;  %9632 = vst [vmem:[#allocation31_spill] sm:$0xff] %v7727_v11  ;;  %6855 = vmatprep.subr.bf16.mxu0 %v9552_v38  ;;  %6861 = vmatprep.subr.bf16.mxu1 %v9552_v38  ;;  %v8228_v59 = vpack.c.bf16 %v677_v45, %v676_v44  ;;  %vm3173_vm14 = vcmask 1045509   ;;  %vm3176_vm15 = vcmask 1046534  }
  0x33   : >> { %9633 = vst [vmem:[#allocation32_spill] sm:$0xff] %v7731_v10  ;;  %6386 = vmatprep.mubr.msk.f32.mxu0 %vm7762_vm1, %v9554_v43  ;;  %6397 = vmatprep.mubr.msk.f32.mxu1 %vm7762_vm1, %v9554_v43 }
  0x35   : >> { %6857 = vmatpush3.bf16.msra.mxu0 %v6856_v46  ;;  %6863 = vmatpush3.bf16.msra.mxu1 %v6862_v47  ;;  %v678_v46 = vld [vmem:[%s671_s30 + $0x30] sm:$0xff]  ;;  %v679_v47 = vld [vmem:[%s671_s30 + $0x38] sm:$0xff] }
  0x36   : >> { %6864 = vmatprep.subr.bf16.mxu0 %v9552_v38  ;;  %6870 = vmatprep.subr.bf16.mxu1 %v9552_v38 }
  0x38   : >> { %6387 = vmatmul.mubr.msk.f32.vlgmr.msra.gmra.mrb[2].mxu0 %vm689_vm0, %v9609_v0  ;;  %6398 = vmatmul.mubr.msk.f32.vlgmr.msra.gmra.mrb[2].mxu1 %vm689_vm0, %v9609_v0 }
  0x39   : >> { %6866 = vmatpush3.bf16.msra.mxu0 %v6865_v48  ;;  %6872 = vmatpush3.bf16.msra.mxu1 %v6871_v49  ;;  %v681_v48 = vld [vmem:[%s8217_s1] sm:$0xff]  ;;  %v682_v49 = vld [vmem:[%s8217_s1 + $0x8] sm:$0xff] }
  0x3a   : >> { %6867 = vmatprep.subr.bf16.mxu0 %v9552_v38  ;;  %6873 = vmatprep.subr.bf16.mxu1 %v9552_v38 }
  0x3b   : >> { %6408 = vmatprep.mubr.msk.f32.mxu0 %vm7762_vm1, %v9554_v43  ;;  %6419 = vmatprep.mubr.msk.f32.mxu1 %vm7762_vm1, %v9554_v43 }
  0x3d   : >> { %6869 = vmatpush3.bf16.msra.mxu0 %v6868_v50  ;;  %6875 = vmatpush3.bf16.msra.mxu1 %v6874_v51  ;;  %v8223_v51 = vsub.s32 0, %v1258_v41  ;;  %v8235_v41 = vpack.c.bf16 %v682_v49, %v681_v48 }
  0x3e   : >> { %6876 = vmatprep.subr.bf16.mxu0 %v9552_v38  ;;  %6882 = vmatprep.subr.bf16.mxu1 %v9552_v38 }
  0x40   : >> { %6409 = vmatmul.mubr.msk.f32.vlgmr.msra.gmra.mrb[4].mxu0 %vm689_vm0, %v9609_v0  ;;  %6420 = vmatmul.mubr.msk.f32.vlgmr.msra.gmra.mrb[4].mxu1 %vm689_vm0, %v9609_v0 }
  0x41   : >> { %6878 = vmatpush3.bf16.msra.mxu0 %v6877_v52  ;;  %6884 = vmatpush3.bf16.msra.mxu1 %v6883_v53  ;;  %v683_v52 = vld [vmem:[%s8217_s1 + $0x10] sm:$0xff]  ;;  %v684_v53 = vld [vmem:[%s8217_s1 + $0x18] sm:$0xff] }
  0x42   : >> { %6879 = vmatprep.subr.bf16.mxu0 %v9552_v38  ;;  %6885 = vmatprep.subr.bf16.mxu1 %v9552_v38  ;;  %v8239_v5 = vpack.c.bf16 %v684_v53, %v683_v52 }
  0x43   : >> { %6430 = vmatprep.mubr.msk.f32.mxu0 %vm7762_vm1, %v9554_v43  ;;  %6441 = vmatprep.mubr.msk.f32.mxu1 %vm7762_vm1, %v9554_v43 }
  0x45   : >> { %6881 = vmatpush3.bf16.msra.mxu0 %v6880_v54  ;;  %6887 = vmatpush3.bf16.msra.mxu1 %v6886_v55 }
  0x46   : >> { %6888 = vmatprep.subr.bf16.mxu0 %v9552_v38  ;;  %6891 = vmatprep.subr.bf16.mxu1 %v9552_v38 }
  0x48   : >> { %6431 = vmatmul.mubr.msk.f32.vlgmr.msra.gmra.mrb[6].mxu0 %vm689_vm0, %v9609_v0  ;;  %6442 = vmatmul.mubr.msk.f32.vlgmr.msra.gmra.mrb[6].mxu1 %vm689_vm0, %v9609_v0 }
  0x49   : >> { %6448 = vmatprep.mubr.msk.f32.mxu0 %vm7762_vm1, %v9554_v43  ;;  %6455 = vmatprep.mubr.msk.f32.mxu1 %vm7762_vm1, %v9554_v43 }
  0x4a   : >> { %6890 = vmatpush3.bf16.msra.mxu0 %v8206_v58  ;;  %6893 = vmatpush3.bf16.msra.mxu1 %v8209_v61 }
  0x4b   : >> { %6894 = vmatprep.subr.bf16.mxu0 %v9552_v38  ;;  %6897 = vmatprep.subr.bf16.mxu1 %v9552_v38  ;;  %v8233_v38 = vpack.c.bf16 %v679_v47, %v678_v46 }
 0x103   : >> { %v759_v50 = vpop.f32.mrb[0].mxu0  ;;  %v829_v56 = vpop.f32.mrb[0].mxu1 }
 0x104   : >> { %v1260_v54 = vrot.slane %v759_v50, %v8219_v42  ;;  %v1632_v55 = vcombine.high %v759_v50, %v759_v50  ;;  %v6366_v57 = vpop.f32.mrb[1].mxu0  ;;  %v1289_v63 = vrot.slane %v829_v56, %v8219_v42  ;;  %v1661_v39 = vcombine.high %v829_v56, %v829_v56  ;;  %v6377_v40 = vpop.f32.mrb[1].mxu1 }
 0x106   : >> { %v1261_v43 = vcombine.high %v1260_v54, %v1260_v54  ;;  %v1268_v0 = vrot.slane %v1260_v54, %v8219_v42  ;;  %v1639_v50 = vrot.slane %v1632_v55, %v8219_v42  ;;  %v1290_v57 = vcombine.high %v1289_v63, %v1289_v63 }
 0x107   : >> { %v1297_v44 = vrot.slane %v1289_v63, %v8219_v42  ;;  %v1668_v45 = vrot.slane %v1661_v39, %v8219_v42 }
 0x108   : >> { %v1275_v56 = vrot.slane %v1261_v43, %v8219_v42  ;;  %v1276_v46 = vcombine.high %v1268_v0, %v1268_v0  ;;  %v1640_v47 = vcombine.high %v1639_v50, %v1639_v50  ;;  %v1647_v48 = vrot.slane %v1639_v50, %v8219_v42 }
 0x109   : >> { %v1304_v49 = vrot.slane %v1290_v57, %v8219_v42  ;;  %v1305_v54 = vcombine.high %v1297_v44, %v1297_v44  ;;  %v1460_v52 = vrot.slane %v1297_v44, %v8223_v51  ;;  %v1669_v53 = vcombine.high %v1668_v45, %v1668_v45 }
 0x10a   : >> { %v1277_v55 = vcombine.high %v1275_v56, %v1275_v56  ;;  %v1654_v63 = vrot.slane %v1640_v47, %v8219_v42  ;;  %v1655_v40 = vcombine.high %v1647_v48, %v1647_v48  ;;  %v1676_v60 = vrot.slane %v1668_v45, %v8219_v42 }
 0x10b   : >> { %v1306_v62 = vcombine.high %v1304_v49, %v1304_v49  ;;  %v1464_v43 = vrot.slane %v1304_v49, %v8223_v51  ;;  %v1468_v39 = vrot.slane %v1305_v54, %v8223_v51  ;;  %v1598_v50 = vsel %vm1597_vm2, %v1268_v0, %v1460_v52  ;;  %v899_v21 = vpop.f32.mrb[2].mxu0  ;;  %v969_v19 = vpop.f32.mrb[2].mxu1 }
 0x10c   : >> { %v1656_v36 = vcombine.high %v1654_v63, %v1654_v63  ;;  %v1683_v57 = vrot.slane %v1669_v53, %v8219_v42  ;;  %v1684_v20 = vcombine.high %v1676_v60, %v1676_v60  ;;  %v1839_v44 = vrot.slane %v1676_v60, %v8223_v51  ;;  %v6388_v35 = vpop.f32.mrb[3].mxu0  ;;  %v6399_v34 = vpop.f32.mrb[3].mxu1 }
 0x10d   : >> { %v1472_v47 = vrot.slane %v1306_v62, %v8223_v51  ;;  %v1599_v45 = vsel %vm1597_vm2, %v1275_v56, %v1464_v43  ;;  %v1600_v49 = vsel %vm1597_vm2, %v1276_v46, %v1468_v39  ;;  %v1314_v54 = vrot.slane %v899_v21, %v8219_v42 }
 0x10e   : >> { %v1685_v0 = vcombine.high %v1683_v57, %v1683_v57  ;;  %v1843_v52 = vrot.slane %v1683_v57, %v8223_v51  ;;  %v1847_v53 = vrot.slane %v1684_v20, %v8223_v51  ;;  %v1976_v18 = vsel %vm1597_vm2, %v1647_v48, %v1839_v44 }
 0x10f   : >> { %v1601_v35 = vsel %vm1597_vm2, %v1277_v55, %v1472_v47  ;;  %v1315_v60 = vcombine.high %v1314_v54, %v1314_v54  ;;  %v1322_v33 = vrot.slane %v1314_v54, %v8219_v42  ;;  %v1686_v62 = vcombine.high %v899_v21, %v899_v21 }
 0x110   : >> { %v1851_v56 = vrot.slane %v1685_v0, %v8223_v51  ;;  %v1977_v46 = vsel %vm1597_vm2, %v1654_v63, %v1843_v52  ;;  %v1978_v43 = vsel %vm1597_vm2, %v1655_v40, %v1847_v53  ;;  %v1339_v34 = vrot.slane %v969_v19, %v8219_v42 }
 0x111   : >> { %v1329_v39 = vrot.slane %v1315_v60, %v8219_v42  ;;  %v1330_v57 = vcombine.high %v1322_v33, %v1322_v33  ;;  %v1480_v20 = vrot.slane %v1322_v33, %v8223_v51  ;;  %v1693_v48 = vrot.slane %v1686_v62, %v8219_v42 }
 0x112   : >> { %v1979_v55 = vsel %vm1597_vm2, %v1656_v36, %v1851_v56  ;;  %v1340_v44 = vcombine.high %v1339_v34, %v1339_v34  ;;  %v1347_v21 = vrot.slane %v1339_v34, %v8219_v42  ;;  %v1711_v47 = vcombine.high %v969_v19, %v969_v19 }
 0x113   : >> { %v1331_v54 = vcombine.high %v1329_v39, %v1329_v39  ;;  %v1484_v63 = vrot.slane %v1329_v39, %v8223_v51  ;;  %v1488_v40 = vrot.slane %v1330_v57, %v8223_v51  ;;  %v1603_v0 = vsel %vm1602_vm3, %v1598_v50, %v1480_v20  ;;  %v1039_v52 = vpop.f32.mrb[4].mxu0  ;;  %v8279_v36 = vpop.f32.mrb[4].mxu1 }
 0x114   : >> { %v1694_v53 = vcombine.high %v1693_v48, %v1693_v48  ;;  %v1701_v60 = vrot.slane %v1693_v48, %v8219_v42  ;;  %v1354_v33 = vrot.slane %v1340_v44, %v8219_v42  ;;  %v1355_v62 = vcombine.high %v1347_v21, %v1347_v21  ;;  %v6410_v17 = vpop.f32.mrb[5].mxu0  ;;  %v6421_v50 = vpop.f32.mrb[5].mxu1 }
 0x115   : >> { %v1492_v56 = vrot.slane %v1331_v54, %v8223_v51  ;;  %v1604_v19 = vsel %vm1602_vm3, %v1599_v45, %v1484_v63  ;;  %v1605_v34 = vsel %vm1602_vm3, %v1600_v49, %v1488_v40  ;;  %v1500_v39 = vrot.slane %v1347_v21, %v8223_v51 }
 0x116   : >> { %v1708_v57 = vrot.slane %v1694_v53, %v8219_v42  ;;  %v1709_v20 = vcombine.high %v1701_v60, %v1701_v60  ;;  %v1859_v48 = vrot.slane %v1701_v60, %v8223_v51  ;;  %v1356_v44 = vcombine.high %v1354_v33, %v1354_v33 }
 0x117   : >> { %v1606_v17 = vsel %vm1602_vm3, %v1601_v35, %v1492_v56  ;;  %v1504_v32 = vrot.slane %v1354_v33, %v8223_v51  ;;  %v1508_v54 = vrot.slane %v1355_v62, %v8223_v51  ;;  %v1608_v45 = vsel %vm1607_vm4, %v1603_v0, %v1500_v39 }
 0x118   : >> { %v1710_v63 = vcombine.high %v1708_v57, %v1708_v57  ;;  %v1863_v49 = vrot.slane %v1708_v57, %v8223_v51  ;;  %v1867_v21 = vrot.slane %v1709_v20, %v8223_v51  ;;  %v1980_v40 = vsel %vm1602_vm3, %v1976_v18, %v1859_v48 }
 0x119   : >> { %v1512_v53 = vrot.slane %v1356_v44, %v8223_v51  ;;  %v1609_v60 = vsel %vm1607_vm4, %v1604_v19, %v1504_v32  ;;  %v1610_v50 = vsel %vm1607_vm4, %v1605_v34, %v1508_v54  ;;  %v1718_v35 = vrot.slane %v1711_v47, %v8219_v42 }
 0x11a   : >> { %v1871_v33 = vrot.slane %v1710_v63, %v8223_v51  ;;  %v1981_v62 = vsel %vm1602_vm3, %v1977_v46, %v1863_v49  ;;  %v1982_v0 = vsel %vm1602_vm3, %v1978_v43, %v1867_v21  ;;  %v1364_v56 = vrot.slane %v1039_v52, %v8219_v42  ;;  %v687_v49 = vld [vmem:[%s8217_s1 + $0x30] sm:$0xff] }
 0x11b   : >> { %v8303_v39 = vsel %vm1607_vm4, %v1606_v17, %v1512_v53  ;;  %v1719_v18 = vcombine.high %v1718_v35, %v1718_v35  ;;  %v1726_v32 = vrot.slane %v1718_v35, %v8219_v42  ;;  %v1736_v19 = vcombine.high %v1039_v52, %v1039_v52  ;;  %v1179_v34 = vpop.f32.mrb[6].mxu0  ;;  %v8312_v20 = vpop.f32.mrb[6].mxu1 }
 0x11c   : >> { %v8307_v47 = vsel %vm1602_vm3, %v1979_v55, %v1871_v33  ;;  %v1365_v57 = vcombine.high %v1364_v56, %v1364_v56  ;;  %v1372_v46 = vrot.slane %v1364_v56, %v8219_v42  ;;  %v1389_v43 = vrot.slane %v8279_v36, %v8219_v42  ;;  %v6432_v48 = vpop.f32.mrb[7].mxu0  ;;  %v6443_v63 = vpop.f32.mrb[7].mxu1  ;;  %v688_v55 = vld [vmem:[%s8217_s1 + $0x38] sm:$0xff] }
 0x11d   : >> { %v1733_v44 = vrot.slane %v1719_v18, %v8219_v42  ;;  %v1734_v17 = vcombine.high %v1726_v32, %v1726_v32  ;;  %v1879_v54 = vrot.slane %v1726_v32, %v8223_v51  ;;  %v1743_v52 = vrot.slane %v1736_v19, %v8219_v42 }
 0x11e   : >> { %v1379_v21 = vrot.slane %v1365_v57, %v8219_v42  ;;  %v1380_v53 = vcombine.high %v1372_v46, %v1372_v46  ;;  %v1520_v35 = vrot.slane %v1372_v46, %v8223_v51  ;;  %v1390_v33 = vcombine.high %v1389_v43, %v1389_v43 }
 0x11f   : >> { %v1735_v56 = vcombine.high %v1733_v44, %v1733_v44  ;;  %v1883_v48 = vrot.slane %v1733_v44, %v8223_v51  ;;  %v1887_v18 = vrot.slane %v1734_v17, %v8223_v51  ;;  %v1984_v16 = vsel %vm1607_vm4, %v1980_v40, %v1879_v54 }
 0x120   : >> { %v1524_v32 = vrot.slane %v1379_v21, %v8223_v51  ;;  %v1528_v19 = vrot.slane %v1380_v53, %v8223_v51  ;;  %v1613_v63 = vsel %vm1612_vm5, %v1608_v45, %v1520_v35  ;;  %v8327_v31 = vpack.c.bf16 %v688_v55, %v687_v49 }
 0x121   : >> { %v8330_v57 = vsel %vm1607_vm4, %v1981_v62, %v1883_v48  ;;  %v8333_v46 = vsel %vm1607_vm4, %v1982_v0, %v1887_v18  ;;  %v1381_v15 = vcombine.high %v1379_v21, %v1379_v21  ;;  %v1744_v44 = vcombine.high %v1743_v52, %v1743_v52 }
 0x122   : >> { %v8336_v17 = vrot.slane %v1735_v56, %v8223_v51  ;;  %v1614_v40 = vsel %vm1612_vm5, %v1609_v60, %v1524_v32  ;;  %v8340_v54 = vsel %vm1612_vm5, %v1610_v50, %v1528_v19  ;;  %v1751_v45 = vrot.slane %v1743_v52, %v8219_v42 }
 0x123   : >> { %v8344_v49 = vrot.slane %v1744_v44, %v8219_v42  ;;  %v1397_v62 = vrot.slane %v1389_v43, %v8219_v42  ;;  %v1404_v0 = vrot.slane %v1390_v33, %v8219_v42  ;;  %v1761_v55 = vcombine.high %v8279_v36, %v8279_v36 }
 0x124   : >> { %v1759_v21 = vcombine.high %v1751_v45, %v1751_v45  ;;  %v1899_v53 = vrot.slane %v1751_v45, %v8223_v51  ;;  %v1414_v60 = vrot.slane %v1179_v34, %v8219_v42  ;;  %v1786_v35 = vcombine.high %v1179_v34, %v1179_v34 }
 0x125   : >> { %v1532_v50 = vrot.slane %v1381_v15, %v8223_v51  ;;  %v1760_v52 = vcombine.high %v8344_v49, %v8344_v49  ;;  %v1405_v56 = vcombine.high %v1397_v62, %v1397_v62  ;;  %v1406_v48 = vcombine.high %v1404_v0, %v1404_v0 }
 0x126   : >> { %v8358_v33 = vrot.slane %v1759_v21, %v8223_v51  ;;  %v8361_v36 = vsel %vm1612_vm5, %v1984_v16, %v1899_v53  ;;  %v1540_v18 = vrot.slane %v1397_v62, %v8223_v51  ;;  %v1544_v15 = vrot.slane %v1404_v0, %v8223_v51 }
 0x127   : >> { %v8365_v34 = vrot.slane %v1760_v52, %v8223_v51  ;;  %v1548_v32 = vrot.slane %v1405_v56, %v8223_v51  ;;  %v1768_v19 = vrot.slane %v1761_v55, %v8219_v42  ;;  %v8371_v44 = vrot.slane %v1406_v48, %v8223_v51 }
 0x128   : >> { %v1415_v45 = vcombine.high %v1414_v60, %v1414_v60  ;;  %v1422_v21 = vrot.slane %v1414_v60, %v8219_v42  ;;  %v1793_v16 = vrot.slane %v1786_v35, %v8219_v42  ;;  %v1439_v0 = vrot.slane %v8312_v20, %v8219_v42 }
 0x129   : >> { %v1769_v53 = vcombine.high %v1768_v19, %v1768_v19  ;;  %v8376_v62 = vrot.slane %v1768_v19, %v8219_v42  ;;  %v1618_v52 = vsel %vm1617_vm6, %v1613_v63, %v1540_v18  ;;  %v1811_v60 = vcombine.high %v8312_v20, %v8312_v20 }
 0x12a   : >> { %v1429_v55 = vrot.slane %v1415_v45, %v8219_v42  ;;  %v1430_v56 = vcombine.high %v1422_v21, %v1422_v21  ;;  %v1794_v48 = vcombine.high %v1793_v16, %v1793_v16  ;;  %v1560_v19 = vrot.slane %v1422_v21, %v8223_v51 }
 0x12b   : >> { %v1783_v35 = vrot.slane %v1769_v53, %v8219_v42  ;;  %v1784_v43 = vcombine.high %v8376_v62, %v8376_v62  ;;  %v1801_v30 = vrot.slane %v1793_v16, %v8219_v42  ;;  %v1919_v63 = vrot.slane %v8376_v62, %v8223_v51 }
 0x12c   : >> { %v1431_v18 = vcombine.high %v1429_v55, %v1429_v55  ;;  %v1564_v45 = vrot.slane %v1429_v55, %v8223_v51  ;;  %v1808_v14 = vrot.slane %v1794_v48, %v8219_v42  ;;  %v1568_v53 = vrot.slane %v1430_v56, %v8223_v51 }
 0x12d   : >> { %v1785_v29 = vcombine.high %v1783_v35, %v1783_v35  ;;  %v1923_v20 = vrot.slane %v1783_v35, %v8223_v51  ;;  %v1809_v13 = vcombine.high %v1801_v30, %v1801_v30  ;;  %v1927_v28 = vrot.slane %v1784_v43, %v8223_v51 }
 0x12e   : >> { %v1572_v21 = vrot.slane %v1431_v18, %v8223_v51  ;;  %v1810_v12 = vcombine.high %v1808_v14, %v1808_v14  ;;  %v1939_v16 = vrot.slane %v1801_v30, %v8223_v51  ;;  %v1943_v55 = vrot.slane %v1808_v14, %v8223_v51 }
 0x12f   : >> { %v8399_v62 = vrot.slane %v1785_v29, %v8223_v51  ;;  %v1440_v27 = vcombine.high %v1439_v0, %v1439_v0  ;;  %v1447_v48 = vrot.slane %v1439_v0, %v8219_v42  ;;  %v1947_v35 = vrot.slane %v1809_v13, %v8223_v51 }
 0x130   : >> { %v1818_v56 = vrot.slane %v1811_v60, %v8219_v42  ;;  %v1623_v11 = vsel %vm1622_vm7, %v1618_v52, %v1560_v19  ;;  %v1619_v43 = vsel %vm1617_vm6, %v1614_v40, %v1544_v15  ;;  %v1620_v0 = vsel %vm1617_vm6, %v8340_v54, %v1548_v32 }
 0x131   : >> { %v1454_v18 = vrot.slane %v1440_v27, %v8219_v42  ;;  %v1455_v26 = vcombine.high %v1447_v48, %v1447_v48  ;;  %v1580_v30 = vrot.slane %v1447_v48, %v8223_v51  ;;  %v1624_v29 = vsel %vm1622_vm7, %v1619_v43, %v1564_v45 }
 0x132   : >> { %v1819_v10 = vcombine.high %v1818_v56, %v1818_v56  ;;  %v1826_v14 = vrot.slane %v1818_v56, %v8219_v42  ;;  %v1616_v13 = vsel %vm1612_vm5, %v8303_v39, %v1532_v50  ;;  %v1625_v54 = vsel %vm1622_vm7, %v1620_v0, %v1568_v53 }
 0x133   : >> { %v1456_v60 = vcombine.high %v1454_v18, %v1454_v18  ;;  %v1584_v52 = vrot.slane %v1454_v18, %v8223_v51  ;;  %v1588_v40 = vrot.slane %v1455_v26, %v8223_v51  ;;  %v8418_v27 = vsel %vm1627_vm8, %v1623_v11, %v1580_v30 }
 0x134   : >> { %v1833_v15 = vrot.slane %v1819_v10, %v8219_v42  ;;  %v1834_v19 = vcombine.high %v1826_v14, %v1826_v14  ;;  %v1959_v45 = vrot.slane %v1826_v14, %v8223_v51  ;;  %6449 = vmatmul.mubr.msk.f32.vlgmr.msra.gmra.mrb[8].mxu0 %vm2004_vm9, %v8418_v27  ;;  %v9634_v26 = vmov 0.0  }
 0x135   : >> { %v1592_v39 = vrot.slane %v1456_v60, %v8223_v51  ;;  %6896 = vmatpush3.bf16.msra.mxu0 %v8228_v59  ;;  %v8428_v50 = vsel %vm1627_vm8, %v1624_v29, %v1584_v52  ;;  %6462 = vmatprep.mubr.msk.f32.mxu0 %vm7762_vm1, %v9634_v26  ;;  %v8433_v10 = vsel %vm1627_vm8, %v1625_v54, %v1588_v40  ;;  %v9635_v53 = vmov 0.0|0.0  }
 0x136   : >> { %v1835_v11 = vcombine.high %v1833_v15, %v1833_v15  ;;  %v1963_v42 = vrot.slane %v1833_v15, %v8223_v51  ;;  %v1967_v32 = vrot.slane %v1834_v19, %v8223_v51  ;;  %6456 = vmatmul.mubr.msk.f32.vlgmr.msra.gmra.mrb[8].mxu1 %vm2004_vm9, %v8428_v50  ;;  %6900 = vmatprep.subr.bf16.mxu0 %v9635_v53 }
 0x137   : >> { %6899 = vmatpush3.bf16.msra.mxu1 %v8233_v38  ;;  %6469 = vmatprep.mubr.msk.f32.mxu1 %vm7762_vm1, %v9634_v26  ;;  %v1621_v48 = vsel %vm1617_vm6, %v1616_v13, %v8371_v44  ;;  %v1992_v56 = vsel %vm1617_vm6, %v8361_v36, %v1919_v63  ;;  %v9636_v43 = vrot.slane %v8344_v49, %v8223_v51 }
 0x138   : >> { %6463 = vmatmul.mubr.msk.f32.vlgmr.msra.gmra.mrb[10].mxu0 %vm2004_vm9, %v8433_v10  ;;  %v1626_v30 = vsel %vm1622_vm7, %v1621_v48, %v1572_v21  ;;  %6903 = vmatprep.subr.bf16.mxu1 %v9635_v53  ;;  %v1996_v29 = vsel %vm1622_vm7, %v1992_v56, %v1939_v16  ;;  %v1951_v63 = vrot.slane %v1810_v12, %v8223_v51 }
 0x139   : >> { %v1989_v18 = vsel %vm1612_vm5, %v8330_v57, %v9636_v43  ;;  %6902 = vmatpush3.bf16.msra.mxu0 %v8235_v41  ;;  %v1631_v36 = vsel %vm1627_vm8, %v1626_v30, %v1592_v39  ;;  %6476 = vmatprep.mubr.msk.f32.mxu0 %vm7762_vm1, %v9634_v26  ;;  %v2000_v57 = vsel %vm1627_vm8, %v1996_v29, %v1959_v45 }
 0x13a   : >> { %v1993_v44 = vsel %vm1617_vm6, %v1989_v18, %v1923_v20  ;;  %6470 = vmatmul.mubr.msk.f32.vlgmr.msra.gmra.mrb[10].mxu1 %vm2004_vm9, %v1631_v36  ;;  %6906 = vmatprep.subr.bf16.mxu0 %v9635_v53  ;;  %v1990_v20 = vsel %vm1612_vm5, %v8333_v46, %v8358_v33  ;;  %v1987_v12 = vsel %vm1607_vm4, %v8307_v47, %v8336_v17 }
 0x13b   : >> { %v1997_v49 = vsel %vm1622_vm7, %v1993_v44, %v1943_v55  ;;  %6905 = vmatpush3.bf16.msra.mxu1 %v8239_v5  ;;  %6483 = vmatprep.mubr.msk.f32.mxu1 %vm7762_vm1, %v9634_v26  ;;  %v1994_v16 = vsel %vm1617_vm6, %v1990_v20, %v1927_v28  ;;  %v1971_v55 = vrot.slane %v1835_v11, %v8223_v51 }
 0x13c   : >> { %v2001_v21 = vsel %vm1627_vm8, %v1997_v49, %v1963_v42  ;;  %6477 = vmatmul.mubr.msk.f32.vlgmr.msra.gmra.mrb[12].mxu0 %vm2004_vm9, %v2000_v57  ;;  %6909 = vmatprep.subr.bf16.mxu1 %v9635_v53  ;;  %v1998_v14 = vsel %vm1622_vm7, %v1994_v16, %v1947_v35  ;;  %v1991_v46 = vsel %vm1612_vm5, %v1987_v12, %v8365_v34 }
 0x13d   : >> { %6908 = vmatpush3.bf16.msra.mxu0 %v8243_v37  ;;  %6490 = vmatprep.mubr.msk.f32.mxu0 %vm7762_vm1, %v9634_v26  ;;  %v2002_v28 = vsel %vm1627_vm8, %v1998_v14, %v1967_v32  ;;  %v1995_v51 = vsel %vm1617_vm6, %v1991_v46, %v8399_v62 }
 0x13e   : >> { %6484 = vmatmul.mubr.msk.f32.vlgmr.msra.gmra.mrb[12].mxu1 %vm2004_vm9, %v2001_v21  ;;  %6912 = vmatprep.subr.bf16.mxu0 %v9635_v53  ;;  %v1999_v47 = vsel %vm1622_vm7, %v1995_v51, %v1951_v63 }
 0x13f   : >> { %6911 = vmatpush3.bf16.msra.mxu1 %v8327_v31  ;;  %6497 = vmatprep.mubr.msk.f32.mxu1 %vm7762_vm1, %v9634_v26  ;;  %v2003_v17 = vsel %vm1627_vm8, %v1999_v47, %v1971_v55 }
 0x140   : >> { %6491 = vmatmul.mubr.msk.f32.vlgmr.msra.gmra.mrb[14].mxu0 %vm2004_vm9, %v2002_v28  ;;  %6915 = vmatprep.subr.bf16.mxu1 %v9635_v53 }
 0x141   : >> { %6914 = vmatpush3.bf16.msra.mxu0 %v8206_v58  ;;  %6504 = vmatprep.mubr.msk.f32.mxu0 %vm7762_vm1, %v9634_v26 }
 0x142   : >> { %6498 = vmatmul.mubr.msk.f32.vlgmr.msra.gmra.mrb[14].mxu1 %vm2004_vm9, %v2003_v17  ;;  %6918 = vmatprep.subr.bf16.mxu0 %v9635_v53 }
 0x143   : >> { %6917 = vmatpush3.bf16.msra.mxu1 %v8209_v61  ;;  %6511 = vmatprep.mubr.msk.f32.mxu1 %vm7762_vm1, %v9634_v26 }
 0x144   : >> { %6505 = vmatmul.mubr.msk.f32.vlgmr.msra.gmra.mrb[16].mxu0 %vm2004_vm9, %v2000_v57  ;;  %6921 = vmatprep.subr.bf16.mxu1 %v9635_v53 }
 0x145   : >> { %6920 = vmatpush3.bf16.msra.mxu0 %v8228_v59  ;;  %6518 = vmatprep.mubr.msk.f32.mxu0 %vm7762_vm1, %v9634_v26 }
 0x146   : >> { %6512 = vmatmul.mubr.msk.f32.vlgmr.msra.gmra.mrb[16].mxu1 %vm2004_vm9, %v2001_v21  ;;  %6924 = vmatprep.subr.bf16.mxu0 %v9635_v53 }
 0x147   : >> { %6923 = vmatpush3.bf16.msra.mxu1 %v8233_v38  ;;  %6525 = vmatprep.mubr.msk.f32.mxu1 %vm7762_vm1, %v9634_v26 }
 0x148   : >> { %6519 = vmatmul.mubr.msk.f32.vlgmr.msra.gmra.mrb[18].mxu0 %vm2004_vm9, %v2002_v28  ;;  %6927 = vmatprep.subr.bf16.mxu1 %v9635_v53 }
 0x149   : >> { %6926 = vmatpush3.bf16.msra.mxu0 %v8235_v41  ;;  %6532 = vmatprep.mubr.msk.f32.mxu0 %vm7762_vm1, %v9634_v26 }
 0x14a   : >> { %6526 = vmatmul.mubr.msk.f32.vlgmr.msra.gmra.mrb[18].mxu1 %vm2004_vm9, %v2003_v17  ;;  %6930 = vmatprep.subr.bf16.mxu0 %v9635_v53 }
 0x14b   : >> { %6929 = vmatpush3.bf16.msra.mxu1 %v8239_v5  ;;  %6539 = vmatprep.mubr.msk.f32.mxu1 %vm7762_vm1, %v9634_v26 }
 0x14c   : >> { %6533 = vmatmul.mubr.msk.f32.vlgmr.msra.gmra.mrb[16].mxu0 %vm2004_vm9, %v8418_v27  ;;  %6933 = vmatprep.subr.bf16.mxu1 %v9635_v53 }
 0x14d   : >> { %6932 = vmatpush3.bf16.msra.mxu0 %v8243_v37  ;;  %6546 = vmatprep.mubr.msk.f32.mxu0 %vm7762_vm1, %v9634_v26 }
 0x14e   : >> { %6540 = vmatmul.mubr.msk.f32.vlgmr.msra.gmra.mrb[16].mxu1 %vm2004_vm9, %v8428_v50 }
 0x14f   : >> { %6935 = vmatpush3.bf16.msra.mxu1 %v8327_v31  ;;  %6553 = vmatprep.mubr.msk.f32.mxu1 %vm7762_vm1, %v9634_v26  ;;  %vm3179_vm1 = vcmask 1047559  }
 0x150   : >> { %6547 = vmatmul.mubr.msk.f32.vlgmr.msra.gmra.mrb[18].mxu0 %vm2004_vm9, %v8433_v10 }
 0x151   : >> { %6558 = vmatprep.mubr.msk.f32.mxu0 %vm3183_vm10, %v9608_v1 }
 0x152   : >> { %6554 = vmatmul.mubr.msk.f32.vlgmr.msra.gmra.mrb[18].mxu1 %vm2004_vm9, %v1631_v36 }
 0x153   : >> { %6566 = vmatprep.mubr.msk.f32.mxu1 %vm3183_vm10, %v9608_v1 }
 0x207   : >> { %v2074_v5 = vpop.f32.mrb[8].mxu0 }
 0x208   : >> { %v6450_v37 = vpop.f32.mrb[9].mxu0 }
 0x209   : >> { %v2147_v38 = vpop.f32.mrb[8].mxu1 }
 0x20a   : >> { %v6457_v58 = vpop.f32.mrb[9].mxu1 }
 0x20b   : >> { %v2220_v31 = vpop.f32.mrb[10].mxu0 }
 0x20c   : >> { %v6464_v61 = vpop.f32.mrb[11].mxu0 }
 0x20d   : >> { %v2293_v59 = vpop.f32.mrb[10].mxu1 }
 0x20e   : >> { %v6471_v41 = vpop.f32.mrb[11].mxu1 }
 0x20f   : >> { %v2366_v33 = vpop.f32.mrb[12].mxu0 }
 0x210   : >> { %v8545_v34 = vsub.f32 %v2074_v5, %v2366_v33  ;;  %v6478_v62 = vpop.f32.mrb[13].mxu0 }
 0x211   : >> { %v2439_v35 = vpop.f32.mrb[12].mxu1 }
 0x212   : >> { %v2590_v0 = vsub.f32 %v2147_v38, %v2439_v35  ;;  %v6485_v13 = vpop.f32.mrb[13].mxu1  ;;  %v3281_v60 = vrot.slane %v8545_v34, 1  ;;  %v3382_v52 = vrot.slane %v8545_v34, 2  ;;  %v3483_v40 = vrot.slane %v8545_v34, 3 }
 0x213   : >> { %v2512_v27 = vpop.f32.mrb[14].mxu0  ;;  %v3584_v15 = vrot.slane %v8545_v34, 4  ;;  %v3685_v19 = vrot.slane %v8545_v34, 5  ;;  %v3786_v45 = vrot.slane %v8545_v34, 6  ;;  %v3887_v54 = vrot.slane %v8545_v34, 7 }
 0x214   : >> { %v2591_v39 = vsub.f32 %v2220_v31, %v2512_v27  ;;  %v6492_v50 = vpop.f32.mrb[15].mxu0  ;;  %v3157_v26 = vrot.slane %v2590_v0, 7  ;;  %v3282_v10 = vsel %vm3158_vm11, %v2590_v0, %v3281_v60  ;;  %v3383_v11 = vrot.slane %v2590_v0, 1 }
 0x215   : >> { %v2585_v42 = vpop.f32.mrb[14].mxu1  ;;  %v3484_v32 = vrot.slane %v2590_v0, 2  ;;  %v3585_v53 = vrot.slane %v2590_v0, 3  ;;  %v3686_v48 = vrot.slane %v2590_v0, 4  ;;  %v3787_v56 = vrot.slane %v2590_v0, 5 }
 0x216   : >> { %v8555_v43 = vsub.f32 %v2293_v59, %v2585_v42  ;;  %v6499_v18 = vpop.f32.mrb[15].mxu1  ;;  %v3159_v30 = vsel %vm3158_vm11, %v3157_v26, %v8545_v34  ;;  %v3160_v29 = vrot.slane %v2591_v39, 6  ;;  %v3283_v44 = vrot.slane %v2591_v39, 7 }
 0x217   : >> { %v3384_v36 = vsel %vm3158_vm11, %v3383_v11, %v3382_v52  ;;  %v3485_v57 = vsel %vm3158_vm11, %v3484_v32, %v3483_v40  ;;  %v3486_v49 = vrot.slane %v2591_v39, 1  ;;  %v3586_v63 = vsel %vm3158_vm11, %v3585_v53, %v3584_v15 }
 0x218   : >> { %v3162_v21 = vsel %vm3161_vm12, %v3160_v29, %v3159_v30  ;;  %v3163_v20 = vrot.slane %v8555_v43, 5  ;;  %v3284_v16 = vsel %vm3161_vm12, %v3283_v44, %v3282_v10  ;;  %v3285_v55 = vrot.slane %v8555_v43, 6 }
 0x219   : >> { %v3385_v12 = vsel %vm3161_vm12, %v2591_v39, %v3384_v36  ;;  %v3386_v14 = vrot.slane %v8555_v43, 7  ;;  %v3487_v46 = vsel %vm3161_vm12, %v3486_v49, %v3485_v57  ;;  %v3587_v28 = vrot.slane %v2591_v39, 2 }
 0x21a   : >> { %v8570_v51 = vsel %vm3164_vm13, %v3163_v20, %v3162_v21  ;;  %v8573_v47 = vsel %vm3164_vm13, %v3285_v55, %v3284_v16  ;;  %v8577_v17 = vsel %vm3164_vm13, %v8555_v43, %v3487_v46  ;;  %v3589_v5 = vrot.slane %v8555_v43, 1 }
 0x21b   : >> { %v8581_v37 = vsel %vm3164_vm13, %v3386_v14, %v3385_v12  ;;  %v3588_v38 = vsel %vm3161_vm12, %v3587_v28, %v3586_v63  ;;  %v3687_v58 = vsel %vm3158_vm11, %v3686_v48, %v3685_v19  ;;  %v3688_v31 = vrot.slane %v2591_v39, 3 }
 0x21c   : >> { %v8586_v61 = vsel %vm3164_vm13, %v3589_v5, %v3588_v38  ;;  %v3690_v59 = vrot.slane %v8555_v43, 2  ;;  %v3788_v41 = vsel %vm3158_vm11, %v3787_v56, %v3786_v45  ;;  %v3789_v33 = vrot.slane %v2591_v39, 4 }
 0x21d   : >> { %v3689_v34 = vsel %vm3161_vm12, %v3688_v31, %v3687_v58  ;;  %v3791_v62 = vrot.slane %v8555_v43, 3  ;;  %v3888_v35 = vrot.slane %v2590_v0, 6  ;;  %v3890_v13 = vrot.slane %v2591_v39, 5 }
 0x21e   : >> { %v8593_v60 = vsel %vm3164_vm13, %v3690_v59, %v3689_v34  ;;  %v3790_v52 = vsel %vm3161_vm12, %v3789_v33, %v3788_v41  ;;  %v3892_v19 = vrot.slane %v8555_v43, 4 }
 0x21f   : >> { %v8596_v40 = vpop.f32.mrb[16].mxu0  ;;  %v8599_v27 = vsel %vm3164_vm13, %v3791_v62, %v3790_v52  ;;  %v3889_v15 = vsel %vm3158_vm11, %v3888_v35, %v3887_v54  ;;  %vm7766_vm11 = vmmov (%p9211_p5), 0  }
 0x220   : >> { %v6534_v45 = vpop.f32.mrb[17].mxu0  ;;  %v3171_v0 = vrot.slane %v8596_v40, 4  ;;  %v3288_v39 = vrot.slane %v8596_v40, 5  ;;  %v3389_v50 = vrot.slane %v8596_v40, 6  ;;  %v3490_v26 = vrot.slane %v8596_v40, 7 }
 0x221   : >> { %v8607_v10 = vpop.f32.mrb[16].mxu1  ;;  %v3693_v11 = vrot.slane %v8596_v40, 1  ;;  %v3794_v42 = vrot.slane %v8596_v40, 2  ;;  %v3891_v32 = vsel %vm3161_vm12, %v3890_v13, %v3889_v15  ;;  %v3895_v54 = vrot.slane %v8596_v40, 3 }
 0x222   : >> { %v6541_v53 = vpop.f32.mrb[17].mxu1  ;;  %v3172_v48 = vrot.slane %v8607_v10, 3  ;;  %v3289_v56 = vrot.slane %v8607_v10, 4  ;;  %v3390_v43 = vrot.slane %v8607_v10, 5  ;;  %v3491_v18 = vrot.slane %v8607_v10, 6 }
 0x223   : >> { %v8617_v30 = vpop.f32.mrb[18].mxu0  ;;  %v3592_v29 = vrot.slane %v8607_v10, 7  ;;  %v3694_v44 = vsel %vm3173_vm14, %v8607_v10, %v3693_v11  ;;  %v3795_v36 = vrot.slane %v8607_v10, 1  ;;  %v8624_v57 = vsel %vm3164_vm13, %v3892_v19, %v3891_v32 }
 0x224   : >> { %v6548_v49 = vpop.f32.mrb[19].mxu0  ;;  %v3174_v63 = vsel %vm3173_vm14, %v3172_v48, %v3171_v0  ;;  %v3175_v21 = vrot.slane %v8617_v30, 2  ;;  %v3290_v20 = vsel %vm3173_vm14, %v3289_v56, %v3288_v39  ;;  %v3291_v16 = vrot.slane %v8617_v30, 3 }
 0x225   : >> { %v3149_v55 = vpop.f32.mrb[18].mxu1  ;;  %v3391_v12 = vsel %vm3173_vm14, %v3390_v43, %v3389_v50  ;;  %v3392_v14 = vrot.slane %v8617_v30, 4  ;;  %v3492_v46 = vsel %vm3173_vm14, %v3491_v18, %v3490_v26  ;;  %v3493_v28 = vrot.slane %v8617_v30, 5 }
 0x226   : >> { %v6555_v5 = vpop.f32.mrb[19].mxu1  ;;  %v3177_v38 = vsel %vm3176_vm15, %v3175_v21, %v3174_v63  ;;  %v3178_v58 = vrot.slane %v3149_v55, 1  ;;  %v3292_v31 = vsel %vm3176_vm15, %v3291_v16, %v3290_v20  ;;  %v3293_v59 = vrot.slane %v3149_v55, 2  ;;  %v9646_v63 = vld [vmem:[#allocation16_spill] sm:$0xff]  ;;  %v9647_v21 = vld [vmem:[#allocation27_spill] sm:$0xff]  ;;  %v9649_v16 = vld [vmem:[#allocation26_spill] sm:$0xff] }
 0x227   : >> { %v3393_v41 = vsel %vm3176_vm15, %v3392_v14, %v3391_v12  ;;  %v3394_v33 = vrot.slane %v3149_v55, 3  ;;  %v3494_v34 = vsel %vm3176_vm15, %v3493_v28, %v3492_v46  ;;  %v3495_v62 = vrot.slane %v3149_v55, 4  ;;  %v9648_v20 = vld [vmem:[#allocation15_spill] sm:$0xff]  ;;  %v9651_v12 = vld [vmem:[#allocation25_spill] sm:$0xff]  ;;  %v9653_v46 = vld [vmem:[#allocation24_spill] sm:$0xff] }
 0x228   : >> { %v3180_v35 = vsel %vm3179_vm1, %v3178_v58, %v3177_v38  ;;  %v3294_v13 = vsel %vm3179_vm1, %v3293_v59, %v3292_v31  ;;  %v3593_v52 = vsel %vm3173_vm14, %v3592_v29, %v8596_v40  ;;  %v3594_v15 = vrot.slane %v8617_v30, 6  ;;  %v3990_v40 = vld [vmem:[%s3989_s23] sm:$0xff]  ;;  %v9652_v14 = vld [vmem:[#allocation13_spill] sm:$0xff]  ;;  %v9655_v5 = vld [vmem:[#allocation23_spill] sm:$0xff] }
 0x229   : >> { %v3182_v19 = vsel %vm1612_vm5, %v8570_v51, %v3180_v35  ;;  %v3296_v45 = vsel %vm1612_vm5, %v8573_v47, %v3294_v13  ;;  %v3395_v0 = vsel %vm3179_vm1, %v3394_v33, %v3393_v41  ;;  %v3496_v39 = vsel %vm3179_vm1, %v3495_v62, %v3494_v34  ;;  %v9654_v28 = vld [vmem:[#allocation12_spill] sm:$0xff]  ;;  %v9656_v38 = vld [vmem:[#allocation11_spill] sm:$0xff]  ;;  %v9657_v58 = vld [vmem:[#allocation22_spill] sm:$0xff] }
 0x22a   : >> { %6556 = vmatprep.subr.mxu0 %v3182_v19  ;;  %6564 = vmatprep.subr.mxu1 %v3296_v45  ;;  %v3397_v50 = vsel %vm1612_vm5, %v8581_v37, %v3395_v0  ;;  %v3498_v26 = vsel %vm1612_vm5, %v8577_v17, %v3496_v39  ;;  %v3595_v11 = vsel %vm3176_vm15, %v3594_v15, %v3593_v52  ;;  %v3596_v32 = vrot.slane %v3149_v55, 5  ;;  %v9658_v31 = vld [vmem:[#allocation10_spill] sm:$0xff]  ;;  %v9659_v59 = vld [vmem:[#allocation21_spill] sm:$0xff] }
 0x22b   : >> { %6557 = vmatpush3.msra.mxu0 %v3182_v19  ;;  %6565 = vmatpush3.msra.mxu1 %v3296_v45  ;;  %v3695_v51 = vrot.slane %v8617_v30, 7  ;;  %v3697_v47 = vrot.slane %v3149_v55, 6  ;;  %v3796_v53 = vsel %vm3173_vm14, %v3795_v36, %v3794_v42  ;;  %v3798_v48 = vrot.slane %v3149_v55, 7  ;;  %v9660_v41 = vld [vmem:[#allocation9_spill] sm:$0xff] }
 0x22c   : >> { %6559 = vmatmul.mubr.msk.f32.vlgmr.msra.gmra.mrb[20].mxu0 %vm3183_vm10, %v9607_v2  ;;  %6567 = vmatmul.mubr.msk.f32.vlgmr.msra.gmra.mrb[20].mxu1 %vm3183_vm10, %v9607_v2  ;;  %v3597_v37 = vsel %vm3179_vm1, %v3596_v32, %v3595_v11  ;;  %v3797_v17 = vsel %vm3176_vm15, %v8617_v30, %v3796_v53  ;;  %v3896_v56 = vrot.slane %v8607_v10, 2  ;;  %v3898_v43 = vrot.slane %v8617_v30, 1  ;;  %v8809_v32 = vld [vmem:[%s3992_s28] ss:$0 sm:$0xff] }
 0x22d   : >> { %6572 = vmatprep.subr.mxu0 %v3397_v50  ;;  %6580 = vmatprep.subr.mxu1 %v3498_v26  ;;  %v3599_v42 = vsel %vm1612_vm5, %v8586_v61, %v3597_v37  ;;  %v3696_v18 = vsel %vm3176_vm15, %v3695_v51, %v3694_v44  ;;  %v3799_v29 = vsel %vm3179_vm1, %v3798_v48, %v3797_v17 }
 0x22e   : >> { %6573 = vmatpush3.msra.mxu0 %v3397_v50  ;;  %6581 = vmatpush3.msra.mxu1 %v3498_v26  ;;  %v3698_v36 = vsel %vm3179_vm1, %v3697_v47, %v3696_v18  ;;  %v3801_v49 = vsel %vm1612_vm5, %v8599_v27, %v3799_v29  ;;  %v3897_v10 = vsel %vm3173_vm14, %v3896_v56, %v3895_v54  ;;  %v3991_v27 = vld [vmem:[%s3989_s23 + $0x8] sm:$0xff] }
 0x22f   : >> { %6588 = vmatprep.subr.mxu0 %v3599_v42  ;;  %v3700_v61 = vsel %vm1612_vm5, %v8593_v60, %v3698_v36  ;;  %6561 = vmatprep.mubr.msk.f32.mxu0 %vm3183_vm10, %v9606_v3  ;;  %v3899_v30 = vsel %vm3176_vm15, %v3898_v43, %v3897_v10  ;;  %v6936_v54 = vpack.c.bf16 %v3991_v27, %v3990_v40 }
 0x230   : >> { %6596 = vmatprep.subr.mxu1 %v3700_v61  ;;  %6569 = vmatprep.mubr.msk.f32.mxu1 %vm3183_vm10, %v9606_v3  ;;  %v3900_v44 = vsel %vm3179_vm1, %v3149_v55, %v3899_v30  ;;  %v9650_v55 = vld [vmem:[#allocation14_spill] sm:$0xff] }
 0x231   : >> { %6562 = vmatmul.mubr.msk.f32.gmra.mrb[22].mxu0 %vm3183_vm10, %v9605_v4  ;;  %6570 = vmatmul.mubr.msk.f32.gmra.mrb[22].mxu1 %vm3183_vm10, %v9605_v4  ;;  %v3902_v60 = vsel %vm1612_vm5, %v8624_v57, %v3900_v44  ;;  %v9645_v57 = vld [vmem:[#allocation28_spill] sm:$0xff] }
 0x232   : >> { %6574 = vmatprep.mubr.msk.f32.mxu0 %vm3183_vm10, %v9608_v1  ;;  %6582 = vmatprep.mubr.msk.f32.mxu1 %vm3183_vm10, %v9608_v1 }
 0x235   : >> { %6575 = vmatmul.mubr.msk.f32.vlgmr.msra.gmra.mrb[24].mxu0 %vm3183_vm10, %v9607_v2  ;;  %6583 = vmatmul.mubr.msk.f32.vlgmr.msra.gmra.mrb[24].mxu1 %vm3183_vm10, %v9607_v2 }
 0x236   : >> { %6589 = vmatpush3.msra.mxu0 %v3599_v42  ;;  %6597 = vmatpush3.msra.mxu1 %v3700_v61 }
 0x237   : >> { %6604 = vmatprep.subr.mxu0 %v3801_v49  ;;  %6612 = vmatprep.subr.mxu1 %v3902_v60 }
 0x238   : >> { %6577 = vmatprep.mubr.msk.f32.mxu0 %vm3183_vm10, %v9606_v3  ;;  %6585 = vmatprep.mubr.msk.f32.mxu1 %vm3183_vm10, %v9606_v3 }
 0x239   : >> { %6578 = vmatmul.mubr.msk.f32.gmra.mrb[26].mxu0 %vm3183_vm10, %v9605_v4  ;;  %6586 = vmatmul.mubr.msk.f32.gmra.mrb[26].mxu1 %vm3183_vm10, %v9605_v4 }
 0x23a   : >> { %6590 = vmatprep.mubr.msk.f32.mxu0 %vm3183_vm10, %v9608_v1  ;;  %6598 = vmatprep.mubr.msk.f32.mxu1 %vm3183_vm10, %v9608_v1 }
 0x23d   : >> { %6591 = vmatmul.mubr.msk.f32.vlgmr.msra.gmra.mrb[28].mxu0 %vm3183_vm10, %v9607_v2  ;;  %6599 = vmatmul.mubr.msk.f32.vlgmr.msra.gmra.mrb[28].mxu1 %vm3183_vm10, %v9607_v2 }
 0x23e   : >> { %6605 = vmatpush3.msra.mxu0 %v3801_v49  ;;  %6613 = vmatpush3.msra.mxu1 %v3902_v60 }
 0x23f   : >> { %6593 = vmatprep.mubr.msk.f32.mxu0 %vm3183_vm10, %v9606_v3  ;;  %6601 = vmatprep.mubr.msk.f32.mxu1 %vm3183_vm10, %v9606_v3 }
 0x240   : >> { %6937 = vmatprep.subr.bf16.mxu0 %v6936_v54  ;;  %7033 = vmatprep.subr.bf16.mxu1 %v6936_v54 }
 0x241   : >> { %6594 = vmatmul.mubr.msk.f32.gmra.mrb[30].mxu0 %vm3183_vm10, %v9605_v4  ;;  %6602 = vmatmul.mubr.msk.f32.gmra.mrb[30].mxu1 %vm3183_vm10, %v9605_v4 }
 0x242   : >> { %6606 = vmatprep.mubr.msk.f32.mxu0 %vm3183_vm10, %v9608_v1  ;;  %6614 = vmatprep.mubr.msk.f32.mxu1 %vm3183_vm10, %v9608_v1 }
 0x245   : >> { %6607 = vmatmul.mubr.msk.f32.vlgmr.msra.gmra.mrb[32].mxu0 %vm3183_vm10, %v9607_v2  ;;  %6615 = vmatmul.mubr.msk.f32.vlgmr.msra.gmra.mrb[32].mxu1 %vm3183_vm10, %v9607_v2 }
 0x246   : >> { %6609 = vmatprep.mubr.msk.f32.mxu0 %vm3183_vm10, %v9606_v3  ;;  %6617 = vmatprep.mubr.msk.f32.mxu1 %vm3183_vm10, %v9606_v3 }
 0x247   : >> { %6939 = vmatpush3.bf16.msra.mxu0 %v6936_v54  ;;  %7034 = vmatpush3.bf16.msra.mxu1 %v6936_v54 }
 0x249   : >> { %6610 = vmatmul.mubr.msk.f32.gmra.mrb[34].mxu0 %vm3183_vm10, %v9605_v4  ;;  %6618 = vmatmul.mubr.msk.f32.gmra.mrb[34].mxu1 %vm3183_vm10, %v9605_v4 }
 0x24a   : >> { %6624 = vmatprep.mubr.msk.f32.mxu0 %vm2004_vm9, %v7747_v6  ;;  %6648 = vmatprep.mubr.msk.f32.mxu1 %vm2004_vm9, %v7683_v22  ;;  %v9637_v6 = vld [vmem:[#allocation32_spill] sm:$0xff] }
 0x24b   : >> { %v9638_v22 = vld [vmem:[#allocation20_spill] sm:$0xff] }
 0x24d   : >> { %6625 = vmatmul.mubr.msk.f32.vlgmr.msra.gmra.mrb[20].mxu0 %vm2004_vm9, %v7743_v7  ;;  %6649 = vmatmul.mubr.msk.f32.vlgmr.msra.gmra.mrb[36].mxu1 %vm2004_vm9, %v7679_v23  ;;  %v9639_v7 = vld [vmem:[#allocation31_spill] sm:$0xff] }
 0x24e   : >> { %6627 = vmatprep.mubr.msk.f32.mxu0 %vm2004_vm9, %v7739_v8  ;;  %6651 = vmatprep.mubr.msk.f32.mxu1 %vm2004_vm9, %v7675_v24  ;;  %v9640_v23 = vld [vmem:[#allocation19_spill] sm:$0xff]  ;;  %v9641_v8 = vld [vmem:[#allocation30_spill] sm:$0xff] }
 0x24f   : >> { %v9642_v24 = vld [vmem:[#allocation18_spill] sm:$0xff] }
 0x251   : >> { %6628 = vmatmul.mubr.msk.f32.gmra.mrb[22].mxu0 %vm2004_vm9, %v7735_v9  ;;  %6652 = vmatmul.mubr.msk.f32.gmra.mrb[38].mxu1 %vm2004_vm9, %v7671_v25  ;;  %v9643_v9 = vld [vmem:[#allocation29_spill] sm:$0xff] }
 0x252   : >> { %6630 = vmatprep.mubr.msk.f32.mxu0 %vm2004_vm9, %v9637_v6  ;;  %6654 = vmatprep.mubr.msk.f32.mxu1 %vm2004_vm9, %v9638_v22  ;;  %v9644_v25 = vld [vmem:[#allocation17_spill] sm:$0xff] }
 0x255   : >> { %6631 = vmatmul.mubr.msk.f32.gmra.mrb[36].mxu0 %vm2004_vm9, %v9639_v7  ;;  %6655 = vmatmul.mubr.msk.f32.gmra.mrb[28].mxu1 %vm2004_vm9, %v9640_v23 }
 0x256   : >> { %6633 = vmatprep.mubr.msk.f32.mxu0 %vm2004_vm9, %v9641_v8  ;;  %6657 = vmatprep.mubr.msk.f32.mxu1 %vm2004_vm9, %v9642_v24 }
 0x259   : >> { %6634 = vmatmul.mubr.msk.f32.gmra.mrb[38].mxu0 %vm2004_vm9, %v9643_v9  ;;  %6658 = vmatmul.mubr.msk.f32.gmra.mrb[30].mxu1 %vm2004_vm9, %v9644_v25 }
 0x25a   : >> { %6636 = vmatprep.mubr.msk.f32.mxu0 %vm2004_vm9, %v9645_v57  ;;  %6660 = vmatprep.mubr.msk.f32.mxu1 %vm2004_vm9, %v9646_v63 }
 0x25d   : >> { %6637 = vmatmul.mubr.msk.f32.gmra.mrb[24].mxu0 %vm2004_vm9, %v9647_v21  ;;  %6661 = vmatmul.mubr.msk.f32.gmra.mrb[40].mxu1 %vm2004_vm9, %v9648_v20 }
 0x25e   : >> { %6639 = vmatprep.mubr.msk.f32.mxu0 %vm2004_vm9, %v9649_v16  ;;  %6663 = vmatprep.mubr.msk.f32.mxu1 %vm2004_vm9, %v9650_v55 }
 0x261   : >> { %6640 = vmatmul.mubr.msk.f32.gmra.mrb[26].mxu0 %vm2004_vm9, %v9651_v12  ;;  %6664 = vmatmul.mubr.msk.f32.gmra.mrb[42].mxu1 %vm2004_vm9, %v9652_v14 }
 0x262   : >> { %6642 = vmatprep.mubr.msk.f32.mxu0 %vm2004_vm9, %v9653_v46  ;;  %6666 = vmatprep.mubr.msk.f32.mxu1 %vm2004_vm9, %v9654_v28 }
 0x265   : >> { %6643 = vmatmul.mubr.msk.f32.gmra.mrb[40].mxu0 %vm2004_vm9, %v9655_v5  ;;  %6667 = vmatmul.mubr.msk.f32.gmra.mrb[32].mxu1 %vm2004_vm9, %v9656_v38 }
 0x266   : >> { %6645 = vmatprep.mubr.msk.f32.mxu0 %vm2004_vm9, %v9657_v58  ;;  %6669 = vmatprep.mubr.msk.f32.mxu1 %vm2004_vm9, %v9658_v31 }
 0x269   : >> { %6646 = vmatmul.mubr.msk.f32.gmra.mrb[42].mxu0 %vm2004_vm9, %v9659_v59  ;;  %6670 = vmatmul.mubr.msk.f32.gmra.mrb[34].mxu1 %vm2004_vm9, %v9660_v41 }
 0x2ff   : >> { %v6568_v33 = vpop.f32.mrb[20].mxu1 }
 0x300   : >> { %v3363_v34 = vpop.f32.mrb[21].mxu1  ;;  %v8812_v53 = vadd.f32 %v6568_v33, %v8809_v32 }
 0x301   : >> { %v8815_v48 = vadd.f32 %v8809_v32, %v3363_v34 }
 0x304   : >> { %v6571_v62 = vpop.f32.mrb[22].mxu1 }
 0x305   : >> { %v3373_v35 = vpop.f32.mrb[23].mxu1  ;;  %v8818_v37 = vadd.f32 %v6571_v62, %v8809_v32 }
 0x306   : >> { %v8822_v56 = vadd.f32 %v8809_v32, %v3373_v35 }
 0x308   : >> { %v6584_v13 = vpop.f32.mrb[24].mxu1 }
 0x309   : >> { %v3565_v52 = vpop.f32.mrb[25].mxu1  ;;  %v8825_v43 = vadd.f32 %v6584_v13, %v8809_v32 }
 0x30a   : >> { %v8828_v42 = vadd.f32 %v8809_v32, %v3565_v52 }
 0x30c   : >> { %v6587_v15 = vpop.f32.mrb[26].mxu1 }
 0x30d   : >> { %v3575_v19 = vpop.f32.mrb[27].mxu1  ;;  %v8832_v49 = vadd.f32 %v6587_v15, %v8809_v32 }
 0x30e   : >> { %v8835_v10 = vadd.f32 %v8809_v32, %v3575_v19 }
 0x310   : >> { %v6592_v45 = vpop.f32.mrb[28].mxu0 }
 0x311   : >> { %v3666_v0 = vpop.f32.mrb[29].mxu0  ;;  %v7059_v17 = vadd.f32 %v6592_v45, %v8809_v32 }
 0x312   : >> { %v7061_v18 = vadd.f32 %v8809_v32, %v3666_v0 }
 0x314   : >> { %v6595_v39 = vpop.f32.mrb[30].mxu0 }
 0x315   : >> { %v3676_v50 = vpop.f32.mrb[31].mxu0  ;;  %v7063_v40 = vadd.f32 %v6595_v39, %v8809_v32 }
 0x316   : >> { %v7065_v27 = vadd.f32 %v8809_v32, %v3676_v50 }
 0x318   : >> { %v6608_v26 = vpop.f32.mrb[32].mxu0 }
 0x319   : >> { %v3868_v11 = vpop.f32.mrb[33].mxu0  ;;  %v8850_v22 = vadd.f32 %v6608_v26, %v8809_v32 }
 0x31a   : >> { %v8853_v7 = vadd.f32 %v8809_v32, %v3868_v11 }
 0x31c   : >> { %v6611_v51 = vpop.f32.mrb[34].mxu0 }
 0x31d   : >> { %v3878_v47 = vpop.f32.mrb[35].mxu0  ;;  %v8860_v24 = vadd.f32 %v6611_v51, %v8809_v32 }
 0x31e   : >> { %v8863_v9 = vadd.f32 %v8809_v32, %v3878_v47 }
 0x320   : >> { %v6626_v29 = vpop.f32.mrb[20].mxu0  ;;  %v6650_v36 = vpop.f32.mrb[36].mxu1 }
 0x321   : >> { %v8838_v61 = vadd.f32 %v6626_v29, %v8809_v32  ;;  %v8840_v30 = vadd.f32 %v7059_v17, %v6650_v36  ;;  %v4162_v44 = vpop.f32.mrb[21].mxu0  ;;  %v4242_v60 = vpop.f32.mrb[37].mxu1 }
 0x322   : >> { %v8845_v54 = vadd.f32 %v8809_v32, %v4162_v44  ;;  %v8847_v6 = vadd.f32 %v7061_v18, %v4242_v60 }
 0x323   : >> { %v4354_v23 = vmul.f32 %v8838_v61, %v8838_v61  ;;  %v4370_v8 = vmul.f32 %v8840_v30, %v8840_v30 }
 0x324   : >> { %v4353_v25 = vmul.f32 %v8845_v54, %v8845_v54  ;;  %v4369_v57 = vmul.f32 %v8847_v6, %v8847_v6  ;;  %v6629_v63 = vpop.f32.mrb[22].mxu0  ;;  %v6653_v21 = vpop.f32.mrb[38].mxu1 }
 0x325   : >> { %v4386_v20 = vmul.f32 %v4354_v23, %v8838_v61  ;;  %v4402_v16 = vmul.f32 %v8840_v30, %v4370_v8  ;;  %v8872_v55 = vadd.f32 %v6629_v63, %v8809_v32  ;;  %v8874_v12 = vadd.f32 %v7063_v40, %v6653_v21  ;;  %v4172_v14 = vpop.f32.mrb[23].mxu0  ;;  %v4252_v46 = vpop.f32.mrb[39].mxu1 }
 0x326   : >> { %v4385_v28 = vmul.f32 %v4353_v25, %v8845_v54  ;;  %v4401_v5 = vmul.f32 %v8847_v6, %v4369_v57  ;;  %v8879_v38 = vadd.f32 %v8809_v32, %v4172_v14  ;;  %v8881_v58 = vadd.f32 %v7065_v27, %v4252_v46 }
 0x327   : >> { %v4418_v31 = vmul.f32 0.044715, %v4386_v20  ;;  %v4434_v59 = vmul.f32 0.044715, %v4402_v16  ;;  %v4356_v41 = vmul.f32 %v8872_v55, %v8872_v55  ;;  %v4372_v33 = vmul.f32 %v8874_v12, %v8874_v12 }
 0x328   : >> { %v4417_v34 = vmul.f32 0.044715, %v4385_v28  ;;  %v4433_v62 = vmul.f32 0.044715, %v4401_v5  ;;  %v4355_v35 = vmul.f32 %v8879_v38, %v8879_v38  ;;  %v4371_v13 = vmul.f32 %v8881_v58, %v8881_v58  ;;  %v6632_v52 = vpop.f32.mrb[36].mxu0  ;;  %v6656_v15 = vpop.f32.mrb[28].mxu1 }
 0x329   : >> { %v4450_v19 = vadd.f32 %v4418_v31, %v8838_v61  ;;  %v4466_v45 = vadd.f32 %v8840_v30, %v4434_v59  ;;  %v4388_v0 = vmul.f32 %v4356_v41, %v8872_v55  ;;  %v4404_v39 = vmul.f32 %v8874_v12, %v4372_v33  ;;  %v4182_v50 = vpop.f32.mrb[37].mxu0  ;;  %v4262_v26 = vpop.f32.mrb[29].mxu1 }
 0x32a   : >> { %v4449_v11 = vadd.f32 %v4417_v34, %v8845_v54  ;;  %v4465_v51 = vadd.f32 %v8847_v6, %v4433_v62  ;;  %v4387_v47 = vmul.f32 %v4355_v35, %v8879_v38  ;;  %v4403_v17 = vmul.f32 %v8881_v58, %v4371_v13 }
 0x32b   : >> { %v4482_v18 = vmul.f32 0.7978846, %v4450_v19  ;;  %v4498_v29 = vmul.f32 0.7978846, %v4466_v45  ;;  %v4420_v36 = vmul.f32 0.044715, %v4388_v0  ;;  %v8900_v44 = vadd.f32 %v8812_v53, %v6632_v52 }
 0x32c   : >> { %v4481_v60 = vmul.f32 0.7978846, %v4449_v11  ;;  %v4497_v40 = vmul.f32 0.7978846, %v4465_v51  ;;  %v4436_v27 = vmul.f32 0.044715, %v4404_v39  ;;  %v8903_v23 = vadd.f32 %v6656_v15, %v8809_v32 }
 0x32d   : >> { %7405 = vtanh.f32 %v4482_v18  ;;  %v4452_v8 = vadd.f32 %v4420_v36, %v8872_v55  ;;  %v4419_v25 = vmul.f32 0.044715, %v4387_v47  ;;  %v4435_v57 = vmul.f32 0.044715, %v4403_v17  ;;  %v6635_v63 = vpop.f32.mrb[38].mxu0  ;;  %v6659_v21 = vpop.f32.mrb[30].mxu1 }
 0x32e   : >> { %7407 = vtanh.f32 %v4498_v29  ;;  %v4468_v20 = vadd.f32 %v8874_v12, %v4436_v27  ;;  %v4358_v53 = vmul.f32 %v8900_v44, %v8900_v44  ;;  %v4374_v16 = vmul.f32 %v8903_v23, %v8903_v23  ;;  %v4192_v14 = vpop.f32.mrb[39].mxu0  ;;  %v4272_v46 = vpop.f32.mrb[31].mxu1 }
 0x32f   : >> { %7409 = vtanh.f32 %v4481_v60  ;;  %v4484_v28 = vmul.f32 0.7978846, %v4452_v8  ;;  %v4451_v5 = vadd.f32 %v4419_v25, %v8879_v38  ;;  %v4467_v31 = vadd.f32 %v8881_v58, %v4435_v57 }
 0x330   : >> { %7411 = vtanh.f32 %v4497_v40  ;;  %v4500_v59 = vmul.f32 0.7978846, %v4468_v20  ;;  %v4390_v41 = vmul.f32 %v8900_v44, %v4358_v53  ;;  %v4406_v33 = vmul.f32 %v4374_v16, %v8903_v23  ;;  %v8915_v34 = vpop.f32.mrb[24].mxu0  ;;  %v8917_v62 = vpop.f32.mrb[40].mxu1 }
 0x331   : >> { %7413 = vtanh.f32 %v4484_v28  ;;  %v4483_v35 = vmul.f32 0.7978846, %v4451_v5  ;;  %v4499_v13 = vmul.f32 0.7978846, %v4467_v31  ;;  %v8920_v52 = vadd.f32 %v8815_v48, %v4182_v50  ;;  %v8922_v15 = vpop.f32.mrb[25].mxu0  ;;  %v8924_v19 = vpop.f32.mrb[41].mxu1 }
 0x332   : >> { %7415 = vtanh.f32 %v4500_v59  ;;  %v4422_v45 = vmul.f32 0.044715, %v4390_v41  ;;  %v4438_v0 = vmul.f32 0.044715, %v4406_v33  ;;  %v8927_v39 = vadd.f32 %v8809_v32, %v4262_v26 }
 0x333   : >> { %7417 = vtanh.f32 %v4483_v35  ;;  %v4357_v11 = vmul.f32 %v8920_v52, %v8920_v52  ;;  %v8932_v51 = vadd.f32 %v8818_v37, %v6635_v63  ;;  %v8935_v48 = vadd.f32 %v6659_v21, %v8809_v32 }
 0x334   : >> { %7419 = vtanh.f32 %v4499_v13  ;;  %v4454_v50 = vadd.f32 %v8900_v44, %v4422_v45  ;;  %v4470_v47 = vadd.f32 %v4438_v0, %v8903_v23  ;;  %v4373_v17 = vmul.f32 %v8927_v39, %v8927_v39  ;;  %v8941_v26 = vpop.f32.mrb[26].mxu0  ;;  %v8943_v18 = vpop.f32.mrb[42].mxu1 }
 0x335   : >> { %v4389_v29 = vmul.f32 %v8920_v52, %v4357_v11  ;;  %v4360_v37 = vmul.f32 %v8932_v51, %v8932_v51  ;;  %v4376_v36 = vmul.f32 %v8935_v48, %v8935_v48  ;;  %v8951_v60 = vadd.f32 %v8822_v56, %v4192_v14  ;;  %v8953_v40 = vpop.f32.mrb[27].mxu0  ;;  %v8955_v27 = vpop.f32.mrb[43].mxu1 }
 0x336   : >> { %v4486_v8 = vmul.f32 0.7978846, %v4454_v50  ;;  %v4502_v25 = vmul.f32 0.7978846, %v4470_v47  ;;  %v4405_v57 = vmul.f32 %v4373_v17, %v8927_v39  ;;  %v8959_v63 = vadd.f32 %v8809_v32, %v4272_v46 }
 0x337   : >> { %v7406_v21 = vpop.eup %7405  ;;  %v4421_v20 = vmul.f32 0.044715, %v4389_v29  ;;  %v4392_v53 = vmul.f32 %v8932_v51, %v4360_v37  ;;  %v4408_v16 = vmul.f32 %v4376_v36, %v8935_v48  ;;  %v4359_v56 = vmul.f32 %v8951_v60, %v8951_v60 }
 0x338   : >> { %v7408_v14 = vpop.eup %7407  ;;  %v4546_v28 = vadd.f32 1.0, %v7406_v21  ;;  %7421 = vtanh.f32 %v4486_v8  ;;  %v4437_v5 = vmul.f32 0.044715, %v4405_v57  ;;  %v4375_v31 = vmul.f32 %v8959_v63, %v8959_v63  ;;  %v8967_v59 = vpop.f32.mrb[40].mxu0 }
 0x339   : >> { %v8969_v46 = vpop.f32.mrb[32].mxu1  ;;  %v7410_v41 = vpop.eup %7409  ;;  %v4562_v33 = vadd.f32 1.0, %v7408_v14  ;;  %7423 = vtanh.f32 %v4502_v25  ;;  %v4453_v35 = vadd.f32 %v8920_v52, %v4421_v20  ;;  %v4424_v13 = vmul.f32 0.044715, %v4392_v53 }
 0x33a   : >> { %v8972_v45 = vpop.f32.mrb[41].mxu0  ;;  %v8974_v0 = vpop.f32.mrb[33].mxu1  ;;  %v4578_v50 = vmul.f32 0.5, %v4546_v28  ;;  %v4545_v47 = vadd.f32 1.0, %v7410_v41  ;;  %v4469_v17 = vadd.f32 %v4437_v5, %v8927_v39  ;;  %v4440_v29 = vmul.f32 0.044715, %v4408_v16 }
 0x33b   : >> { %v7412_v11 = vpop.eup %7411  ;;  %v4594_v36 = vmul.f32 0.5, %v4562_v33  ;;  %v4485_v57 = vmul.f32 0.7978846, %v4453_v35  ;;  %v4456_v21 = vadd.f32 %v8932_v51, %v4424_v13  ;;  %v4391_v53 = vmul.f32 %v8951_v60, %v4359_v56 }
 0x33c   : >> { %v7414_v37 = vpop.eup %7413  ;;  %v4561_v8 = vadd.f32 1.0, %v7412_v11  ;;  %v8979_v20 = vmul.f32 %v4578_v50, %v8838_v61   ;;  %v4577_v14 = vmul.f32 0.5, %v4545_v47  ;;  %v4501_v2 = vmul.f32 0.7978846, %v4469_v17  ;;  %v8981_v3 = vpop.f32.mrb[42].mxu0 }
 0x33d   : >> { %v7416_v25 = vpop.eup %7415  ;;  %v4548_v1 = vadd.f32 1.0, %v7414_v37  ;;  %v8983_v28 = vpop.f32.mrb[34].mxu1  ;;  %v8986_v16 = vmul.f32 %v8840_v30, %v4594_v36   ;;  %7425 = vtanh.f32 %v4485_v57  ;;  %v4488_v36 = vmul.f32 0.7978846, %v4456_v21 }
 0x33e   : >> { %9661 = vst [vmem:[#allocation33_spill] sm:$0xff] %v8979_v20  ;;  %v7418_v41 = vpop.eup %7417  ;;  %v4593_v33 = vmul.f32 0.5, %v4561_v8  ;;  %v4564_v11 = vadd.f32 1.0, %v7416_v25  ;;  %v8988_v35 = vpop.f32.mrb[43].mxu0  ;;  %v8993_v50 = vmul.f32 %v4577_v14, %v8845_v54   ;;  %7427 = vtanh.f32 %v4501_v2 }
 0x33f   : >> { %v9662_v5 = vmov %v8986_v16  ;;  %v8990_v13 = vpop.f32.mrb[35].mxu1  ;;  %v7420_v61 = vpop.eup %7419  ;;  %v4580_v47 = vmul.f32 0.5, %v4548_v1  ;;  %v4547_v17 = vadd.f32 1.0, %v7418_v41  ;;  %v4472_v16 = vadd.f32 %v4440_v29, %v8935_v48 }
 0x340   : >> { %9663 = vst [vmem:[#allocation34_spill] sm:$0xff] %v8993_v50  ;;  %v8996_v37 = vmul.f32 %v8847_v6, %v4593_v33   ;;  %v4596_v20 = vmul.f32 0.5, %v4564_v11  ;;  %v4563_v30 = vadd.f32 1.0, %v7420_v61  ;;  %7429 = vtanh.f32 %v4488_v36 }
 0x341   : >> { %v8999_v8 = vmul.f32 %v4580_v47, %v8872_v55   ;;  %v4579_v25 = vmul.f32 0.5, %v4547_v17  ;;  %v4407_v2 = vmul.f32 %v4375_v31, %v8959_v63  ;;  %v4504_v21 = vmul.f32 0.7978846, %v4472_v16 }
 0x342   : >> { %v9664_v4 = vmov %v8996_v37  ;;  %v9004_v54 = vmul.f32 %v8874_v12, %v4596_v20   ;;  %v4595_v1 = vmul.f32 0.5, %v4563_v30  ;;  %v7422_v6 = vpop.eup %7421  ;;  %v4423_v14 = vmul.f32 0.044715, %v4391_v53 }
 0x343   : >> { %v9665_v57 = vmov %v8999_v8  ;;  %v9008_v8 = vmul.f32 %v4579_v25, %v8879_v38   ;;  %v9012_v55 = vadd.f32 %v8915_v34, %v8809_v32  ;;  %v7424_v29 = vpop.eup %7423  ;;  %v4550_v12 = vadd.f32 1.0, %v7422_v6 }
 0x344   : >> { %v9015_v56 = vmul.f32 %v8881_v58, %v4595_v1   ;;  %v4439_v33 = vmul.f32 0.044715, %v4407_v2  ;;  %v9019_v11 = vadd.f32 %v8850_v22, %v8917_v62  ;;  %v4566_v31 = vadd.f32 1.0, %v7424_v29 }
 0x345   : >> { %9666 = vst [vmem:[#allocation35_spill] sm:$0xff] %v9008_v8  ;;  %7431 = vtanh.f32 %v4504_v21  ;;  %v4455_v38 = vadd.f32 %v8951_v60, %v4423_v14  ;;  %v4362_v53 = vmul.f32 %v9012_v55, %v9012_v55  ;;  %v4582_v61 = vmul.f32 0.5, %v4550_v12 }
 0x346   : >> { %v4471_v34 = vadd.f32 %v4439_v33, %v8959_v63  ;;  %v4378_v58 = vmul.f32 %v9019_v11, %v9019_v11  ;;  %v9029_v47 = vadd.f32 %v8809_v32, %v8922_v15  ;;  %v4598_v17 = vmul.f32 0.5, %v4566_v31 }
 0x347   : >> { %v4487_v22 = vmul.f32 0.7978846, %v4455_v38  ;;  %v4394_v62 = vmul.f32 %v4362_v53, %v9012_v55  ;;  %v9034_v37 = vadd.f32 %v8853_v7, %v8924_v19  ;;  %v7426_v20 = vpop.eup %7425  ;;  %v9037_v30 = vmul.f32 %v8900_v44, %v4582_v61  }
 0x348   : >> { %v4503_v36 = vmul.f32 0.7978846, %v4471_v34  ;;  %v4410_v8 = vmul.f32 %v9019_v11, %v4378_v58  ;;  %v4361_v25 = vmul.f32 %v9029_v47, %v9029_v47  ;;  %v7428_v15 = vpop.eup %7427  ;;  %v9043_v16 = vmul.f32 %v4598_v17, %v8903_v23  }
 0x349   : >> { %v9667_v1 = vmov %v9037_v30  ;;  %v4549_v6 = vadd.f32 1.0, %v7426_v20  ;;  %7433 = vtanh.f32 %v4487_v22  ;;  %v4426_v21 = vmul.f32 0.044715, %v4394_v62 }
 0x34a   : >> { %v9668_v2 = vmov %v9043_v16  ;;  %v4565_v14 = vadd.f32 1.0, %v7428_v15  ;;  %7435 = vtanh.f32 %v4503_v36  ;;  %v4442_v7 = vmul.f32 0.044715, %v4410_v8  ;;  %v7430_v23 = vpop.eup %7429 }
 0x34b   : >> { %v4393_v19 = vmul.f32 %v4361_v25, %v9029_v47  ;;  %v4581_v44 = vmul.f32 0.5, %v4549_v6  ;;  %v4458_v29 = vadd.f32 %v4426_v21, %v9012_v55  ;;  %v4377_v12 = vmul.f32 %v9034_v37, %v9034_v37 }
 0x34c   : >> { %v9051_v33 = vadd.f32 %v8941_v26, %v8809_v32  ;;  %v4597_v31 = vmul.f32 0.5, %v4565_v14  ;;  %v4474_v38 = vadd.f32 %v9019_v11, %v4442_v7  ;;  %v9056_v61 = vadd.f32 %v8860_v24, %v8943_v18 }
 0x34d   : >> { %v4425_v53 = vmul.f32 0.044715, %v4393_v19  ;;  %v9059_v34 = vmul.f32 %v8920_v52, %v4581_v44   ;;  %v4552_v17 = vadd.f32 1.0, %v7430_v23  ;;  %v4490_v22 = vmul.f32 0.7978846, %v4458_v29 }
 0x34e   : >> { %v4409_v62 = vmul.f32 %v9034_v37, %v4377_v12  ;;  %v9063_v26 = vmul.f32 %v4597_v31, %v8927_v39   ;;  %v4506_v20 = vmul.f32 0.7978846, %v4474_v38  ;;  %v4364_v36 = vmul.f32 %v9051_v33, %v9051_v33 }
 0x34f   : >> { %v9669_v58 = vmov %v9059_v34  ;;  %v4457_v30 = vadd.f32 %v4425_v53, %v9029_v47  ;;  %v7432_v8 = vpop.eup %7431  ;;  %v4584_v25 = vmul.f32 0.5, %v4552_v17  ;;  %7437 = vtanh.f32 %v4490_v22 }
 0x350   : >> { %v9670_v50 = vmov %v9063_v26  ;;  %v4441_v24 = vmul.f32 0.044715, %v4409_v62  ;;  %v4380_v52 = vmul.f32 %v9056_v61, %v9056_v61  ;;  %v4568_v18 = vadd.f32 1.0, %v7432_v8 }
 0x351   : >> { %7439 = vtanh.f32 %v4506_v20  ;;  %v4489_v15 = vmul.f32 0.7978846, %v4457_v30  ;;  %v4396_v16 = vmul.f32 %v4364_v36, %v9051_v33  ;;  %v9072_v39 = vmul.f32 %v8932_v51, %v4584_v25  }
 0x352   : >> { %v4473_v26 = vadd.f32 %v9034_v37, %v4441_v24  ;;  %v4412_v6 = vmul.f32 %v9056_v61, %v4380_v52  ;;  %v9078_v21 = vadd.f32 %v8809_v32, %v8953_v40  ;;  %v4600_v14 = vmul.f32 0.5, %v4568_v18 }
 0x353   : >> { %7441 = vtanh.f32 %v4489_v15  ;;  %v4428_v7 = vmul.f32 0.044715, %v4396_v16  ;;  %v9082_v19 = vadd.f32 %v8863_v9, %v8955_v27  ;;  %v7434_v44 = vpop.eup %7433  ;;  %v9088_v23 = vadd.f32 %v8825_v43, %v8967_v59 }
 0x354   : >> { %v4505_v29 = vmul.f32 0.7978846, %v4473_v26  ;;  %v4444_v12 = vmul.f32 0.044715, %v4412_v6  ;;  %v4363_v51 = vmul.f32 %v9078_v21, %v9078_v21  ;;  %v7436_v31 = vpop.eup %7435  ;;  %v9091_v40 = vmul.f32 %v4600_v14, %v8935_v48  }
 0x355   : >> { %v4551_v38 = vadd.f32 1.0, %v7434_v44  ;;  %v4460_v53 = vadd.f32 %v4428_v7, %v9051_v33  ;;  %v4379_v9 = vmul.f32 %v9082_v19, %v9082_v19  ;;  %v4567_v27 = vadd.f32 1.0, %v7436_v31 }
 0x356   : >> { %7443 = vtanh.f32 %v4505_v29  ;;  %v4476_v34 = vadd.f32 %v9056_v61, %v4444_v12  ;;  %v4395_v17 = vmul.f32 %v4363_v51, %v9078_v21  ;;  %v4366_v48 = vmul.f32 %v9088_v23, %v9088_v23 }
 0x357   : >> { %v4583_v22 = vmul.f32 0.5, %v4551_v38  ;;  %v4492_v62 = vmul.f32 0.7978846, %v4460_v53  ;;  %v4411_v43 = vmul.f32 %v9082_v19, %v4379_v9  ;;  %v4599_v59 = vmul.f32 0.5, %v4567_v27 }
 0x358   : >> { %v4508_v20 = vmul.f32 0.7978846, %v4476_v34  ;;  %v4427_v30 = vmul.f32 0.044715, %v4395_v17  ;;  %v9103_v36 = vadd.f32 %v8969_v46, %v8809_v32  ;;  %v4398_v25 = vmul.f32 %v9088_v23, %v4366_v48 }
 0x359   : >> { %v9106_v12 = vmul.f32 %v8951_v60, %v4583_v22   ;;  %7445 = vtanh.f32 %v4492_v62  ;;  %v4443_v8 = vmul.f32 0.044715, %v4411_v43  ;;  %v7438_v24 = vpop.eup %7437  ;;  %v9110_v18 = vmul.f32 %v4599_v59, %v8959_v63  }
 0x35a   : >> { %7447 = vtanh.f32 %v4508_v20  ;;  %v4459_v15 = vadd.f32 %v4427_v30, %v9078_v21  ;;  %v4382_v16 = vmul.f32 %v9103_v36, %v9103_v36  ;;  %v4554_v46 = vadd.f32 1.0, %v7438_v24 }
 0x35b   : >> { %v9671_v52 = vmov %v9106_v12  ;;  %v9672_v44 = vmov %v9110_v18  ;;  %v7440_v26 = vpop.eup %7439  ;;  %v4475_v6 = vadd.f32 %v9082_v19, %v4443_v8  ;;  %v4430_v60 = vmul.f32 0.044715, %v4398_v25 }
 0x35c   : >> { %v9118_v14 = vadd.f32 %v8828_v42, %v8972_v45  ;;  %v4570_v7 = vadd.f32 1.0, %v7440_v26  ;;  %v4491_v29 = vmul.f32 0.7978846, %v4459_v15  ;;  %v4414_v63 = vmul.f32 %v4382_v16, %v9103_v36 }
 0x35d   : >> { %v9123_v12 = vadd.f32 %v8809_v32, %v8974_v0  ;;  %v7442_v51 = vpop.eup %7441  ;;  %v4586_v31 = vmul.f32 0.5, %v4554_v46  ;;  %v4507_v38 = vmul.f32 0.7978846, %v4475_v6  ;;  %v4462_v53 = vadd.f32 %v9088_v23, %v4430_v60 }
 0x35e   : >> { %v4365_v9 = vmul.f32 %v9118_v14, %v9118_v14  ;;  %v4602_v27 = vmul.f32 0.5, %v4570_v7  ;;  %v4553_v34 = vadd.f32 1.0, %v7442_v51  ;;  %7449 = vtanh.f32 %v4491_v29 }
 0x35f   : >> { %v4446_v42 = vmul.f32 0.044715, %v4414_v63  ;;  %v9129_v15 = vmul.f32 %v4586_v31, %v9012_v55   ;;  %7451 = vtanh.f32 %v4507_v38  ;;  %v4494_v17 = vmul.f32 0.7978846, %v4462_v53 }
 0x360   : >> { %v4397_v0 = vmul.f32 %v9118_v14, %v4365_v9  ;;  %v7444_v22 = vpop.eup %7443  ;;  %v9133_v31 = vmul.f32 %v9019_v11, %v4602_v27   ;;  %v4585_v43 = vmul.f32 0.5, %v4553_v34  ;;  %v4381_v59 = vmul.f32 %v9123_v12, %v9123_v12 }
 0x361   : >> { %v9673_v45 = vmov %v9129_v15  ;;  %v4478_v48 = vadd.f32 %v4446_v42, %v9103_v36  ;;  %v4569_v20 = vadd.f32 1.0, %v7444_v22  ;;  %7453 = vtanh.f32 %v4494_v17 }
 0x362   : >> { %v9674_v62 = vmov %v9133_v31  ;;  %v4429_v30 = vmul.f32 0.044715, %v4397_v0  ;;  %v9140_v55 = vadd.f32 %v8832_v49, %v8981_v3  ;;  %v9143_v8 = vmul.f32 %v4585_v43, %v9029_v47  }
 0x363   : >> { %v4510_v25 = vmul.f32 0.7978846, %v4478_v48  ;;  %v4413_v11 = vmul.f32 %v4381_v59, %v9123_v12  ;;  %v9148_v24 = vadd.f32 %v8983_v28, %v8809_v32  ;;  %v7446_v18 = vpop.eup %7445  ;;  %v4601_v15 = vmul.f32 0.5, %v4569_v20 }
 0x364   : >> { %v9675_v46 = vmov %v9143_v8  ;;  %v4461_v16 = vadd.f32 %v9118_v14, %v4429_v30  ;;  %v4368_v26 = vmul.f32 %v9140_v55, %v9140_v55  ;;  %v9155_v3 = vadd.f32 %v8835_v10, %v8988_v35  ;;  %v7448_v49 = vpop.eup %7447 }
 0x365   : >> { %v4556_v47 = vadd.f32 1.0, %v7446_v18  ;;  %7455 = vtanh.f32 %v4510_v25  ;;  %v4445_v6 = vmul.f32 0.044715, %v4413_v11  ;;  %v4384_v60 = vmul.f32 %v9148_v24, %v9148_v24 }
 0x366   : >> { %v9160_v30 = vmul.f32 %v9034_v37, %v4601_v15   ;;  %v4572_v28 = vadd.f32 1.0, %v7448_v49  ;;  %v4493_v7 = vmul.f32 0.7978846, %v4461_v16  ;;  %v4400_v29 = vmul.f32 %v9140_v55, %v4368_v26 }
 0x367   : >> { %v4588_v51 = vmul.f32 0.5, %v4556_v47  ;;  %v4477_v31 = vadd.f32 %v4445_v6, %v9123_v12  ;;  %v4416_v10 = vmul.f32 %v4384_v60, %v9148_v24  ;;  %v4367_v35 = vmul.f32 %v9155_v3, %v9155_v3 }
 0x368   : >> { %v9676_v63 = vmov %v9160_v30  ;;  %v4604_v38 = vmul.f32 0.5, %v4572_v28  ;;  %7457 = vtanh.f32 %v4493_v7  ;;  %v4432_v53 = vmul.f32 0.044715, %v4400_v29  ;;  %v7450_v37 = vpop.eup %7449 }
 0x369   : >> { %v4313_v9 = vadd.f32 %v8809_v32, %v8990_v13  ;;  %v9170_v17 = vmul.f32 %v4588_v51, %v9051_v33   ;;  %v4509_v27 = vmul.f32 0.7978846, %v4477_v31  ;;  %v4448_v34 = vmul.f32 0.044715, %v4416_v10  ;;  %v7452_v22 = vpop.eup %7451 }
 0x36a   : >> { %v4399_v0 = vmul.f32 %v9155_v3, %v4367_v35  ;;  %v9174_v33 = vmul.f32 %v9056_v61, %v4604_v38   ;;  %v4555_v48 = vadd.f32 1.0, %v7450_v37  ;;  %v4464_v59 = vadd.f32 %v9140_v55, %v4432_v53 }
 0x36b   : >> { %v9677_v42 = vmov %v9170_v17  ;;  %v4383_v20 = vmul.f32 %v4313_v9, %v4313_v9  ;;  %v4571_v30 = vadd.f32 1.0, %v7452_v22  ;;  %7459 = vtanh.f32 %v4509_v27  ;;  %v7454_v8 = vpop.eup %7453 }
 0x36c   : >> { %9678 = vst [vmem:[#allocation36_spill] sm:$0xff] %v9174_v33  ;;  %v9679_v43 = vmov %v9174_v33  ;;  %v4480_v32 = vadd.f32 %v4448_v34, %v9148_v24  ;;  %v4431_v13 = vmul.f32 0.044715, %v4399_v0  ;;  %v4587_v25 = vmul.f32 0.5, %v4555_v48 }
 0x36d   : >> { %v4496_v17 = vmul.f32 0.7978846, %v4464_v59  ;;  %v4415_v11 = vmul.f32 %v4383_v20, %v4313_v9  ;;  %v4603_v18 = vmul.f32 0.5, %v4571_v30  ;;  %v4558_v15 = vadd.f32 1.0, %v7454_v8 }
 0x36e   : >> { %v4512_v16 = vmul.f32 0.7978846, %v4480_v32  ;;  %v4463_v26 = vadd.f32 %v9155_v3, %v4431_v13  ;;  %v9180_v33 = vmul.f32 %v4587_v25, %v9078_v21  }
 0x36f   : >> { %7461 = vtanh.f32 %v4496_v17  ;;  %v4447_v49 = vmul.f32 0.044715, %v4415_v11  ;;  %v7456_v47 = vpop.eup %7455  ;;  %v9183_v32 = vmul.f32 %v9082_v19, %v4603_v18   ;;  %v4590_v6 = vmul.f32 0.5, %v4558_v15 }
 0x370   : >> { %v9680_v61 = vmov %v9180_v33  ;;  %7463 = vtanh.f32 %v4512_v16  ;;  %v4495_v28 = vmul.f32 0.7978846, %v4463_v26  ;;  %v4574_v7 = vadd.f32 1.0, %v7456_v47 }
 0x371   : >> { %9681 = vst [vmem:[#allocation37_spill] sm:$0xff] %v9183_v32  ;;  %v9682_v60 = vmov %v9183_v32  ;;  %v4479_v29 = vadd.f32 %v4447_v49, %v4313_v9  ;;  %v9186_v19 = vmul.f32 %v9088_v23, %v4590_v6   ;;  %v9699_v33 = vmov %v9679_v43  ;;  %v9726_v6 = vld [vmem:[#allocation34_spill] sm:$0xff]  ;;  %v9730_v43 = vld [vmem:[#allocation35_spill] sm:$0xff] (%p9211_p5) }
 0x372   : >> { %7465 = vtanh.f32 %v4495_v28  ;;  %v7458_v31 = vpop.eup %7457  ;;  %v4606_v10 = vmul.f32 0.5, %v4574_v7  ;;  %v9704_v28 = vmov %v9672_v44  ;;  %v9706_v26 = vmov %v9670_v50  ;;  %v9725_v7 = vld [vmem:[#allocation33_spill] sm:$0xff] }
 0x373   : >> { %v9683_v51 = vmov %v9186_v19  ;;  %v4511_v35 = vmul.f32 0.7978846, %v4479_v29  ;;  %v4557_v21 = vadd.f32 1.0, %v7458_v31  ;;  %v9701_v31 = vmov %v9674_v62 }
 0x374   : >> { %v9189_v38 = vmul.f32 %v4606_v10, %v9103_v36   ;;  %v9703_v29 = vmov %v9091_v40  ;;  %v9715_v17 = vmov %v9677_v42  ;;  %v9716_v16 = vmov %v9680_v61 }
 0x375   : >> { %7467 = vtanh.f32 %v4511_v35  ;;  %v7460_v53 = vpop.eup %7459  ;;  %v4589_v37 = vmul.f32 0.5, %v4557_v21  ;;  %v9717_v15 = vmov %v9673_v45  ;;  %v9721_v11 = vmov %v9667_v1  ;;  %v5324_v17 = vld [vmem:[%s9543_s11 + $0x8] sm:$0xff] (%p9211_p5) }
 0x376   : >> { %v4573_v27 = vadd.f32 1.0, %v7460_v53  ;;  %v9697_v35 = vmov %v9189_v38  ;;  %v9722_v10 = vmov %v9669_v58  ;;  %v6944_v6 = vpack.c.bf16 (%p9211_p5), %v9665_v57, %v9730_v43  ;;  %v5323_v43 = vld [vmem:[%s9543_s11] sm:$0xff] (%p9211_p5) }
 0x377   : >> { %v9192_v18 = vmul.f32 %v9118_v14, %v4589_v37   ;;  %v6992_v11 = vpack.c.bf16 (%p9211_p5), %v5324_v17, %v5323_v43 }
 0x378   : >> { %v4605_v22 = vmul.f32 0.5, %v4573_v27  ;;  %v9705_v27 = vmov %v9668_v2 }
 0x379   : >> { %v9684_v0 = vmov %v9192_v18  ;;  %v7462_v34 = vpop.eup %7461 }
 0x37a   : >> { %v7464_v48 = vpop.eup %7463  ;;  %v4560_v23 = vadd.f32 1.0, %v7462_v34  ;;  %v9195_v34 = vmul.f32 %v4605_v22, %v9123_v12   ;;  %v9710_v22 = vmov %v9664_v4  ;;  %v9714_v18 = vmov %v9684_v0 }
 0x37b   : >> { %v4576_v19 = vadd.f32 1.0, %v7464_v48  ;;  %v9720_v12 = vmov %v9671_v52 }
 0x37c   : >> { %v9685_v59 = vmov %v9195_v34  ;;  %v7466_v20 = vpop.eup %7465  ;;  %v4592_v30 = vmul.f32 0.5, %v4560_v23  ;;  %v9709_v23 = vmov %v9662_v5  ;;  %v7767_v12 = vmov (%p9211_p5), 0.0  }
 0x37d   : >> { %v4608_v32 = vmul.f32 0.5, %v4576_v19  ;;  %v4559_v36 = vadd.f32 1.0, %v7466_v20  ;;  %v9698_v34 = vmov %v9685_v59  ;;  %v9713_v19 = vmov %v9683_v51  ;;  %6680 = vmatprep.mubr.msk.f32.mxu0 (%p9211_p5), %vm7766_vm11, %v7767_v12  ;;  %6691 = vmatprep.mubr.msk.f32.mxu1 (%p9211_p5), %vm7766_vm11, %v7767_v12 }
 0x37e   : >> { %v9198_v21 = vmul.f32 %v9140_v55, %v4592_v30   ;;  %v9702_v30 = vmov %v9676_v63  ;;  %v9728_v55 = vld [vmem:[#allocation34_spill] sm:$0xff] (%p9211_p5) }
 0x37f   : >> { %v7468_v13 = vpop.eup %7467  ;;  %v9201_v37 = vmul.f32 %v4608_v32, %v9148_v24   ;;  %v4591_v14 = vmul.f32 0.5, %v4559_v36  ;;  %v9700_v32 = vmov %v9682_v60  ;;  %v9708_v24 = vmov %v9015_v56 }
 0x380   : >> { %v9686_v49 = vmov %v9198_v21  ;;  %v4575_v8 = vadd.f32 1.0, %v7468_v13  ;;  %v9719_v13 = vmov %v9072_v39  ;;  %v6950_v60 = vpack.c.bf16 (%p9211_p5), %v9072_v39, %v9671_v52 }
 0x381   : >> { %9687 = vst [vmem:[#allocation38_spill] sm:$0xff] %v9201_v37  ;;  %v9204_v20 = vmul.f32 %v9155_v3, %v4591_v14   ;;  %v9693_v47 = vmov %v9201_v37  ;;  %v9711_v21 = vmov %v9686_v49  ;;  %v9718_v14 = vmov %v9675_v46  ;;  %635 = sbr.rel (!%p9211_p5) target bundleno = 39 (0x27), region = 147  ;;  %v9729_v3 = vld [vmem:[#allocation33_spill] sm:$0xff] (%p9211_p5)  ;;  %v5328_v13 = vld [vmem:[%s9544_s12] sm:$0xff] (%p9211_p5) }
 0x382   : >> { %v4607_v25 = vmul.f32 0.5, %v4575_v8  ;;  %v9694_v37 = vmov %v9693_v47  ;;  %v9724_v8 = vld [vmem:[#allocation35_spill] sm:$0xff]  ;;  %v6941_v48 = vpack.c.bf16 (%p9211_p5), %v9729_v3, %v9728_v55  ;;  %v6947_v47 = vpack.c.bf16 (%p9211_p5), %v9667_v1, %v9669_v58  ;;  %v9731_v58 = vld [vmem:[#allocation8_spill] sm:$0xff] (%p9211_p5)  ;;  %v5325_v14 = vld [vmem:[%s9543_s11 + $0x10] sm:$0xff] (%p9211_p5) }
 0x383   : >> { %v9689_v53 = vmov %v9204_v20  ;;  %v6959_v1 = vpack.c.bf16 (%p9211_p5), %v9683_v51, %v9684_v0  ;;  %v6956_v39 = vpack.c.bf16 (%p9211_p5), %v9677_v42, %v9680_v61  ;;  %v6968_v24 = vpack.c.bf16 (%p9211_p5), %v9004_v54, %v9015_v56  ;;  %v9733_v56 = vld [vmem:[#allocation36_spill] sm:$0xff] (%p9211_p5)  ;;  %v5326_v8 = vld [vmem:[%s9543_s11 + $0x18] sm:$0xff] (%p9211_p5)  ;;  %v6087_v55 = vld [vmem:[%s9542_s10] ss:$0 sm:$0xff] (%p9211_p5) }
 0x384   : >> { %v9206_v36 = vmul.f32 %v4607_v25, %v4313_v9   ;;  %v9707_v25 = vmov %v9004_v54  ;;  %v9712_v20 = vmov %v9689_v53  ;;  %v9723_v9 = vmov %v9665_v57  ;;  %v9732_v54 = vld [vmem:[#allocation37_spill] sm:$0xff] (%p9211_p5) }
 0x385   : > { %v6953_v57 = vpack.c.bf16 (%p9211_p5), %v9673_v45, %v9675_v46  ;;  %v6962_v52 = vpack.c.bf16 (%p9211_p5), %v9686_v49, %v9689_v53  ;;  %v6965_v45 = vpack.c.bf16 (%p9211_p5), %v9662_v5, %v9664_v4  ;;  %v6971_v46 = vpack.c.bf16 (%p9211_p5), %v9668_v2, %v9670_v50  ;;  %v5241_v9 = vld [vmem:[%s9541_s9 + $0x8] sm:$0xff] (%p9211_p5)  ;;  %v5327_v25 = vld [vmem:[%s7907_s22] sm:$0xff] (%p9211_p5)  ;;  %s9447_s22 = smov (%p9211_p5), 0  }
 0x386   : >> { %9690 = vst [vmem:[#allocation39_spill] sm:$0xff] %v9206_v36  ;;  %v9695_v41 = vmov %v9206_v36  ;;  %v6974_v4 = vpack.c.bf16 (%p9211_p5), %v9091_v40, %v9672_v44  ;;  %v6977_v5 = vpack.c.bf16 (%p9211_p5), %v9674_v62, %v9676_v63  ;;  %v6983_v50 = vpack.c.bf16 (%p9211_p5), %v9189_v38, %v9685_v59  ;;  %v5240_v63 = vld [vmem:[%s9541_s9] sm:$0xff] (%p9211_p5) }
 0x387   : >> { %v9696_v36 = vmov %v9695_v41  ;;  %v7765_v41 = vmov (%p9211_p5), 0.0|0.0   ;;  %v6980_v2 = vpack.c.bf16 (%p9211_p5), %v9733_v56, %v9732_v54  ;;  %v6989_v42 = vpack.c.bf16 (%p9211_p5), %v5241_v9, %v5240_v63 }
 0x388   : > { %6940 = vmatprep.subr.bf16.mxu0 %v7765_v41  ;;  %6946 = vmatprep.subr.bf16.mxu1 %v7765_v41  ;;  %v9735_v44 = vld [vmem:[#allocation38_spill] sm:$0xff]  ;;  %v6995_v53 = vpack.c.bf16 %v5326_v8, %v5325_v14 }
 0x389   : > { %6942 = vmatpush3.bf16.msra.mxu0 %v6941_v48  ;;  %6948 = vmatpush3.bf16.msra.mxu1 %v6947_v47 }
 0x38a   : > { %6943 = vmatprep.subr.bf16.mxu0 %v7765_v41  ;;  %6949 = vmatprep.subr.bf16.mxu1 %v7765_v41 }
 0x38d   : > { %6945 = vmatpush3.bf16.msra.mxu0 %v6944_v6  ;;  %6951 = vmatpush3.bf16.msra.mxu1 %v6950_v60  ;;  %v9734_v40 = vld [vmem:[#allocation39_spill] sm:$0xff] }
 0x38e   : > { %6952 = vmatprep.subr.bf16.mxu0 %v7765_v41  ;;  %6958 = vmatprep.subr.bf16.mxu1 %v7765_v41  ;;  %v6986_v62 = vpack.c.bf16 %v9735_v44, %v9734_v40 }
 0x390   : > { %6681 = vmatmul.mubr.msk.f32.vlgmr.msra.gmra.mrb[0].mxu0 %vm689_vm0, %v9731_v58  ;;  %6692 = vmatmul.mubr.msk.f32.vlgmr.msra.gmra.mrb[0].mxu1 %vm689_vm0, %v9731_v58 }
 0x391   : > { %6954 = vmatpush3.bf16.msra.mxu0 %v6953_v57  ;;  %6960 = vmatpush3.bf16.msra.mxu1 %v6959_v1 }
 0x392   : > { %6955 = vmatprep.subr.bf16.mxu0 %v7765_v41  ;;  %6961 = vmatprep.subr.bf16.mxu1 %v7765_v41 }
 0x393   : > { %6702 = vmatprep.mubr.msk.f32.mxu0 %vm7766_vm11, %v7767_v12  ;;  %6713 = vmatprep.mubr.msk.f32.mxu1 %vm7766_vm11, %v7767_v12 }
 0x395   : > { %6957 = vmatpush3.bf16.msra.mxu0 %v6956_v39  ;;  %6963 = vmatpush3.bf16.msra.mxu1 %v6962_v52  ;;  %v6091_v39 = vld [vmem:[%s9545_s13] ss:$0 sm:$0xff] }
 0x396   : > { %6964 = vmatprep.subr.bf16.mxu0 %v7765_v41  ;;  %6970 = vmatprep.subr.bf16.mxu1 %v7765_v41 }
 0x398   : > { %6703 = vmatmul.mubr.msk.f32.vlgmr.msra.gmra.mrb[2].mxu0 %vm689_vm0, %v9731_v58  ;;  %6714 = vmatmul.mubr.msk.f32.vlgmr.msra.gmra.mrb[2].mxu1 %vm689_vm0, %v9731_v58 }
 0x399   : > { %6966 = vmatpush3.bf16.msra.mxu0 %v6965_v45  ;;  %6972 = vmatpush3.bf16.msra.mxu1 %v6971_v46 }
 0x39a   : > { %6967 = vmatprep.subr.bf16.mxu0 %v7765_v41  ;;  %6973 = vmatprep.subr.bf16.mxu1 %v7765_v41 }
 0x39b   : > { %6724 = vmatprep.mubr.msk.f32.mxu0 %vm7766_vm11, %v7767_v12  ;;  %6735 = vmatprep.mubr.msk.f32.mxu1 %vm7766_vm11, %v7767_v12 }
 0x39d   : > { %6969 = vmatpush3.bf16.msra.mxu0 %v6968_v24  ;;  %6975 = vmatpush3.bf16.msra.mxu1 %v6974_v4 }
 0x39e   : > { %6976 = vmatprep.subr.bf16.mxu0 %v7765_v41  ;;  %6982 = vmatprep.subr.bf16.mxu1 %v7765_v41 }
 0x3a0   : > { %6725 = vmatmul.mubr.msk.f32.vlgmr.msra.gmra.mrb[4].mxu0 %vm689_vm0, %v9731_v58  ;;  %6736 = vmatmul.mubr.msk.f32.vlgmr.msra.gmra.mrb[4].mxu1 %vm689_vm0, %v9731_v58 }
 0x3a1   : > { %6978 = vmatpush3.bf16.msra.mxu0 %v6977_v5  ;;  %6984 = vmatpush3.bf16.msra.mxu1 %v6983_v50 }
 0x3a2   : > { %6979 = vmatprep.subr.bf16.mxu0 %v7765_v41  ;;  %6985 = vmatprep.subr.bf16.mxu1 %v7765_v41 }
 0x3a3   : > { %6746 = vmatprep.mubr.msk.f32.mxu0 %vm7766_vm11, %v7767_v12  ;;  %6757 = vmatprep.mubr.msk.f32.mxu1 %vm7766_vm11, %v7767_v12 }
 0x3a5   : > { %6981 = vmatpush3.bf16.msra.mxu0 %v6980_v2  ;;  %6987 = vmatpush3.bf16.msra.mxu1 %v6986_v62 }
 0x3a6   : > { %6988 = vmatprep.subr.bf16.mxu1 %v7765_v41  ;;  %6991 = vmatprep.subr.bf16.mxu0 %v7765_v41 }
 0x3a8   : > { %6747 = vmatmul.mubr.msk.f32.vlgmr.msra.gmra.mrb[6].mxu0 %vm689_vm0, %v9731_v58  ;;  %6758 = vmatmul.mubr.msk.f32.vlgmr.msra.gmra.mrb[6].mxu1 %vm689_vm0, %v9731_v58 }
 0x3a9   : > { %6764 = vmatprep.mubr.msk.f32.mxu1 %vm7766_vm11, %v7767_v12  ;;  %6780 = vmatprep.mubr.msk.f32.mxu0 %vm7766_vm11, %v7767_v12 }
 0x3aa   : > { %6990 = vmatpush3.bf16.msra.mxu1 %v6989_v42  ;;  %6993 = vmatpush3.bf16.msra.mxu0 %v6992_v11 }
 0x3ab   : > { %6767 = vmatprep.subr.mxu1 %v7767_v12  ;;  %6994 = vmatprep.subr.bf16.mxu0 %v7765_v41 }
 0x3ae   : > { %6996 = vmatpush3.bf16.msra.mxu0 %v6995_v53 }
 0x463   : > { %v4711_v18 = vpop.f32.mrb[0].mxu0  ;;  %v4781_v15 = vpop.f32.mrb[0].mxu1 }
 0x464   : > { %v5206_v16 = vrot.slane %v4781_v15, 7  ;;  %v6682_v26 = vpop.f32.mrb[1].mxu0  ;;  %v6693_v33 = vpop.f32.mrb[1].mxu1 }
 0x466   : > { %v5227_v61 = vsel %vm1597_vm2, %v4711_v18, %v5206_v16 }
 0x46b   : > { %v4851_v60 = vpop.f32.mrb[2].mxu0  ;;  %v4921_v28 = vpop.f32.mrb[2].mxu1 }
 0x46c   : > { %v5209_v7 = vrot.slane %v4851_v60, 6  ;;  %v6704_v29 = vpop.f32.mrb[3].mxu0  ;;  %v5212_v51 = vrot.slane %v4921_v28, 5  ;;  %v6715_v31 = vpop.f32.mrb[3].mxu1 }
 0x46e   : > { %v5229_v10 = vsel %vm1602_vm3, %v5227_v61, %v5209_v7 }
 0x46f   : > { %v5231_v35 = vsel %vm1607_vm4, %v5229_v10, %v5212_v51 }
 0x473   : > { %v4991_v21 = vpop.f32.mrb[4].mxu0  ;;  %v5061_v38 = vpop.f32.mrb[4].mxu1 }
 0x474   : > { %v5215_v37 = vrot.slane %v4991_v21, 4  ;;  %v6726_v27 = vpop.f32.mrb[5].mxu0  ;;  %v5218_v0 = vrot.slane %v5061_v38, 3  ;;  %v6737_v34 = vpop.f32.mrb[5].mxu1 }
 0x476   : > { %v5233_v22 = vsel %vm1612_vm5, %v5231_v35, %v5215_v37 }
 0x477   : > { %v5235_v23 = vsel %vm1617_vm6, %v5233_v22, %v5218_v0 }
 0x47b   : > { %v5131_v59 = vpop.f32.mrb[6].mxu0  ;;  %v5201_v19 = vpop.f32.mrb[6].mxu1 }
 0x47c   : > { %v5221_v20 = vrot.slane %v5131_v59, 2  ;;  %v5224_v30 = vrot.slane %v5201_v19, 1  ;;  %v6748_v32 = vpop.f32.mrb[7].mxu0  ;;  %v6759_v36 = vpop.f32.mrb[7].mxu1 }
 0x47e   : > { %v5237_v49 = vsel %vm1622_vm7, %v5235_v23, %v5221_v20 }
 0x47f   : > { %v5239_v47 = vsel %vm1627_vm8, %v5237_v49, %v5224_v30 }
 0x480   : > { %6765 = vmatmul.mubr.msk.f32.vlgmr.msra.gmra.mrb[8].mxu1 %vm2004_vm9, %v5239_v47 }
 0x481   : > { %6768 = vmatpush3.msra.mxu1 %v5328_v13  ;;  %6769 = vmatprep.mubr.msk.f32.mxu1 %vm7766_vm11, %v7767_v12 }
 0x484   : > { %6770 = vmatmul.mubr.msk.f32.vlgmr.msra.gmra.mrb[10].mxu1 %vm3183_vm10, %v5327_v25 }
 0x553   : > { %v5319_v3 = vpop.f32.mrb[8].mxu1 }
 0x554   : > { %v5320_v48 = vadd.f32 %v6087_v55, %v5319_v3  ;;  %v6766_v6 = vpop.f32.mrb[9].mxu1 }
 0x556   : > { %6781 = vmatmul.mubr.msk.f32.vlgmr.msra.gmra.mrb[8].mxu0 %vm689_vm0, %v5320_v48 }
 0x557   : > { %v5399_v57 = vpop.f32.mrb[10].mxu1 }
 0x558   : > { %v6771_v1 = vpop.f32.mrb[11].mxu1 }
 0x629   : > { %v5472_v58 = vpop.f32.mrb[8].mxu0 }
 0x62a   : > { %v5473_v52 = vadd.f32 %v5472_v58, %v5399_v57  ;;  %v6782_v45 = vpop.f32.mrb[9].mxu0 }
 0x62c   : > { %v5483_v46 = vadd.f32 %v6091_v39, %v5473_v52  }
 0x62d LB: >> { %v7768_v24 = vmov 0.0|0.0   ;;  %vm7769_vm0 = vmmov 0   ;;  %v7770_v4 = vmov 0.0   ;;  %s6115_s1 = sshll.u32 %s7759_s22, 7  ;;  %v5492_v5 = vmul.f32 %v7755_v46, %v7755_v46  ;;  %s6092_s23 = sshll.u32 %s7759_s22, 1  ;;  %s7759_s22 = sphi %s9447_s22, %s5489_s22   ;;  %v7755_v46 = vphi %v5483_v46, %v9736_v46  }
 0x62e   : >> { %6997 = vmatprep.subr.bf16.mxu0 %v7768_v24  ;;  %6799 = vmatprep.mubr.msk.f32.mxu0 %vm7769_vm0, %v7770_v4  ;;  %s9461_s2 = scalar_lea.vmem %s9546_s14, %s6115_s1  ;;  %vm5519_vm2 = vcmask 523264   ;;  %s5511_s28 = scalar_lea.vmem %s9547_s15, %s6092_s23 }
 0x62f   : >> { %7009 = vmatprep.subr.bf16.mxu1 %v7768_v24  ;;  %6818 = vmatprep.mubr.msk.f32.mxu1 %vm7769_vm0, %v7770_v4  ;;  %v5503_v50 = vld [vmem:[%s9461_s2] sm:$0xff]  ;;  %v5504_v54 = vld [vmem:[%s9461_s2 + $0x8] sm:$0xff]  ;;  %v5505_v56 = vld [vmem:[%s9461_s2 + $0x10] sm:$0xff]  ;;  %v5493_v2 = vmul.f32 %v7755_v46, %v5492_v5  ;;  %s5489_s22 = sadd.s32 1, %s7759_s22  }
 0x630   : >> { %v6998_v40 = vpack.c.bf16 %v5504_v54, %v5503_v50  ;;  %v5506_v44 = vld [vmem:[%s9461_s2 + $0x18] sm:$0xff]  ;;  %v5507_v9 = vld [vmem:[%s9461_s2 + $0x20] sm:$0xff]  ;;  %v5508_v42 = vld [vmem:[%s9461_s2 + $0x28] sm:$0xff]  ;;  %p5486_p6 = scmp.ge.s32.totalorder %s5489_s22, 2  }
 0x631   : >> { %v5494_v62 = vmul.f32 0.044715, %v5493_v2  ;;  %v7001_v63 = vpack.c.bf16 %v5506_v44, %v5505_v56  ;;  %v7004_v11 = vpack.c.bf16 %v5508_v42, %v5507_v9  ;;  %v5509_v18 = vld [vmem:[%s9461_s2 + $0x30] sm:$0xff]  ;;  %v5510_v15 = vld [vmem:[%s9461_s2 + $0x38] sm:$0xff]  ;;  %v6098_v28 = vld [vmem:[%s9461_s2 + $0x40] sm:$0xff]  ;;  %vm5784_vm3 = vcmask (%p5486_p6), 31744  }
 0x632   : >> { %6999 = vmatpush3.bf16.msra.mxu0 %v6998_v40  ;;  %v7007_v16 = vpack.c.bf16 %v5510_v15, %v5509_v18  ;;  %v6099_v7 = vld [vmem:[%s9461_s2 + $0x48] sm:$0xff]  ;;  %v6100_v51 = vld [vmem:[%s9461_s2 + $0x50] sm:$0xff]  ;;  %v6101_v31 = vld [vmem:[%s9461_s2 + $0x58] sm:$0xff] }
 0x633   : >> { %7000 = vmatprep.subr.bf16.mxu0 %v7768_v24  ;;  %v5495_v43 = vadd.f32 %v7755_v46, %v5494_v62  ;;  %v7010_v29 = vpack.c.bf16 %v6099_v7, %v6098_v28  ;;  %v7013_v10 = vpack.c.bf16 %v6101_v31, %v6100_v51  ;;  %v6102_v35 = vld [vmem:[%s9461_s2 + $0x60] sm:$0xff]  ;;  %v6103_v21 = vld [vmem:[%s9461_s2 + $0x68] sm:$0xff]  ;;  %v6104_v37 = vld [vmem:[%s9461_s2 + $0x70] sm:$0xff] }
 0x634   : >> { %v7016_v38 = vpack.c.bf16 %v6103_v21, %v6102_v35  ;;  %v6105_v27 = vld [vmem:[%s9461_s2 + $0x78] sm:$0xff]  ;;  %v6094_v34 = vld [vmem:[%s5511_s28] ss:$0 sm:$0xff]  ;;  %v6108_v8 = vld [vmem:[%s5511_s28 + $0x1] ss:$0 sm:$0xff] }
 0x635   : >> { %v5496_v17 = vmul.f32 0.7978846, %v5495_v43  ;;  %7011 = vmatpush3.bf16.msra.mxu1 %v7010_v29  ;;  %v7019_v0 = vpack.c.bf16 %v6105_v27, %v6104_v37  ;;  %v5695_v48 = vld [vmem:[%s9548_s16] sm:$0xff] (%p5486_p6)  ;;  %v5696_v6 = vld [vmem:[%s9548_s16 + $0x8] sm:$0xff] (%p5486_p6)  ;;  %v5697_v57 = vld [vmem:[%s9548_s16 + $0x10] sm:$0xff] (%p5486_p6) }
 0x636   : >> { %7002 = vmatpush3.bf16.msra.mxu0 %v7001_v63  ;;  %7012 = vmatprep.subr.bf16.mxu1 %v7768_v24  ;;  %v7022_v1 = vpack.c.bf16 (%p5486_p6), %v5696_v6, %v5695_v48  ;;  %v5698_v58 = vld [vmem:[%s9548_s16 + $0x18] sm:$0xff] (%p5486_p6)  ;;  %v5699_v52 = vld [vmem:[%s9548_s16 + $0x20] sm:$0xff] (%p5486_p6)  ;;  %v5700_v45 = vld [vmem:[%s9548_s16 + $0x28] sm:$0xff] (%p5486_p6) }
 0x637   : >> { %7003 = vmatprep.subr.bf16.mxu0 %v7768_v24  ;;  %7469 = vtanh.f32 %v5496_v17  ;;  %v7025_v39 = vpack.c.bf16 (%p5486_p6), %v5698_v58, %v5697_v57  ;;  %v6110_v5 = vld [vmem:[%s9549_s17] ss:$0 sm:$0xff] (%p5486_p6) }
 0x639   : >> { %7014 = vmatpush3.bf16.msra.mxu1 %v7013_v10 }
 0x63a   : >> { %7005 = vmatpush3.bf16.msra.mxu0 %v7004_v11  ;;  %7015 = vmatprep.subr.bf16.mxu1 %v7768_v24 }
 0x63b   : >> { %7006 = vmatprep.subr.bf16.mxu0 %v7768_v24 }
 0x63d   : >> { %7017 = vmatpush3.bf16.msra.mxu1 %v7016_v38 }
 0x63e   : >> { %7008 = vmatpush3.bf16.msra.mxu0 %v7007_v16  ;;  %7018 = vmatprep.subr.bf16.mxu1 %v7768_v24  ;;  %v5702_v24 = vld [vmem:[%s9548_s16 + $0x38] sm:$0xff] (%p5486_p6) }
 0x63f   : > { %7021 = vmatprep.subr.bf16.mxu0 (%p5486_p6), %v7765_v41 }
 0x641   : >> { %v7470_v26 = vpop.eup %7469  ;;  %7020 = vmatpush3.bf16.msra.mxu1 %v7019_v0 }
 0x642   : >> { %v5498_v33 = vadd.f32 1.0, %v7470_v26 }
 0x644   : >> { %v5499_v61 = vmul.f32 0.5, %v5498_v33 }
 0x646   : >> { %v5500_v60 = vmul.f32 %v7755_v46, %v5499_v61 }
 0x648   : >> { %6800 = vmatmul.mubr.msk.f32.vlgmr.msra.gmra.mrb[0].mxu0 %vm5519_vm2, %v5500_v60 }
 0x649   : > { %6837 = vmatprep.mubr.msk.f32.mxu0 (%p5486_p6), %vm7766_vm11, %v7767_v12  ;;  %7023 = vmatpush3.bf16.msra.mxu0 (%p5486_p6), %v7022_v1  ;;  %v7028_v12 = vpack.c.bf16 (%p5486_p6), %v5700_v45, %v5699_v52 }
 0x64a   : > { %7024 = vmatprep.subr.bf16.mxu0 (%p5486_p6), %v7765_v41 }
 0x64d   : > { %7026 = vmatpush3.bf16.msra.mxu0 (%p5486_p6), %v7025_v39 }
 0x64e   : > { %7027 = vmatprep.subr.bf16.mxu0 (%p5486_p6), %v7765_v41 }
 0x651   : > { %7029 = vmatpush3.bf16.msra.mxu0 (%p5486_p6), %v7028_v12 }
 0x652   : > { %7030 = vmatprep.subr.bf16.mxu0 (%p5486_p6), %v7765_v41 }
 0x71b   : >> { %v5589_v22 = vpop.f32.mrb[0].mxu0 }
 0x71c   : >> { %v5590_v23 = vadd.f32 %v6094_v34, %v5589_v22  ;;  %v6801_v59 = vpop.f32.mrb[1].mxu0 }
 0x71e   : >> { %v5594_v19 = vmul.f32 %v5590_v23, %v5590_v23 }
 0x720   : >> { %v5595_v20 = vmul.f32 %v5594_v19, %v5590_v23 }
 0x722   : >> { %v5596_v30 = vmul.f32 0.044715, %v5595_v20 }
 0x724   : >> { %v5597_v32 = vadd.f32 %v5596_v30, %v5590_v23 }
 0x726   : >> { %v5598_v36 = vmul.f32 0.7978846, %v5597_v32 }
 0x728   : >> { %7471 = vtanh.f32 %v5598_v36 }
 0x732   : >> { %v7472_v49 = vpop.eup %7471 }
 0x733   : >> { %v5600_v13 = vadd.f32 1.0, %v7472_v49 }
 0x735   : >> { %v5601_v47 = vmul.f32 0.5, %v5600_v13 }
 0x737   : >> { %v5602_v14 = vmul.f32 %v5601_v47, %v5590_v23 }
 0x739   : >> { %6819 = vmatmul.mubr.msk.f32.vlgmr.msra.gmra.mrb[0].mxu1 %vm5519_vm2, %v5602_v14 }
 0x80b   : > { %5488 = sbr.rel (!%p5486_p6) target bundleno = 1581 (0x62d), region = 158 }
 0x80c   : >> { %v5690_v53 = vpop.f32.mrb[0].mxu1 }
 0x80d   : >> { %v5691_v25 = vadd.f32 %v6108_v8, %v5690_v53  ;;  %v6820_v55 = vpop.f32.mrb[1].mxu1 }
 0x80f   : >> { %v5694_v3 = vadd.f32 %v7755_v46, %v5691_v25  }
 0x811   : >> { %v9736_v46 = vmov %v5694_v3 }
 0x812   : > { %v5701_v46 = vld [vmem:[%s9548_s16 + $0x30] sm:$0xff] }
 0x813   : > { %v7031_v4 = vpack.c.bf16 %v5702_v24, %v5701_v46 }
 0x815   : > { %7032 = vmatpush3.bf16.msra.mxu0 %v7031_v4 }
 0x818   : > { %6838 = vmatmul.mubr.msk.f32.vlgmr.msra.gmra.mrb[0].mxu0 %vm5519_vm2, %v5694_v3 }
 0x8eb   : > { %v5780_v50 = vpop.f32.mrb[0].mxu0 }
 0x8ec   : > { %v5781_v54 = vadd.f32 %v6110_v5, %v5780_v50  ;;  %v6839_v56 = vpop.f32.mrb[1].mxu0 }
 0x8ee   : > { %5785 = vst.msk [vmem:[%s7917_s27] sm:$0xff] %vm5784_vm3, %v5781_v54 }
 0x8ef PF: > { %s9737_s30 = sld [smem:[#allocation2_spill]] }
 0x8f5   : > { %s28_s27 = sadd.s32 1, %s9737_s30  }
 0x8f6   : > { %p25_p7 = scmp.ge.s32.totalorder %s28_s27, 4  }
 0x8f8   :  { %27 = sbr.rel (!%p25_p7) target bundleno = 5 (0x5), region = 169 }

</bundles_post_ra>
